<compile_context>
chip_gen: v7x
topology: tpu7x:2x2x1
jax: 0.10.0
libtpu: 0.0.40
codegen_flags: <defaults>
</compile_context>

<pallas_src>
import jax
import jax.numpy as jnp
from jax.experimental import pallas as pl
from jax.experimental.pallas import tpu as pltpu


def _gelu_tanh(x):
    # 0.5 * x * (1 + tanh(sqrt(2/pi) * (x + 0.044715 * x**3)))
    c = jnp.sqrt(2.0 / jnp.pi).astype(x.dtype)
    return 0.5 * x * (1.0 + jnp.tanh(c * (x + 0.044715 * (x * x * x))))


def ffn_kernel_acc(x_ref, w1_ref, b1_ref, w2_ref, b2_ref, o_ref, acc_ref):
    # Used when the output dtype is not f32: f32 VMEM accumulator, cast on store.
    # x_ref: (tm, E)  w1_ref: (E, th)  b1_ref: (1, th)  w2_ref: (th, E)
    # b2_ref: (1, E) f32   o_ref: (tm, E)   acc_ref: (tm, E) f32
    h_idx = pl.program_id(1)

    @pl.when(h_idx == 0)
    def _():
        acc_ref[...] = jnp.broadcast_to(b2_ref[...], acc_ref.shape)

    h = jnp.dot(x_ref[...], w1_ref[...], preferred_element_type=jnp.float32)
    h = _gelu_tanh(h + b1_ref[...])
    acc_ref[...] += jnp.dot(h.astype(w2_ref.dtype), w2_ref[...],
                            preferred_element_type=jnp.float32)

    @pl.when(h_idx == pl.num_programs(1) - 1)
    def _():
        o_ref[...] = acc_ref[...].astype(o_ref.dtype)


def ffn_kernel_inplace(x_ref, w1_ref, b1_ref, w2_ref, b2_ref, o_ref):
    # Used when the output dtype is f32: the output tile is resident across the
    # h axis, so accumulate into it directly and skip the scratch accumulator.
    h_idx = pl.program_id(1)

    @pl.when(h_idx == 0)
    def _():
        o_ref[...] = jnp.broadcast_to(b2_ref[...], o_ref.shape)

    h = jnp.dot(x_ref[...], w1_ref[...], preferred_element_type=jnp.float32)
    h = _gelu_tanh(h + b1_ref[...])
    o_ref[...] += jnp.dot(h.astype(w2_ref.dtype), w2_ref[...],
                          preferred_element_type=jnp.float32)


def _round_up(n, m):
    return ((n + m - 1) // m) * m


def _pick_tile(dim, target, align):
    """Largest multiple of `align` that divides `dim`, <= target; else full dim."""
    t = min(target, dim)
    t = max(align, (t // align) * align)
    while t > align and dim % t != 0:
        t -= align
    return t if dim % t == 0 else dim


def _pick_row_tile(M, target):
    """Row tile: multiple of 8, <= target, padding waste bounded (~12.5%)."""
    tm = min(target, _round_up(M, 8))
    tm = max(8, (tm // 8) * 8)
    max_waste = max(7, M // 8)
    while tm > 8 and (_round_up(M, tm) - M) > max_waste:
        tm = max(8, ((tm // 2) // 8) * 8)
    return tm


def _vmem_limit_bytes():
    cap = None
    try:
        info = pltpu.get_tpu_info()
        cap = getattr(info, "vmem_capacity_bytes", None)
    except Exception:
        cap = None
    if not cap:
        cap = 64 * 1024 * 1024  # conservative fallback: v7x per-TensorCore VMEM
    return (int(cap) * 3) // 4  # leave headroom for compiler scratch / pipelining


def _pick_hidden_tile(E, H, tm, cbytes, out_bytes, vmem_limit):
    # Per-row-tile working set (x + out double-buffered, f32 accumulator).
    work = 2 * tm * E * cbytes + 2 * tm * E * out_bytes + tm * E * 4
    # Weights resident (grid-invariant index maps): count 2x for buffering.
    if 2 * (2 * E * H * cbytes) + work < int(0.7 * vmem_limit):
        return H
    align = 256 if H % 256 == 0 else (128 if H % 128 == 0 else H)
    if align == H:
        return H  # no lane-aligned divisor; take the full dim
    th = _pick_tile(H, min(H, 1024), align)
    while th > align and 2 * (2 * E * th * cbytes) + work >= int(0.8 * vmem_limit):
        th = _pick_tile(H, max(align, th - align), align)
    return th


def feed_forward(x, w1, b1, w2, b2, *, compute_dtype=jnp.bfloat16, tm=512):
    """x: (B, T, E).  w1: (E, H), b1: (H,), w2: (H, E), b2: (E,).

    Weights stored (in_features, out_features): x @ W + b == torch's x @ W.T + b.
    Matmuls run in `compute_dtype` (bf16 default) with f32 accumulation; the
    output keeps x.dtype.
    """
    B, T, E = x.shape
    E2, H = w1.shape
    assert E2 == E and w2.shape == (H, E) and b1.shape == (H,) and b2.shape == (E,)

    out_dtype = jnp.dtype(x.dtype)
    cdt = jnp.dtype(compute_dtype) if compute_dtype is not None else out_dtype
    cbytes = cdt.itemsize
    out_bytes = out_dtype.itemsize

    M = B * T
    tm = _pick_row_tile(M, tm)
    M_pad = _round_up(M, tm)
    # v7x has 2 TensorCores: make sure the "parallel" row axis has >= 2 tiles
    # whenever it can be split cleanly.
    if M_pad == tm and tm >= 16 and tm % 16 == 0:
        tm //= 2

    vmem_limit = _vmem_limit_bytes()
    th = _pick_hidden_tile(E, H, tm, cbytes, out_bytes, vmem_limit)

    x2d = x.reshape(M, E)
    if M_pad != M:
        x2d = jnp.pad(x2d, ((0, M_pad - M), (0, 0)))
    x2d = x2d.astype(cdt)
    w1c = w1.astype(cdt)
    w2c = w2.astype(cdt)
    b1_2d = b1.reshape(1, H).astype(jnp.float32)
    b2_2d = b2.reshape(1, E).astype(jnp.float32)

    n_row = M_pad // tm
    n_h = H // th

    accumulate_in_out = out_dtype == jnp.dtype(jnp.float32)
    kernel = ffn_kernel_inplace if accumulate_in_out else ffn_kernel_acc
    scratch = [] if accumulate_in_out else [pltpu.VMEM((tm, E), jnp.float32)]

    weight_bytes = 2 * E * H * cbytes
    cost = pl.CostEstimate(
        flops=4 * M_pad * E * H,
        transcendentals=M_pad * H,
        bytes_accessed=(M_pad * E * (cbytes + out_bytes)
                        + weight_bytes * (1 if th == H else n_row)),
    )

    out2d = pl.pallas_call(
        kernel,
        out_shape=jax.ShapeDtypeStruct((M_pad, E), out_dtype),
        grid_spec=pltpu.PrefetchScalarGridSpec(
            num_scalar_prefetch=0,
            grid=(n_row, n_h),                 # rows (parallel), hidden chunks (arbitrary)
            in_specs=[
                pl.BlockSpec((tm, E), lambda i, h: (i, 0)),   # x rows (resident across h)
                pl.BlockSpec((E, th), lambda i, h: (0, h)),   # W1 column chunk
                pl.BlockSpec((1, th), lambda i, h: (0, h)),   # b1 chunk
                pl.BlockSpec((th, E), lambda i, h: (h, 0)),   # W2 row chunk
                pl.BlockSpec((1, E), lambda i, h: (0, 0)),    # b2 (grid-invariant)
            ],
            out_specs=pl.BlockSpec((tm, E), lambda i, h: (i, 0)),
            scratch_shapes=scratch,
        ),
        compiler_params=pltpu.CompilerParams(
            dimension_semantics=("parallel", "arbitrary"),
            vmem_limit_bytes=vmem_limit,
        ),
        cost_estimate=cost,
    )(x2d, w1c, b1_2d, w2c, b2_2d)

    if M_pad != M:
        out2d = out2d[:M]
    return out2d.reshape(B, T, E)


def feed_forward_ref(x, w1, b1, w2, b2):
    h = jnp.einsum("bte,eh->bth", x, w1, precision="highest") + b1
    h = _gelu_tanh(h)
    return jnp.einsum("bth,he->bte", h, w2, precision="highest") + b2


if __name__ == "__main__":
    # Shapes consistent with the module spec: cfg = {'emb_dim': 768}, x = (2, 3, 768)
    B, T, E = 2, 3, 768
    H = 4 * E

    key = jax.random.PRNGKey(0)
    kx, kw1, kb1, kw2, kb2 = jax.random.split(key, 5)

    x = jax.random.normal(kx, (B, T, E), dtype=jnp.float32)
    w1 = jax.random.normal(kw1, (E, H), dtype=jnp.float32) * (1.0 / jnp.sqrt(E))
    b1 = jax.random.normal(kb1, (H,), dtype=jnp.float32) * 0.01
    w2 = jax.random.normal(kw2, (H, E), dtype=jnp.float32) * (1.0 / jnp.sqrt(H))
    b2 = jax.random.normal(kb2, (E,), dtype=jnp.float32) * 0.01

    ref = feed_forward_ref(x, w1, b1, w2, b2)

    # f32 compute path (tight tolerance).
    out_f32 = jax.block_until_ready(
        feed_forward(x, w1, b1, w2, b2, compute_dtype=jnp.float32))
    assert out_f32.shape == (B, T, E)
    assert jnp.allclose(out_f32, ref, atol=2e-3, rtol=2e-3), "f32 path mismatch"

    # Default bf16 compute path (MXU-rate matmuls, f32 accumulation).
    out_bf16 = jax.block_until_ready(feed_forward(x, w1, b1, w2, b2))
    assert out_bf16.shape == (B, T, E)
    assert jnp.allclose(out_bf16, ref, atol=3e-2, rtol=3e-2), "bf16 path mismatch"

    print("KERNEL_OK")
</pallas_src>

<mosaic_0001>
module attributes {stable_mosaic.version = 11 : i64} {
  func.func @ffn_kernel_inplace(%arg0: i32, %arg1: i32, %arg2: memref<8x768xf32, #tpu.memory_space<vmem>>, %arg3: memref<768x1024xf32, #tpu.memory_space<vmem>>, %arg4: memref<1x1024xf32, #tpu.memory_space<vmem>>, %arg5: memref<1024x768xf32, #tpu.memory_space<vmem>>, %arg6: memref<1x768xf32, #tpu.memory_space<vmem>>, %arg7: memref<8x768xf32, #tpu.memory_space<vmem>>) attributes {dimension_semantics = [#tpu.dimension_semantics<parallel>, #tpu.dimension_semantics<arbitrary>], iteration_bounds = array<i64: 1, 3>, scalar_prefetch = 0 : i64, scratch_operands = 0 : i64, tpu.core_type = #tpu.core_type<tc>, window_params = [{transform_indices = @transform_0, window_bounds = array<i64: 8, 768>}, {transform_indices = @transform_1, window_bounds = array<i64: 768, 1024>}, {transform_indices = @transform_2, window_bounds = array<i64: 1, 1024>}, {transform_indices = @transform_3, window_bounds = array<i64: 1024, 768>}, {pipeline_mode = #tpu.pipeline_mode<synchronous>, transform_indices = @transform_4, window_bounds = array<i64: 1, 768>}, {transform_indices = @transform_5, window_bounds = array<i64: 8, 768>}]} {
    %c0_i32 = arith.constant 0 : i32
    %0 = arith.cmpi eq, %arg1, %c0_i32 : i32
    %1 = arith.extui %0 : i1 to i32
    %c0_i32_0 = arith.constant 0 : i32
    %2 = arith.cmpi ne, %1, %c0_i32_0 : i32
    scf.if %2 {
      %c0_17 = arith.constant 0 : index
      %c0_18 = arith.constant 0 : index
      %28 = vector.load %arg6[%c0_17, %c0_18] : memref<1x768xf32, #tpu.memory_space<vmem>>, vector<1x768xf32>
      %29 = vector.shape_cast %28 : vector<1x768xf32> to vector<1x768xf32>
      %30 = vector.broadcast %29 : vector<1x768xf32> to vector<8x768xf32>
      %c0_19 = arith.constant 0 : index
      %c0_20 = arith.constant 0 : index
      %31 = vector.load %arg7[%c0_19, %c0_20] : memref<8x768xf32, #tpu.memory_space<vmem>>, vector<8x768xf32>
      tpu.vector_store %arg7[%c0_19, %c0_20], %30 {strides = array<i32>} : memref<8x768xf32, #tpu.memory_space<vmem>>, vector<8x768xf32>,
    } else {
    }
    %c0 = arith.constant 0 : index
    %c0_1 = arith.constant 0 : index
    %3 = vector.load %arg2[%c0, %c0_1] : memref<8x768xf32, #tpu.memory_space<vmem>>, vector<8x768xf32>
    %c0_2 = arith.constant 0 : index
    %c0_3 = arith.constant 0 : index
    %4 = vector.load %arg3[%c0_2, %c0_3] : memref<768x1024xf32, #tpu.memory_space<vmem>>, vector<768x1024xf32>
    %cst = arith.constant dense<0.000000e+00> : vector<8x1024xf32>
    %5 = tpu.matmul %3, %4, %cst {dimension_numbers = #tpu.dot_dimension_numbers<[1], [0], [0], [1], [0, 0, 1, 1], [], []>} : vector<8x768xf32>, vector<768x1024xf32>, vector<8x1024xf32> -> vector<8x1024xf32>
    %c0_4 = arith.constant 0 : index
    %c0_5 = arith.constant 0 : index
    %6 = vector.load %arg4[%c0_4, %c0_5] : memref<1x1024xf32, #tpu.memory_space<vmem>>, vector<1x1024xf32>
    %7 = vector.broadcast %6 : vector<1x1024xf32> to vector<8x1024xf32>
    %8 = arith.addf %5, %7 : vector<8x1024xf32>
    %cst_6 = arith.constant 0.636619746 : f32
    %9 = math.sqrt %cst_6 : f32
    %cst_7 = arith.constant 5.000000e-01 : f32
    %10 = vector.broadcast %cst_7 : f32 to vector<8x1024xf32>
    %11 = arith.mulf %10, %8 : vector<8x1024xf32>
    %12 = arith.mulf %8, %8 : vector<8x1024xf32>
    %13 = arith.mulf %12, %8 : vector<8x1024xf32>
    %cst_8 = arith.constant 4.471500e-02 : f32
    %14 = vector.broadcast %cst_8 : f32 to vector<8x1024xf32>
    %15 = arith.mulf %14, %13 : vector<8x1024xf32>
    %16 = arith.addf %8, %15 : vector<8x1024xf32>
    %17 = vector.broadcast %9 : f32 to vector<8x1024xf32>
    %18 = arith.mulf %17, %16 : vector<8x1024xf32>
    %19 = math.tanh %18 : vector<8x1024xf32>
    %cst_9 = arith.constant 1.000000e+00 : f32
    %20 = vector.broadcast %cst_9 : f32 to vector<8x1024xf32>
    %21 = arith.addf %20, %19 : vector<8x1024xf32>
    %22 = arith.mulf %11, %21 : vector<8x1024xf32>
    %c0_10 = arith.constant 0 : index
    %c0_11 = arith.constant 0 : index
    %23 = vector.load %arg7[%c0_10, %c0_11] : memref<8x768xf32, #tpu.memory_space<vmem>>, vector<8x768xf32>
    %c0_12 = arith.constant 0 : index
    %c0_13 = arith.constant 0 : index
    %24 = vector.load %arg5[%c0_12, %c0_13] : memref<1024x768xf32, #tpu.memory_space<vmem>>, vector<1024x768xf32>
    %cst_14 = arith.constant dense<0.000000e+00> : vector<8x768xf32>
    %25 = tpu.matmul %22, %24, %cst_14 {dimension_numbers = #tpu.dot_dimension_numbers<[1], [0], [0], [1], [0, 0, 1, 1], [], []>} : vector<8x1024xf32>, vector<1024x768xf32>, vector<8x768xf32> -> vector<8x768xf32>
    %26 = arith.addf %23, %25 : vector<8x768xf32>
    %c0_15 = arith.constant 0 : index
    %c0_16 = arith.constant 0 : index
    %27 = vector.load %arg7[%c0_15, %c0_16] : memref<8x768xf32, #tpu.memory_space<vmem>>, vector<8x768xf32>
    tpu.vector_store %arg7[%c0_15, %c0_16], %26 {strides = array<i32>} : memref<8x768xf32, #tpu.memory_space<vmem>>, vector<8x768xf32>,
    return
  }
  func.func @transform_0(%arg0: i32, %arg1: i32) -> (i32, i32) {
    %c0_i32 = arith.constant 0 : i32
    %c0_i32_0 = arith.constant 0 : i32
    return %arg0, %c0_i32 : i32, i32
  }
  func.func @transform_1(%arg0: i32, %arg1: i32) -> (i32, i32) {
    %c0_i32 = arith.constant 0 : i32
    %c0_i32_0 = arith.constant 0 : i32
    return %c0_i32, %arg1 : i32, i32
  }
  func.func @transform_2(%arg0: i32, %arg1: i32) -> (i32, i32) {
    %c0_i32 = arith.constant 0 : i32
    %c0_i32_0 = arith.constant 0 : i32
    return %c0_i32, %arg1 : i32, i32
  }
  func.func @transform_3(%arg0: i32, %arg1: i32) -> (i32, i32) {
    %c0_i32 = arith.constant 0 : i32
    %c0_i32_0 = arith.constant 0 : i32
    return %arg1, %c0_i32 : i32, i32
  }
  func.func @transform_4(%arg0: i32, %arg1: i32) -> (i32, i32) {
    %c0_i32 = arith.constant 0 : i32
    %c0_i32_0 = arith.constant 0 : i32
    %c0_i32_1 = arith.constant 0 : i32
    return %c0_i32, %c0_i32_0 : i32, i32
  }
  func.func @transform_5(%arg0: i32, %arg1: i32) -> (i32, i32) {
    %c0_i32 = arith.constant 0 : i32
    %c0_i32_0 = arith.constant 0 : i32
    return %arg0, %c0_i32 : i32, i32
  }
}

</mosaic_0001>

<bundles_post_ra>
// kernel: tpu_custom_call.1
= control target key start
LH: loop header
LB: loop body
LE: loop exit
PB: predicated region body
PF: predicated region fallthrough
CT: control target
= control target key end

     0   :  { %s7902_s0 = inlined_call_operand.hbm [shape: f32[8,768], index: 0, kind: input, shape index: {}]   ;;  %s7903_s1 = inlined_call_operand.hbm [shape: f32[768,3072], index: 1, kind: input, shape index: {}]   ;;  %s7904_s2 = inlined_call_operand.hbm [shape: f32[1,3072], index: 2, kind: input, shape index: {}]   ;;  %s7905_s3 = inlined_call_operand.hbm [shape: f32[3072,768], index: 3, kind: input, shape index: {}]   ;;  %s7906_s4 = inlined_call_operand.hbm [shape: f32[1,768], index: 4, kind: input, shape index: {}]   ;;  %s7907_s5 = inlined_call_operand.hbm [shape: f32[8,768], index: 5, kind: output, shape index: {}]  }
   0x1   :  { %7922 = sst [smem:[#allocation20_spill]] %s7903_s1 }
   0x2   :  { %7923 = sst [smem:[#allocation21_spill]] %s7906_s4 }
   0x3   :  { %7924 = sst [smem:[#allocation22_spill]] %s7907_s5 }
   0x4   :  { %10 = vsyncpa [#allocation3], 0 }
   0x5   :  { %11 = vsyncpa [#allocation6], 0 }
   0x6   :  { %13 = vsyncpa [#allocation6 + $0x1], 0 }
   0x7   :  { %14 = vsyncpa [#allocation9], 0 }
   0x8   :  { %16 = vsyncpa [#allocation9 + $0x1], 0 }
   0x9   :  { %17 = vsyncpa [#allocation4], 0  ;;  %s5931_s18 = smov 0   ;;  %s5933_s19 = smov 0  }
   0xa   :  { %s5935_s20 = smov 0   ;;  %s5937_s21 = smov 0  }
   0xb   :  { %s5939_s22 = smov 0   ;;  %s5941_s23 = smov 0  }
   0xc LB: > { %7925 = sst [smem:[#allocation17_spill]] %s5880_s21  ;;  %s5960_s24 = sadd.s32 4294967295, %s5888_s23   ;;  %s5888_s23 = sphi %s5941_s23, %s23_s23   ;;  %s5884_s22 = sphi %s5939_s22, %s7957_s22   ;;  %s5880_s21 = sphi %s5937_s21, %s7956_s21   ;;  %s5876_s20 = sphi %s5935_s20, %s7955_s20   ;;  %s5872_s19 = sphi %s5933_s19, %s7954_s19   ;;  %s5868_s18 = sphi %s5931_s18, %s7953_s18  }
   0xd   : > { %s68_s25 = sadd.s32 1, %s5876_s20  ;;  %p75_p0 = scmp.ne.s32.totalorder %s5876_s20, %s5872_s19 }
   0xe   : > { %p76_p1 = scmp.eq.s32.totalorder %s5888_s23, 0  ;;  %p81_p2 = scmp.ne.s32.totalorder %s5872_s19, %s5868_s18 }
   0xf   : > { %p7908_p3 = scmp.eq.s32.totalorder %s5960_s24, 0  ;;  %p3918_p5 = scmp.ge.s32.totalorder %s5888_s23, 1 }
  0x10   : > { %p77_p4 = por %p76_p1, %p75_p0  ;;  %p191_p7 = scmp.lt.s32.totalorder %s5888_s23, 4 }
  0x11   : > { %p5971_p6 = por %p7908_p3, %p81_p2  ;;  %s5890_s28 = smov [#allocation10]  }
  0x12   : > { %p5976_p8 = pnand %p3918_p5, %p191_p7  ;;  %s218_s29 = sshll.u32 %s5890_s28, 4  ;;  %s219_s29 = int_to_ptr.vmem [resolvable:$true] %s218_s29 }
  0x13   : > { %s7926_s26 = scalar_select %p5971_p6, 1, 0 }
  0x14   : > { %s7927_s27 = scalar_select %p5976_p8, 1, 0 }
  0x15   : > { %p5541_p9 = pneg %p5976_p8  ;;  %p5560_p10 = scmp.lt.s32.totalorder %s5888_s23, 3 }
  0x16   : > { %s7912_s30 = sand.u32 1, %s5888_s23   ;;  %s7930_s4 = sld [smem:[#allocation21_spill]] }
  0x17   : > { %p5986_p11 = pnand %p5541_p9, %p7908_p3  ;;  %p5990_p12 = pnand %p5560_p10, %p77_p4 }
  0x19   : > { %s7928_s6 = scalar_select %p5986_p11, 1, 0 }
  0x1a   : > { %s7929_s7 = scalar_select %p5990_p12, 1, 0 }
  0x1b   : > { %p7913_p0 = pneg %p5986_p11 }
  0x1c   : > { %s5650_s10 = scalar_lea.hbm %s7930_s4, 96 }
  0x1d   : > { %p5651_p13 = scmp.ne.s32.totalorder %s7930_s4, %s5650_s10  ;;  %p5657_p4 = scmp.lt.u32.totalorder %s5650_s10, %s7930_s4 }
  0x1f   : > { %p5653_p1 = pnand %p7913_p0, %p5651_p13 }
  0x21   : > { %p5654_p2 = pneg %p5653_p1 }
  0x23   : > { %p5659_p5 = pnand %p5657_p4, %p5654_p2 }
  0x25   : > { %5662 = shalt.err (!%p5659_p5)
}
  0x26   : > { %s5663_s15 = scalar_lea.vmem %s219_s29, 96  ;;  %p5671_p3 = scmp.lt.s32.totalorder %s219_s29, %s219_s29 }
  0x27   : > { %p5664_p7 = scmp.ne.s32.totalorder %s219_s29, %s5663_s15  ;;  %p5672_p6 = scmp.lt.s32.totalorder %s5663_s15, %s5663_s15 }
  0x29   : > { %p5666_p9 = pnand %p5664_p7, %p7913_p0  ;;  %p5673_p8 = por %p5672_p6, %p5671_p3 }
  0x2b   : > { %p5667_p10 = pneg %p5666_p9 }
  0x2d   : > { %p5674_p12 = pnand %p5673_p8, %p5667_p10 }
  0x2f   : > { %5677 = shalt.err (!%p5674_p12)
}
  0x30   : > { %5547 = dma.hbm_to_vmem [thread:$0]  (!%p5986_p11), %s7930_s4, 96, %s219_s29, [#allocation9]  }
  0x31   : > { %s32_s18 = sadd.s32 1, %s5884_s22  ;;  %s7916_s28 = sand.u32 1, %s5876_s20  }
  0x32   : > { %p33_p3 = scmp.ge.s32.totalorder %s32_s18, 3  ;;  %s6020_s8 = smul.u32 6144, %s7916_s28 }
  0x33   : > { %s3939_s9 = sshll.u32 %s5884_s22, 10  ;;  %s7932_s1 = sld [smem:[#allocation20_spill]] }
  0x34   : > { %s7959_s18 = smov (%p33_p3, %s32_s18), 0  ;;  %s233_s13 = scalar_lea.vmem [#allocation5], %s6020_s8 }
  0x35   : > { %7931 = sst [smem:[#allocation18_spill]] %s7959_s18  ;;  %s65_s29 = ssub.s32 %s5884_s22, %s7959_s18 }
  0x36   : > { %s240_s14 = sshll.u32 %s233_s13, 4  ;;  %p66_p6 = scmp.eq.s32.totalorder %s65_s29, 0  ;;  %s6033_s14 = int_to_ptr.vmem [resolvable:$true] %s240_s14 }
  0x37   : > { %s6042_s16 = scalar_lea.sflag [#allocation6], %s7912_s30  ;;  %p7934_p12 = scmp.ne.s32.totalorder %s7929_s7, 0 }
  0x38   : > { %s6038_s15 = scalar_select %p66_p6, %s5876_s20, %s68_s25  }
  0x39   : > { %s6028_s12 = scalar_lea.hbm %s7932_s1, %s3939_s9  ;;  %p6048_p13 = pneg %p7934_p12 }
  0x3a   : > { %7933 = sst [smem:[#allocation19_spill]] %s6038_s15  ;;  %s5678_s17 = scalar_lea.hbm %s6028_s12, 98304 }
  0x3b   : > { %p5679_p8 = scmp.ne.s32.totalorder %s6028_s12, %s5678_s17  ;;  %s5683_s29 = scalar_lea.hbm %s7932_s1, 294912 }
  0x3c   : > { %s7935_s9 = scalar_select %p6048_p13, 1, 0 }
  0x3d   : > { %p5681_p1 = pnand %p6048_p13, %p5679_p8  ;;  %p5684_p4 = scmp.lt.u32.totalorder %s6028_s12, %s7932_s1 }
  0x3e   : > { %p5685_p5 = scmp.lt.u32.totalorder %s5683_s29, %s5678_s17  ;;  %p5687_p9 = scmp.lt.u32.totalorder %s5678_s17, %s6028_s12 }
  0x3f   : > { %p5682_p2 = pneg %p5681_p1 }
  0x40   : > { %p5686_p7 = por %p5685_p5, %p5684_p4 }
  0x42   : > { %p5688_p10 = por %p5687_p9, %p5686_p7 }
  0x44   : > { %p5689_p3 = pnand %p5688_p10, %p5682_p2 }
  0x46   : > { %5692 = shalt.err (!%p5689_p3)
}
  0x47   : > { %s5693_s30 = scalar_lea.vmem %s6033_s14, 98304  ;;  %s5891_s10 = smov [#allocation5]  }
  0x48   : > { %p5694_p6 = scmp.ne.s32.totalorder %s6033_s14, %s5693_s30  ;;  %s5698_s11 = sshll.u32 %s5891_s10, 4  ;;  %s5699_s11 = int_to_ptr.vmem [resolvable:$false] %s5698_s11 }
  0x49   : > { %s5700_s25 = scalar_lea.vmem %s5699_s11, 196608  ;;  %p5701_p0 = scmp.lt.s32.totalorder %s6033_s14, %s5699_s11 }
  0x4a   : > { %p5696_p8 = pnand %p5694_p6, %p6048_p13  ;;  %p5702_p11 = scmp.lt.s32.totalorder %s5700_s25, %s5693_s30 }
  0x4c   : > { %p5697_p1 = pneg %p5696_p8  ;;  %p5703_p4 = por %p5702_p11, %p5701_p0 }
  0x4e   : > { %p5704_p5 = pnand %p5703_p4, %p5697_p1 }
  0x50   : > { %5707 = shalt.err (!%p5704_p5)
}
  0x51   : > { %s5892_s17 = smov 3072   ;;  %s5893_s29 = smov 1024  }
  0x52   : > { %s5894_s13 = smov 64   ;;  %s5895_s28 = smov [#allocation2]  }
  0x53   : > { %5551 = dma.hbm_to_vmem [thread:$0]  (!%p7934_p12), %s6028_s12, 98304, %s6033_s14, %s6042_s16, %s5892_s17, %s5893_s29, %s5894_s13  }
  0x54   : > { %s207_s10 = sshll.u32 %s5895_s28, 4  ;;  %s7936_s1 = sand.u32 1, %s5876_s20   ;;  %s208_s10 = int_to_ptr.vmem [resolvable:$true] %s207_s10 }
  0x55   : > { %s3924_s11 = sshll.u32 %s7936_s1, 3  ;;  %s5708_s4 = scalar_lea.hbm %s7902_s0, 768 }
  0x56   : > { %p5709_p11 = scmp.ne.s32.totalorder %s7902_s0, %s5708_s4  ;;  %p7937_p0 = scmp.ne.s32.totalorder %s7928_s6, 0 }
  0x57   : > { %p5715_p10 = scmp.lt.u32.totalorder %s5708_s4, %s7902_s0 }
  0x58   : > { %p7938_p2 = pneg %p7937_p0 }
  0x5a   : > { %p5711_p7 = pnand %p5709_p11, %p7938_p2 }
  0x5c   : > { %p5712_p9 = pneg %p5711_p7 }
  0x5e   : > { %p5717_p3 = pnand %p5715_p10, %p5712_p9 }
  0x60   : > { %5720 = shalt.err (!%p5717_p3)
}
  0x61   : > { %s5721_s28 = scalar_lea.vmem %s208_s10, 768  ;;  %p7939_p8 = pmov %p7938_p2 }
  0x62   : > { %p5722_p6 = scmp.ne.s32.totalorder %s208_s10, %s5721_s28  ;;  %p5729_p5 = scmp.lt.s32.totalorder %s208_s10, %s208_s10 }
  0x63   : > { %p5730_p12 = scmp.lt.s32.totalorder %s5721_s28, %s5721_s28 }
  0x64   : > { %p5724_p1 = pnand %p5722_p6, %p7939_p8 }
  0x65   : > { %p5731_p13 = por %p5730_p12, %p5729_p5 }
  0x66   : > { %p5725_p4 = pneg %p5724_p1 }
  0x68   : > { %p5732_p2 = pnand %p5731_p13, %p5725_p4 }
  0x6a   : > { %5735 = shalt.err (!%p5732_p2)
}
  0x6b   : > { %5544 = dma.hbm_to_vmem [thread:$0]  (!%p7937_p0), %s7902_s0, 768, %s208_s10, [#allocation3]  }
  0x6c   : > { %s3940_s4 = sshll.u32 %s5884_s22, 7  ;;  %s254_s14 = scalar_lea.vmem [#allocation7], %s3924_s11 }
  0x6d   : > { %s6098_s12 = scalar_lea.hbm %s7904_s2, %s3940_s4  ;;  %s262_s15 = sshll.u32 %s254_s14, 4  ;;  %s263_s15 = int_to_ptr.vmem [resolvable:$true] %s262_s15 }
  0x6e   : > { %s5736_s6 = scalar_lea.hbm %s6098_s12, 128  ;;  %p7940_p13 = scmp.ne.s32.totalorder %s7935_s9, 0 }
  0x6f   : > { %p5737_p12 = scmp.ne.s32.totalorder %s6098_s12, %s5736_s6  ;;  %s5741_s13 = scalar_lea.hbm %s7904_s2, 384 }
  0x70   : > { %p5742_p0 = scmp.lt.u32.totalorder %s6098_s12, %s7904_s2  ;;  %p5743_p9 = scmp.lt.u32.totalorder %s5741_s13, %s5736_s6 }
  0x71   : > { %p5739_p11 = pnand %p5737_p12, %p7940_p13  ;;  %p5745_p3 = scmp.lt.u32.totalorder %s5736_s6, %s6098_s12 }
  0x72   : > { %p5744_p10 = por %p5743_p9, %p5742_p0 }
  0x73   : > { %p5740_p7 = pneg %p5739_p11 }
  0x74   : > { %p5746_p6 = por %p5745_p3, %p5744_p10 }
  0x76   : > { %p5747_p8 = pnand %p5746_p6, %p5740_p7 }
  0x78   : > { %5750 = shalt.err (!%p5747_p8)
}
  0x79   : > { %s5751_s11 = scalar_lea.vmem %s263_s15, 128  ;;  %s5896_s25 = smov [#allocation7]  }
  0x7a   : > { %p5752_p1 = scmp.ne.s32.totalorder %s263_s15, %s5751_s11  ;;  %s5756_s28 = sshll.u32 %s5896_s25, 4  ;;  %s5757_s28 = int_to_ptr.vmem [resolvable:$false] %s5756_s28 }
  0x7b   : > { %s5758_s1 = scalar_lea.vmem %s5757_s28, 256  ;;  %p5759_p2 = scmp.lt.s32.totalorder %s263_s15, %s5757_s28 }
  0x7c   : > { %p5754_p4 = pnand %p5752_p1, %p7940_p13  ;;  %p5760_p12 = scmp.lt.s32.totalorder %s5758_s1, %s5751_s11 }
  0x7e   : > { %p5755_p5 = pneg %p5754_p4  ;;  %p5761_p11 = por %p5760_p12, %p5759_p2 }
  0x80   : > { %p5762_p0 = pnand %p5761_p11, %p5755_p5 }
  0x82   : > { %5765 = shalt.err (!%p5762_p0)
}
  0x83   : > { %p7941_p9 = scmp.ne.s32.totalorder %s7929_s7, 0  ;;  %s5521_s18 = smul.u32 98304, %s5884_s22 }
  0x84   : > { %s273_s4 = scalar_lea.vmem [#allocation8], %s6020_s8  ;;  %s7942_s17 = sand.u32 1, %s5888_s23  }
  0x85   : > { %5554 = dma.hbm_to_vmem [thread:$0]  (!%p7941_p9), %s6098_s12, 128, %s263_s15, %s6042_s16  }
  0x86   : > { %s281_s5 = sshll.u32 %s273_s4, 4  ;;  %s6123_s6 = scalar_lea.hbm %s7905_s3, %s5521_s18  ;;  %s6125_s5 = int_to_ptr.vmem [resolvable:$true] %s281_s5 }
  0x87   : > { %s6129_s29 = scalar_lea.sflag [#allocation9], %s7942_s17  ;;  %s5766_s13 = scalar_lea.hbm %s6123_s6, 98304 }
  0x88   : > { %p5767_p7 = scmp.ne.s32.totalorder %s6123_s6, %s5766_s13  ;;  %s5771_s12 = scalar_lea.hbm %s7905_s3, 294912 }
  0x89   : > { %p5772_p6 = scmp.lt.u32.totalorder %s6123_s6, %s7905_s3  ;;  %p5773_p8 = scmp.lt.u32.totalorder %s5771_s12, %s5766_s13 }
  0x8a   : > { %p5769_p10 = pnand %p5767_p7, %p7940_p13  ;;  %p5775_p4 = scmp.lt.u32.totalorder %s5766_s13, %s6123_s6 }
  0x8b   : > { %p5774_p1 = por %p5773_p8, %p5772_p6 }
  0x8c   : > { %p5770_p3 = pneg %p5769_p10 }
  0x8d   : > { %p5776_p5 = por %p5775_p4, %p5774_p1 }
  0x8f   : > { %p5777_p2 = pnand %p5776_p5, %p5770_p3 }
  0x91   : > { %5780 = shalt.err (!%p5777_p2)
}
  0x92   : > { %s5781_s30 = scalar_lea.vmem %s6125_s5, 98304  ;;  %s5897_s11 = smov [#allocation8]  }
  0x93   : > { %p5782_p12 = scmp.ne.s32.totalorder %s6125_s5, %s5781_s30  ;;  %s5786_s25 = sshll.u32 %s5897_s11, 4  ;;  %s5787_s25 = int_to_ptr.vmem [resolvable:$false] %s5786_s25 }
  0x94   : > { %s5788_s28 = scalar_lea.vmem %s5787_s25, 196608  ;;  %p5789_p7 = scmp.lt.s32.totalorder %s6125_s5, %s5787_s25 }
  0x95   : > { %p5784_p11 = pnand %p5782_p12, %p7940_p13  ;;  %p5790_p10 = scmp.lt.s32.totalorder %s5788_s28, %s5781_s30 }
  0x97   : > { %p5785_p0 = pneg %p5784_p11  ;;  %p5791_p6 = por %p5790_p10, %p5789_p7 }
  0x99   : > { %p5792_p8 = pnand %p5791_p6, %p5785_p0 }
  0x9b   : > { %5795 = shalt.err (!%p5792_p8)
}
  0x9c   : > { %s5898_s1 = smov 768   ;;  %s5899_s18 = smov 48  }
  0x9d   : > { %5557 = dma.hbm_to_vmem [thread:$0]  (!%p7941_p9), %s6123_s6, 98304, %s6125_s5, %s6129_s29, %s5898_s1, %s5898_s1, %s5899_s18  }
  0x9e   : > { %p7943_p13 = scmp.ne.s32.totalorder %s7927_s27, 0 }
  0x9f   : > { %p7944_p3 = scmp.eq.s32.totalorder (!%p7943_p13), %s5960_s24, 0 }
  0xa0   : > { %293 = sbr.rel (%p7943_p13) target bundleno = 1446 (0x5a6), region = 40 }
  0xa7   : > { %5847 = dma.done.wait (%p7944_p3), [#allocation3], 768   ;;  %p7945_p1 = pmov %p7944_p3 }
  0xa8   : > { %s299_s9 = sand.u32 1, %s5960_s24   ;;  %s301_s4 = sand.u32 1, %s5872_s19  }
  0xa9   : > { %5849 = vsyncadd (%p7945_p1), [#allocation3], 4294966528  ;;  %s5522_s21 = smul.u32 6144, %s301_s4  ;;  %s300_s14 = scalar_lea.sflag [#allocation6], %s299_s9 }
  0xaa   : > { %p7946_p4 = scmp.ne.s32.totalorder %s7926_s26, 0 }
  0xab   : > { %s6161_s17 = scalar_lea.vmem [#allocation5], %s5522_s21 }
  0xac   : > { %5851 = dma.done.wait (%p7946_p4), %s300_s14, 98432  }
  0xad   : > { %5853 = vsyncadd (%p7946_p4), %s300_s14, 4294868864  ;;  %s3932_s27 = sshll.u32 %s301_s4, 3  ;;  %s318_s5 = scalar_lea.sflag [#allocation9], %s299_s9 }
  0xae   : > { %s6167_s7 = scalar_lea.vmem [#allocation7], %s3932_s27  ;;  %s6169_s6 = scalar_lea.vmem [#allocation8], %s5522_s21 }
  0xaf   : > { %5855 = dma.done.wait (%p7946_p4), %s318_s5, 98304  }
  0xb0   : > { %5857 = vsyncadd (%p7946_p4), %s318_s5, 4294868992  ;;  %p7947_p9 = pmov %p7945_p1 }
  0xb1   : > { %p7948_p5 = pmov %p7945_p1 }
  0xb2   : > { %5859 = dma.done.wait (%p7947_p9), [#allocation9], 96  }
  0xb3   : > { %5861 = vsyncadd (%p7948_p5), [#allocation9], 4294967200  ;;  %s7949_s29 = sld [smem:[#allocation17_spill]] }
  0xb9   : > { %p3934_p2 = scmp.ne.s32.totalorder %s7949_s29, 0 }
  0xba   : > { %v366_v0 = vlaneseq (!%p3934_p2)  ;;  %v364_v2 = vld [vmem:[#allocation10] sm:$0x3f] (!%p3934_p2) }
  0xbb   : > { %363 = sbr.rel (%p3934_p2) target bundleno = 197 (0xc5), region = 64 }
  0xbc   : > { %v367_v1 = vshrl.u32 (!%p3934_p2), %v366_v0, 7 }
  0xbe   : > { %v368_v3 = vsub.s32 (!%p3934_p2), 0, %v367_v1  ;;  %v372_v4 = vsub.s32 (!%p3934_p2), 1, %v367_v1  ;;  %v376_v5 = vsub.s32 (!%p3934_p2), 2, %v367_v1  ;;  %v380_v6 = vsub.s32 (!%p3934_p2), 3, %v367_v1 }
  0xbf   : > { %v384_v7 = vsub.s32 (!%p3934_p2), 4, %v367_v1  ;;  %v388_v8 = vsub.s32 (!%p3934_p2), 5, %v367_v1 }
  0xc0   : > { %v369_v9 = vrot.slane (!%p3934_p2), %v364_v2, %v368_v3  ;;  %v373_v10 = vrot.slane (!%p3934_p2), %v364_v2, %v372_v4  ;;  %v377_v11 = vrot.slane (!%p3934_p2), %v364_v2, %v376_v5  ;;  %v381_v12 = vrot.slane (!%p3934_p2), %v364_v2, %v380_v6 }
  0xc1   : > { %v385_v13 = vrot.slane (!%p3934_p2), %v364_v2, %v384_v7  ;;  %v389_v14 = vrot.slane (!%p3934_p2), %v364_v2, %v388_v8 }
  0xc2   : > { %396 = vst [vmem:[#allocation11] sm:$0xff] %v369_v9  ;;  %397 = vst [vmem:[#allocation11 + $0x8] sm:$0xff] %v373_v10 }
  0xc3   : > { %398 = vst [vmem:[#allocation11 + $0x10] sm:$0xff] %v377_v11  ;;  %399 = vst [vmem:[#allocation11 + $0x18] sm:$0xff] %v381_v12 }
  0xc4   : > { %400 = vst [vmem:[#allocation11 + $0x20] sm:$0xff] %v385_v13  ;;  %401 = vst [vmem:[#allocation11 + $0x28] sm:$0xff] %v389_v14 }
  0xc5 PF: > { %v409_v15 = vld [vmem:[%s6161_s17 + $0x8] sm:$0xff]  ;;  %v408_v17 = vld [vmem:[%s6161_s17] sm:$0xff]  ;;  %s5900_s26 = smov [#allocation11]   ;;  %p5563_p12 = scmp.eq.s32.totalorder %s5960_s24, 2 }
  0xc6   : > { %v417_v16 = vld [vmem:[%s6161_s17 + $0x48] sm:$0xff]  ;;  %v416_v19 = vld [vmem:[%s6161_s17 + $0x40] sm:$0xff]  ;;  %s3790_s13 = sshll.u32 %s5900_s26, 4  ;;  %s3791_s13 = int_to_ptr.vmem [resolvable:$true] %s3790_s13 }
  0xc7   : > { %v3941_v18 = vpack.c.bf16 %v417_v16, %v409_v15  ;;  %v425_v20 = vld [vmem:[%s6161_s17 + $0x88] sm:$0xff]  ;;  %v3943_v22 = vpack.c.bf16 %v416_v19, %v408_v17  ;;  %v424_v24 = vld [vmem:[%s6161_s17 + $0x80] sm:$0xff]  ;;  %s5796_s8 = scalar_lea.vmem %s3791_s13, 768  ;;  %p5803_p10 = scmp.lt.s32.totalorder %s3791_s13, %s3791_s13 }
  0xc8   : > { %v433_v21 = vld [vmem:[%s6161_s17 + $0xc8] sm:$0xff]  ;;  %v432_v25 = vld [vmem:[%s6161_s17 + $0xc0] sm:$0xff]  ;;  %p5797_p11 = scmp.ne.s32.totalorder %s3791_s13, %s5796_s8  ;;  %p5804_p6 = scmp.lt.s32.totalorder %s5796_s8, %s5796_s8 }
  0xc9   : > { %v3945_v23 = vpack.c.bf16 %v433_v21, %v425_v20  ;;  %v441_v26 = vld [vmem:[%s6161_s17 + $0x108] sm:$0xff]  ;;  %3942 = vmatprep.subr.bf16.mxu1 %v3941_v18  ;;  %v3947_v28 = vpack.c.bf16 %v432_v25, %v424_v24  ;;  %v440_v30 = vld [vmem:[%s6161_s17 + $0x100] sm:$0xff] }
  0xca   : > { %v449_v27 = vld [vmem:[%s6161_s17 + $0x148] sm:$0xff]  ;;  %3944 = vmatpush1.bf16.msra.mxu1 %v3943_v22  ;;  %v448_v31 = vld [vmem:[%s6161_s17 + $0x140] sm:$0xff]  ;;  %p5798_p0 = pnand %p5797_p11, %p5563_p12  ;;  %p5805_p8 = por %p5804_p6, %p5803_p10 }
  0xcb   : > { %3946 = vmatprep.subr.bf16.mxu1 %v3945_v23  ;;  %v3949_v29 = vpack.c.bf16 %v449_v27, %v441_v26  ;;  %v457_v32 = vld [vmem:[%s6161_s17 + $0x188] sm:$0xff]  ;;  %v3951_v34 = vpack.c.bf16 %v448_v31, %v440_v30  ;;  %v456_v36 = vld [vmem:[%s6161_s17 + $0x180] sm:$0xff]  ;;  %v6235_v31 = vld [vmem:[#allocation2 + $0x8] sm:$0xff] }
  0xcc   : > { %v465_v33 = vld [vmem:[%s6161_s17 + $0x1c8] sm:$0xff]  ;;  %v464_v37 = vld [vmem:[%s6161_s17 + $0x1c0] sm:$0xff]  ;;  %1282 = vmatprep.mubr.f32.mxu1 %v6235_v31  ;;  %p5799_p7 = pneg %p5798_p0 }
  0xcd   : > { %v3953_v35 = vpack.c.bf16 %v465_v33, %v457_v32  ;;  %v473_v38 = vld [vmem:[%s6161_s17 + $0x208] sm:$0xff]  ;;  %v3955_v40 = vpack.c.bf16 %v464_v37, %v456_v36  ;;  %v472_v42 = vld [vmem:[%s6161_s17 + $0x200] sm:$0xff] }
  0xce   : > { %3948 = vmatpush1.bf16.msra.mxu1 %v3947_v28  ;;  %v481_v39 = vld [vmem:[%s6161_s17 + $0x248] sm:$0xff]  ;;  %v480_v43 = vld [vmem:[%s6161_s17 + $0x240] sm:$0xff]  ;;  %p5806_p13 = pnand %p5805_p8, %p5799_p7 }
  0xcf   : > { %3950 = vmatprep.subr.bf16.mxu1 %v3949_v29  ;;  %v3957_v41 = vpack.c.bf16 %v481_v39, %v473_v38  ;;  %v489_v44 = vld [vmem:[%s6161_s17 + $0x288] sm:$0xff]  ;;  %v3959_v48 = vpack.c.bf16 %v480_v43, %v472_v42  ;;  %v488_v49 = vld [vmem:[%s6161_s17 + $0x280] sm:$0xff] }
  0xd0   : > { %v497_v45 = vld [vmem:[%s6161_s17 + $0x2c8] sm:$0xff]  ;;  %v920_v51 = vld [vmem:[%s6161_s17 + $0x1000] sm:$0xff] }
  0xd1   : > { %v921_v46 = vld [vmem:[%s6161_s17 + $0x1008] sm:$0xff]  ;;  %v928_v52 = vld [vmem:[%s6161_s17 + $0x1040] sm:$0xff]  ;;  %v3961_v53 = vpack.c.bf16 %v497_v45, %v489_v44 }
  0xd2   : > { %3952 = vmatpush1.bf16.msra.mxu1 %v3951_v34  ;;  %v929_v47 = vld [vmem:[%s6161_s17 + $0x1048] sm:$0xff]  ;;  %v496_v54 = vld [vmem:[%s6161_s17 + $0x2c0] sm:$0xff]  ;;  %v4071_v55 = vpack.c.bf16 %v928_v52, %v920_v51 }
  0xd3   : > { %3954 = vmatprep.subr.bf16.mxu1 %v3953_v35  ;;  %v4069_v50 = vpack.c.bf16 %v929_v47, %v921_v46  ;;  %v937_v56 = vld [vmem:[%s6161_s17 + $0x1088] sm:$0xff]  ;;  %v936_v61 = vld [vmem:[%s6161_s17 + $0x1080] sm:$0xff]  ;;  %v3963_v63 = vpack.c.bf16 %v496_v54, %v488_v49 }
  0xd4   : > { %v945_v57 = vld [vmem:[%s6161_s17 + $0x10c8] sm:$0xff]  ;;  %v944_v62 = vld [vmem:[%s6161_s17 + $0x10c0] sm:$0xff] }
  0xd5   : > { %v505_v58 = vld [vmem:[%s6161_s17 + $0x308] sm:$0xff]  ;;  %4070 = vmatprep.subr.bf16.mxu0 %v4069_v50  ;;  %v4073_v60 = vpack.c.bf16 %v945_v57, %v937_v56  ;;  %v504_v0 = vld [vmem:[%s6161_s17 + $0x300] sm:$0xff]  ;;  %v4075_v1 = vpack.c.bf16 %v944_v62, %v936_v61 }
  0xd6   : > { %3956 = vmatpush1.bf16.msra.mxu1 %v3955_v40  ;;  %v513_v59 = vld [vmem:[%s6161_s17 + $0x348] sm:$0xff]  ;;  %4072 = vmatpush1.bf16.msra.mxu0 %v4071_v55  ;;  %v512_v5 = vld [vmem:[%s6161_s17 + $0x340] sm:$0xff] }
  0xd7   : > { %3958 = vmatprep.subr.bf16.mxu1 %v3957_v41  ;;  %4074 = vmatprep.subr.bf16.mxu0 %v4073_v60  ;;  %v953_v2 = vld [vmem:[%s6161_s17 + $0x1108] sm:$0xff]  ;;  %v3965_v4 = vpack.c.bf16 %v513_v59, %v505_v58  ;;  %v952_v7 = vld [vmem:[%s6161_s17 + $0x1100] sm:$0xff]  ;;  %v3967_v14 = vpack.c.bf16 %v512_v5, %v504_v0 }
  0xd8   : > { %v961_v3 = vld [vmem:[%s6161_s17 + $0x1148] sm:$0xff]  ;;  %v960_v8 = vld [vmem:[%s6161_s17 + $0x1140] sm:$0xff] }
  0xd9   : > { %v4077_v6 = vpack.c.bf16 %v961_v3, %v953_v2  ;;  %v521_v9 = vld [vmem:[%s6161_s17 + $0x388] sm:$0xff]  ;;  %v4079_v12 = vpack.c.bf16 %v960_v8, %v952_v7  ;;  %v520_v15 = vld [vmem:[%s6161_s17 + $0x380] sm:$0xff] }
  0xda   : > { %3960 = vmatpush1.bf16.msra.mxu1 %v3959_v48  ;;  %v529_v10 = vld [vmem:[%s6161_s17 + $0x3c8] sm:$0xff]  ;;  %4076 = vmatpush1.bf16.msra.mxu0 %v4075_v1  ;;  %v968_v17 = vld [vmem:[%s6161_s17 + $0x1180] sm:$0xff] }
  0xdb   : > { %3962 = vmatprep.subr.bf16.mxu1 %v3961_v53  ;;  %v969_v11 = vld [vmem:[%s6161_s17 + $0x1188] sm:$0xff]  ;;  %4078 = vmatprep.subr.bf16.mxu0 %v4077_v6  ;;  %v976_v18 = vld [vmem:[%s6161_s17 + $0x11c0] sm:$0xff]  ;;  %v3969_v19 = vpack.c.bf16 %v529_v10, %v521_v9 }
  0xdc   : > { %v977_v13 = vld [vmem:[%s6161_s17 + $0x11c8] sm:$0xff]  ;;  %v528_v20 = vld [vmem:[%s6161_s17 + $0x3c0] sm:$0xff]  ;;  %v4083_v26 = vpack.c.bf16 %v976_v18, %v968_v17 }
  0xdd   : > { %v4081_v16 = vpack.c.bf16 %v977_v13, %v969_v11  ;;  %v985_v21 = vld [vmem:[%s6161_s17 + $0x1208] sm:$0xff]  ;;  %v536_v25 = vld [vmem:[%s6161_s17 + $0x400] sm:$0xff]  ;;  %v3971_v27 = vpack.c.bf16 %v528_v20, %v520_v15 }
  0xde   : > { %3964 = vmatpush1.bf16.msra.mxu1 %v3963_v63  ;;  %v993_v22 = vld [vmem:[%s6161_s17 + $0x1248] sm:$0xff]  ;;  %4080 = vmatpush1.bf16.msra.mxu0 %v4079_v12  ;;  %v984_v29 = vld [vmem:[%s6161_s17 + $0x1200] sm:$0xff] }
  0xdf   : > { %3966 = vmatprep.subr.bf16.mxu1 %v3965_v4  ;;  %v537_v23 = vld [vmem:[%s6161_s17 + $0x408] sm:$0xff]  ;;  %4082 = vmatprep.subr.bf16.mxu0 %v4081_v16  ;;  %v4085_v28 = vpack.c.bf16 %v993_v22, %v985_v21  ;;  %v992_v30 = vld [vmem:[%s6161_s17 + $0x1240] sm:$0xff] }
  0xe0   : > { %v545_v24 = vld [vmem:[%s6161_s17 + $0x448] sm:$0xff]  ;;  %v544_v33 = vld [vmem:[%s6161_s17 + $0x440] sm:$0xff]  ;;  %v4087_v38 = vpack.c.bf16 %v992_v30, %v984_v29 }
  0xe1   : > { %v3973_v32 = vpack.c.bf16 %v545_v24, %v537_v23  ;;  %v1001_v34 = vld [vmem:[%s6161_s17 + $0x1288] sm:$0xff]  ;;  %v3975_v39 = vpack.c.bf16 %v544_v33, %v536_v25  ;;  %v552_v40 = vld [vmem:[%s6161_s17 + $0x480] sm:$0xff] }
  0xe2   : > { %3968 = vmatpush1.bf16.msra.mxu1 %v3967_v14  ;;  %v1009_v35 = vld [vmem:[%s6161_s17 + $0x12c8] sm:$0xff]  ;;  %4084 = vmatpush1.bf16.msra.mxu0 %v4083_v26  ;;  %v1000_v42 = vld [vmem:[%s6161_s17 + $0x1280] sm:$0xff] }
  0xe3   : > { %3970 = vmatprep.subr.bf16.mxu1 %v3969_v19  ;;  %v553_v36 = vld [vmem:[%s6161_s17 + $0x488] sm:$0xff]  ;;  %4086 = vmatprep.subr.bf16.mxu0 %v4085_v28  ;;  %v4089_v41 = vpack.c.bf16 %v1009_v35, %v1001_v34  ;;  %v1008_v43 = vld [vmem:[%s6161_s17 + $0x12c0] sm:$0xff] }
  0xe4   : > { %v561_v37 = vld [vmem:[%s6161_s17 + $0x4c8] sm:$0xff]  ;;  %v560_v45 = vld [vmem:[%s6161_s17 + $0x4c0] sm:$0xff]  ;;  %v4091_v50 = vpack.c.bf16 %v1008_v43, %v1000_v42 }
  0xe5   : > { %v3977_v44 = vpack.c.bf16 %v561_v37, %v553_v36  ;;  %v1017_v46 = vld [vmem:[%s6161_s17 + $0x1308] sm:$0xff]  ;;  %v3979_v51 = vpack.c.bf16 %v560_v45, %v552_v40  ;;  %v568_v52 = vld [vmem:[%s6161_s17 + $0x500] sm:$0xff] }
  0xe6   : > { %3972 = vmatpush1.bf16.msra.mxu1 %v3971_v27  ;;  %v1025_v47 = vld [vmem:[%s6161_s17 + $0x1348] sm:$0xff]  ;;  %4088 = vmatpush1.bf16.msra.mxu0 %v4087_v38  ;;  %v1016_v54 = vld [vmem:[%s6161_s17 + $0x1300] sm:$0xff] }
  0xe7   : > { %3974 = vmatprep.subr.bf16.mxu1 %v3973_v32  ;;  %v569_v48 = vld [vmem:[%s6161_s17 + $0x508] sm:$0xff]  ;;  %4090 = vmatprep.subr.bf16.mxu0 %v4089_v41  ;;  %v4093_v53 = vpack.c.bf16 %v1025_v47, %v1017_v46  ;;  %v1024_v55 = vld [vmem:[%s6161_s17 + $0x1340] sm:$0xff] }
  0xe8   : > { %v577_v49 = vld [vmem:[%s6161_s17 + $0x548] sm:$0xff]  ;;  %v576_v57 = vld [vmem:[%s6161_s17 + $0x540] sm:$0xff]  ;;  %v4095_v62 = vpack.c.bf16 %v1024_v55, %v1016_v54 }
  0xe9   : > { %v3981_v56 = vpack.c.bf16 %v577_v49, %v569_v48  ;;  %v1033_v58 = vld [vmem:[%s6161_s17 + $0x1388] sm:$0xff]  ;;  %v3983_v63 = vpack.c.bf16 %v576_v57, %v568_v52  ;;  %v584_v0 = vld [vmem:[%s6161_s17 + $0x580] sm:$0xff] }
  0xea   : > { %3976 = vmatpush1.bf16.msra.mxu1 %v3975_v39  ;;  %v1041_v59 = vld [vmem:[%s6161_s17 + $0x13c8] sm:$0xff]  ;;  %4092 = vmatpush1.bf16.msra.mxu0 %v4091_v50  ;;  %v1032_v2 = vld [vmem:[%s6161_s17 + $0x1380] sm:$0xff] }
  0xeb   : > { %3978 = vmatprep.subr.bf16.mxu1 %v3977_v44  ;;  %v585_v60 = vld [vmem:[%s6161_s17 + $0x588] sm:$0xff]  ;;  %4094 = vmatprep.subr.bf16.mxu0 %v4093_v53  ;;  %v4097_v1 = vpack.c.bf16 %v1041_v59, %v1033_v58  ;;  %v1040_v3 = vld [vmem:[%s6161_s17 + $0x13c0] sm:$0xff]  ;;  %v407_v59 = vld [vmem:[#allocation2 + $0x28] sm:$0xff] }
  0xec   : > { %v593_v61 = vld [vmem:[%s6161_s17 + $0x5c8] sm:$0xff]  ;;  %v592_v5 = vld [vmem:[%s6161_s17 + $0x5c0] sm:$0xff]  ;;  %v4099_v10 = vpack.c.bf16 %v1040_v3, %v1032_v2  ;;  %1424 = vmatprep.mubr.f32.mxu0 %v407_v59  ;;  %v406_v59 = vld [vmem:[#allocation2 + $0x20] sm:$0xff] }
  0xed   : > { %v3985_v4 = vpack.c.bf16 %v593_v61, %v585_v60  ;;  %v1049_v6 = vld [vmem:[%s6161_s17 + $0x1408] sm:$0xff]  ;;  %v3987_v11 = vpack.c.bf16 %v592_v5, %v584_v0  ;;  %v600_v12 = vld [vmem:[%s6161_s17 + $0x600] sm:$0xff] }
  0xee   : > { %3980 = vmatpush1.bf16.msra.mxu1 %v3979_v51  ;;  %v1057_v7 = vld [vmem:[%s6161_s17 + $0x1448] sm:$0xff]  ;;  %4096 = vmatpush1.bf16.msra.mxu0 %v4095_v62  ;;  %v1048_v14 = vld [vmem:[%s6161_s17 + $0x1400] sm:$0xff] }
  0xef   : > { %3982 = vmatprep.subr.bf16.mxu1 %v3981_v56  ;;  %v601_v8 = vld [vmem:[%s6161_s17 + $0x608] sm:$0xff]  ;;  %4098 = vmatprep.subr.bf16.mxu0 %v4097_v1  ;;  %v4101_v13 = vpack.c.bf16 %v1057_v7, %v1049_v6  ;;  %v1056_v15 = vld [vmem:[%s6161_s17 + $0x1440] sm:$0xff] }
  0xf0   : > { %v609_v9 = vld [vmem:[%s6161_s17 + $0x648] sm:$0xff]  ;;  %v608_v17 = vld [vmem:[%s6161_s17 + $0x640] sm:$0xff]  ;;  %v4103_v22 = vpack.c.bf16 %v1056_v15, %v1048_v14 }
  0xf1   : > { %v3989_v16 = vpack.c.bf16 %v609_v9, %v601_v8  ;;  %v1065_v18 = vld [vmem:[%s6161_s17 + $0x1488] sm:$0xff]  ;;  %v3991_v23 = vpack.c.bf16 %v608_v17, %v600_v12  ;;  %v616_v24 = vld [vmem:[%s6161_s17 + $0x680] sm:$0xff]  ;;  %v6307_v8 = vld [vmem:[#allocation2] sm:$0xff] }
  0xf2   : > { %3984 = vmatpush1.bf16.msra.mxu1 %v3983_v63  ;;  %v1073_v19 = vld [vmem:[%s6161_s17 + $0x14c8] sm:$0xff]  ;;  %4100 = vmatpush1.bf16.msra.mxu0 %v4099_v10  ;;  %v1064_v26 = vld [vmem:[%s6161_s17 + $0x1480] sm:$0xff] }
  0xf3   : > { %3986 = vmatprep.subr.bf16.mxu1 %v3985_v4  ;;  %v617_v20 = vld [vmem:[%s6161_s17 + $0x688] sm:$0xff]  ;;  %4102 = vmatprep.subr.bf16.mxu0 %v4101_v13  ;;  %v4105_v25 = vpack.c.bf16 %v1073_v19, %v1065_v18  ;;  %v1072_v27 = vld [vmem:[%s6161_s17 + $0x14c0] sm:$0xff] }
  0xf4   : > { %v625_v21 = vld [vmem:[%s6161_s17 + $0x6c8] sm:$0xff]  ;;  %v624_v29 = vld [vmem:[%s6161_s17 + $0x6c0] sm:$0xff]  ;;  %v4107_v35 = vpack.c.bf16 %v1072_v27, %v1064_v26 }
  0xf5   : > { %v3993_v28 = vpack.c.bf16 %v625_v21, %v617_v20  ;;  %v1081_v30 = vld [vmem:[%s6161_s17 + $0x1508] sm:$0xff]  ;;  %v3995_v36 = vpack.c.bf16 %v624_v29, %v616_v24  ;;  %v632_v37 = vld [vmem:[%s6161_s17 + $0x700] sm:$0xff] }
  0xf6   : > { %3988 = vmatpush1.bf16.msra.mxu1 %v3987_v11  ;;  %v1089_v32 = vld [vmem:[%s6161_s17 + $0x1548] sm:$0xff]  ;;  %4104 = vmatpush1.bf16.msra.mxu0 %v4103_v22  ;;  %v1080_v39 = vld [vmem:[%s6161_s17 + $0x1500] sm:$0xff] }
  0xf7   : > { %3990 = vmatprep.subr.bf16.mxu1 %v3989_v16  ;;  %v633_v33 = vld [vmem:[%s6161_s17 + $0x708] sm:$0xff]  ;;  %4106 = vmatprep.subr.bf16.mxu0 %v4105_v25  ;;  %v4109_v38 = vpack.c.bf16 %v1089_v32, %v1081_v30  ;;  %v1088_v40 = vld [vmem:[%s6161_s17 + $0x1540] sm:$0xff] }
  0xf8   : > { %v641_v34 = vld [vmem:[%s6161_s17 + $0x748] sm:$0xff]  ;;  %v640_v42 = vld [vmem:[%s6161_s17 + $0x740] sm:$0xff]  ;;  %v4111_v47 = vpack.c.bf16 %v1088_v40, %v1080_v39 }
  0xf9   : > { %v3997_v41 = vpack.c.bf16 %v641_v34, %v633_v33  ;;  %v1097_v43 = vld [vmem:[%s6161_s17 + $0x1588] sm:$0xff]  ;;  %v3999_v48 = vpack.c.bf16 %v640_v42, %v632_v37  ;;  %v648_v49 = vld [vmem:[%s6161_s17 + $0x780] sm:$0xff] }
  0xfa   : > { %3992 = vmatpush1.bf16.msra.mxu1 %v3991_v23  ;;  %v1105_v44 = vld [vmem:[%s6161_s17 + $0x15c8] sm:$0xff]  ;;  %4108 = vmatpush1.bf16.msra.mxu0 %v4107_v35  ;;  %v1096_v51 = vld [vmem:[%s6161_s17 + $0x1580] sm:$0xff] }
  0xfb   : > { %3994 = vmatprep.subr.bf16.mxu1 %v3993_v28  ;;  %v649_v45 = vld [vmem:[%s6161_s17 + $0x788] sm:$0xff]  ;;  %4110 = vmatprep.subr.bf16.mxu0 %v4109_v38  ;;  %v4113_v50 = vpack.c.bf16 %v1105_v44, %v1097_v43  ;;  %v1104_v52 = vld [vmem:[%s6161_s17 + $0x15c0] sm:$0xff] }
  0xfc   : > { %v657_v46 = vld [vmem:[%s6161_s17 + $0x7c8] sm:$0xff]  ;;  %v656_v54 = vld [vmem:[%s6161_s17 + $0x7c0] sm:$0xff]  ;;  %v4115_v60 = vpack.c.bf16 %v1104_v52, %v1096_v51 }
  0xfd   : > { %v4001_v53 = vpack.c.bf16 %v657_v46, %v649_v45  ;;  %v1113_v55 = vld [vmem:[%s6161_s17 + $0x1608] sm:$0xff]  ;;  %v4003_v61 = vpack.c.bf16 %v656_v54, %v648_v49  ;;  %v664_v62 = vld [vmem:[%s6161_s17 + $0x800] sm:$0xff] }
  0xfe   : > { %3996 = vmatpush1.bf16.msra.mxu1 %v3995_v36  ;;  %v1121_v56 = vld [vmem:[%s6161_s17 + $0x1648] sm:$0xff]  ;;  %4112 = vmatpush1.bf16.msra.mxu0 %v4111_v47  ;;  %v1112_v0 = vld [vmem:[%s6161_s17 + $0x1600] sm:$0xff] }
  0xff   : > { %3998 = vmatprep.subr.bf16.mxu1 %v3997_v41  ;;  %v665_v57 = vld [vmem:[%s6161_s17 + $0x808] sm:$0xff]  ;;  %4114 = vmatprep.subr.bf16.mxu0 %v4113_v50  ;;  %v4117_v63 = vpack.c.bf16 %v1121_v56, %v1113_v55  ;;  %v1120_v1 = vld [vmem:[%s6161_s17 + $0x1640] sm:$0xff] }
 0x100   : > { %v673_v58 = vld [vmem:[%s6161_s17 + $0x848] sm:$0xff]  ;;  %v672_v3 = vld [vmem:[%s6161_s17 + $0x840] sm:$0xff]  ;;  %v4119_v9 = vpack.c.bf16 %v1120_v1, %v1112_v0 }
 0x101   : > { %v4005_v2 = vpack.c.bf16 %v673_v58, %v665_v57  ;;  %v1129_v4 = vld [vmem:[%s6161_s17 + $0x1688] sm:$0xff]  ;;  %v4007_v10 = vpack.c.bf16 %v672_v3, %v664_v62  ;;  %v680_v11 = vld [vmem:[%s6161_s17 + $0x880] sm:$0xff] }
 0x102   : > { %4000 = vmatpush1.bf16.msra.mxu1 %v3999_v48  ;;  %v1137_v5 = vld [vmem:[%s6161_s17 + $0x16c8] sm:$0xff]  ;;  %4116 = vmatpush1.bf16.msra.mxu0 %v4115_v60  ;;  %v1128_v13 = vld [vmem:[%s6161_s17 + $0x1680] sm:$0xff] }
 0x103   : > { %4002 = vmatprep.subr.bf16.mxu1 %v4001_v53  ;;  %v681_v6 = vld [vmem:[%s6161_s17 + $0x888] sm:$0xff]  ;;  %4118 = vmatprep.subr.bf16.mxu0 %v4117_v63  ;;  %v4121_v12 = vpack.c.bf16 %v1137_v5, %v1129_v4  ;;  %v1136_v14 = vld [vmem:[%s6161_s17 + $0x16c0] sm:$0xff] }
 0x104   : > { %v689_v7 = vld [vmem:[%s6161_s17 + $0x8c8] sm:$0xff]  ;;  %v688_v16 = vld [vmem:[%s6161_s17 + $0x8c0] sm:$0xff]  ;;  %v4123_v21 = vpack.c.bf16 %v1136_v14, %v1128_v13 }
 0x105   : > { %v4009_v15 = vpack.c.bf16 %v689_v7, %v681_v6  ;;  %v1145_v17 = vld [vmem:[%s6161_s17 + $0x1708] sm:$0xff]  ;;  %v4011_v22 = vpack.c.bf16 %v688_v16, %v680_v11  ;;  %v696_v23 = vld [vmem:[%s6161_s17 + $0x900] sm:$0xff] }
 0x106   : > { %4004 = vmatpush1.bf16.msra.mxu1 %v4003_v61  ;;  %v1153_v18 = vld [vmem:[%s6161_s17 + $0x1748] sm:$0xff]  ;;  %4120 = vmatpush1.bf16.msra.mxu0 %v4119_v9  ;;  %v1144_v25 = vld [vmem:[%s6161_s17 + $0x1700] sm:$0xff] }
 0x107   : > { %4006 = vmatprep.subr.bf16.mxu1 %v4005_v2  ;;  %v697_v19 = vld [vmem:[%s6161_s17 + $0x908] sm:$0xff]  ;;  %4122 = vmatprep.subr.bf16.mxu0 %v4121_v12  ;;  %v4125_v24 = vpack.c.bf16 %v1153_v18, %v1145_v17  ;;  %v1152_v26 = vld [vmem:[%s6161_s17 + $0x1740] sm:$0xff] }
 0x108   : > { %v705_v20 = vld [vmem:[%s6161_s17 + $0x948] sm:$0xff]  ;;  %v704_v28 = vld [vmem:[%s6161_s17 + $0x940] sm:$0xff]  ;;  %v4127_v35 = vpack.c.bf16 %v1152_v26, %v1144_v25 }
 0x109   : > { %1283 = vmatmul.mubr.f32.vlgmr.msra.gmra.mrb[0].mxu1 %v6307_v8  ;;  %v4013_v27 = vpack.c.bf16 %v705_v20, %v697_v19  ;;  %v1161_v29 = vld [vmem:[%s6161_s17 + $0x1788] sm:$0xff]  ;;  %v712_v34 = vld [vmem:[%s6161_s17 + $0x980] sm:$0xff]  ;;  %v4015_v36 = vpack.c.bf16 %v704_v28, %v696_v23 }
 0x10a   : > { %4008 = vmatpush1.bf16.msra.mxu1 %v4007_v10  ;;  %v1169_v30 = vld [vmem:[%s6161_s17 + $0x17c8] sm:$0xff]  ;;  %4124 = vmatpush1.bf16.msra.mxu0 %v4123_v21  ;;  %v1160_v38 = vld [vmem:[%s6161_s17 + $0x1780] sm:$0xff] }
 0x10b   : > { %4010 = vmatprep.subr.bf16.mxu1 %v4009_v15  ;;  %v713_v32 = vld [vmem:[%s6161_s17 + $0x988] sm:$0xff]  ;;  %4126 = vmatprep.subr.bf16.mxu0 %v4125_v24  ;;  %v4129_v37 = vpack.c.bf16 %v1169_v30, %v1161_v29  ;;  %v1168_v39 = vld [vmem:[%s6161_s17 + $0x17c0] sm:$0xff] }
 0x10c   : > { %v721_v33 = vld [vmem:[%s6161_s17 + $0x9c8] sm:$0xff]  ;;  %v720_v42 = vld [vmem:[%s6161_s17 + $0x9c0] sm:$0xff]  ;;  %v4131_v47 = vpack.c.bf16 %v1168_v39, %v1160_v38 }
 0x10d   : > { %v6329_v40 = vld [vmem:[#allocation2 + $0x18] sm:$0xff]  ;;  %v4017_v41 = vpack.c.bf16 %v721_v33, %v713_v32  ;;  %v4019_v48 = vpack.c.bf16 %v720_v42, %v712_v34  ;;  %v728_v49 = vld [vmem:[%s6161_s17 + $0xa00] sm:$0xff] }
 0x10e   : > { %4012 = vmatpush1.bf16.msra.mxu1 %v4011_v22  ;;  %v413_v43 = vld [vmem:[%s6161_s17 + $0x28] sm:$0xff]  ;;  %1353 = vmatprep.mubr.f32.mxu1 %v6329_v40  ;;  %v412_v51 = vld [vmem:[%s6161_s17 + $0x20] sm:$0xff] }
 0x10f   : > { %4014 = vmatprep.subr.bf16.mxu1 %v4013_v27  ;;  %v421_v44 = vld [vmem:[%s6161_s17 + $0x68] sm:$0xff]  ;;  %4128 = vmatpush1.bf16.msra.mxu0 %v4127_v35  ;;  %v420_v52 = vld [vmem:[%s6161_s17 + $0x60] sm:$0xff] }
 0x110   : > { %v729_v45 = vld [vmem:[%s6161_s17 + $0xa08] sm:$0xff]  ;;  %4130 = vmatprep.subr.bf16.mxu0 %v4129_v37  ;;  %v4325_v50 = vpack.c.bf16 %v421_v44, %v413_v43  ;;  %v736_v54 = vld [vmem:[%s6161_s17 + $0xa40] sm:$0xff]  ;;  %v4327_v60 = vpack.c.bf16 %v420_v52, %v412_v51 }
 0x111   : > { %v737_v46 = vld [vmem:[%s6161_s17 + $0xa48] sm:$0xff]  ;;  %v4023_v61 = vpack.c.bf16 %v736_v54, %v728_v49  ;;  %v744_v62 = vld [vmem:[%s6161_s17 + $0xa80] sm:$0xff] }
 0x112   : > { %4016 = vmatpush1.bf16.msra.mxu1 %v4015_v36  ;;  %v4021_v53 = vpack.c.bf16 %v737_v46, %v729_v45  ;;  %v429_v55 = vld [vmem:[%s6161_s17 + $0xa8] sm:$0xff]  ;;  %v428_v0 = vld [vmem:[%s6161_s17 + $0xa0] sm:$0xff] }
 0x113   : > { %4018 = vmatprep.subr.bf16.mxu1 %v4017_v41  ;;  %v437_v56 = vld [vmem:[%s6161_s17 + $0xe8] sm:$0xff]  ;;  %4132 = vmatpush1.bf16.msra.mxu0 %v4131_v47  ;;  %v436_v1 = vld [vmem:[%s6161_s17 + $0xe0] sm:$0xff] }
 0x114   : > { %v745_v57 = vld [vmem:[%s6161_s17 + $0xa88] sm:$0xff]  ;;  %4326 = vmatprep.subr.bf16.mxu0 %v4325_v50  ;;  %v4329_v63 = vpack.c.bf16 %v437_v56, %v429_v55  ;;  %v752_v3 = vld [vmem:[%s6161_s17 + $0xac0] sm:$0xff]  ;;  %v4331_v9 = vpack.c.bf16 %v436_v1, %v428_v0 }
 0x115   : > { %v753_v58 = vld [vmem:[%s6161_s17 + $0xac8] sm:$0xff]  ;;  %v4027_v10 = vpack.c.bf16 %v752_v3, %v744_v62  ;;  %v760_v11 = vld [vmem:[%s6161_s17 + $0xb00] sm:$0xff] }
 0x116   : > { %4020 = vmatpush1.bf16.msra.mxu1 %v4019_v48  ;;  %v4025_v2 = vpack.c.bf16 %v753_v58, %v745_v57  ;;  %v445_v4 = vld [vmem:[%s6161_s17 + $0x128] sm:$0xff]  ;;  %1425 = vmatmul.mubr.f32.vlgmr.msra.gmra.mrb[0].mxu0 %v406_v59  ;;  %v444_v13 = vld [vmem:[%s6161_s17 + $0x120] sm:$0xff] }
 0x117   : > { %4022 = vmatprep.subr.bf16.mxu1 %v4021_v53  ;;  %v453_v5 = vld [vmem:[%s6161_s17 + $0x168] sm:$0xff]  ;;  %4328 = vmatpush1.bf16.msra.mxu0 %v4327_v60  ;;  %v452_v14 = vld [vmem:[%s6161_s17 + $0x160] sm:$0xff] }
 0x118   : > { %v761_v6 = vld [vmem:[%s6161_s17 + $0xb08] sm:$0xff]  ;;  %1708 = vmatprep.mubr.f32.mxu0 %v6235_v31  ;;  %4330 = vmatprep.subr.bf16.mxu0 %v4329_v63  ;;  %v4333_v12 = vpack.c.bf16 %v453_v5, %v445_v4  ;;  %v768_v16 = vld [vmem:[%s6161_s17 + $0xb40] sm:$0xff]  ;;  %v4335_v21 = vpack.c.bf16 %v452_v14, %v444_v13 }
 0x119   : > { %v769_v7 = vld [vmem:[%s6161_s17 + $0xb48] sm:$0xff]  ;;  %v4031_v22 = vpack.c.bf16 %v768_v16, %v760_v11  ;;  %v776_v23 = vld [vmem:[%s6161_s17 + $0xb80] sm:$0xff] }
 0x11a   : > { %4024 = vmatpush1.bf16.msra.mxu1 %v4023_v61  ;;  %v4029_v15 = vpack.c.bf16 %v769_v7, %v761_v6  ;;  %v461_v17 = vld [vmem:[%s6161_s17 + $0x1a8] sm:$0xff]  ;;  %v460_v25 = vld [vmem:[%s6161_s17 + $0x1a0] sm:$0xff] }
 0x11b   : > { %4026 = vmatprep.subr.bf16.mxu1 %v4025_v2  ;;  %v469_v18 = vld [vmem:[%s6161_s17 + $0x1e8] sm:$0xff]  ;;  %4332 = vmatpush1.bf16.msra.mxu0 %v4331_v9  ;;  %v468_v26 = vld [vmem:[%s6161_s17 + $0x1e0] sm:$0xff] }
 0x11c   : > { %v777_v19 = vld [vmem:[%s6161_s17 + $0xb88] sm:$0xff]  ;;  %4334 = vmatprep.subr.bf16.mxu0 %v4333_v12  ;;  %v4337_v24 = vpack.c.bf16 %v469_v18, %v461_v17  ;;  %v784_v28 = vld [vmem:[%s6161_s17 + $0xbc0] sm:$0xff]  ;;  %v4339_v34 = vpack.c.bf16 %v468_v26, %v460_v25 }
 0x11d   : > { %v785_v20 = vld [vmem:[%s6161_s17 + $0xbc8] sm:$0xff]  ;;  %v4035_v35 = vpack.c.bf16 %v784_v28, %v776_v23  ;;  %v792_v36 = vld [vmem:[%s6161_s17 + $0xc00] sm:$0xff] }
 0x11e   : > { %4028 = vmatpush1.bf16.msra.mxu1 %v4027_v10  ;;  %v4033_v27 = vpack.c.bf16 %v785_v20, %v777_v19  ;;  %v477_v29 = vld [vmem:[%s6161_s17 + $0x228] sm:$0xff]  ;;  %v476_v38 = vld [vmem:[%s6161_s17 + $0x220] sm:$0xff] }
 0x11f   : > { %4030 = vmatprep.subr.bf16.mxu1 %v4029_v15  ;;  %v485_v30 = vld [vmem:[%s6161_s17 + $0x268] sm:$0xff]  ;;  %4336 = vmatpush1.bf16.msra.mxu0 %v4335_v21  ;;  %v484_v39 = vld [vmem:[%s6161_s17 + $0x260] sm:$0xff] }
 0x120   : > { %v793_v32 = vld [vmem:[%s6161_s17 + $0xc08] sm:$0xff]  ;;  %4338 = vmatprep.subr.bf16.mxu0 %v4337_v24  ;;  %v4341_v37 = vpack.c.bf16 %v485_v30, %v477_v29  ;;  %v800_v42 = vld [vmem:[%s6161_s17 + $0xc40] sm:$0xff]  ;;  %v4343_v47 = vpack.c.bf16 %v484_v39, %v476_v38 }
 0x121   : > { %v801_v33 = vld [vmem:[%s6161_s17 + $0xc48] sm:$0xff]  ;;  %v4039_v48 = vpack.c.bf16 %v800_v42, %v792_v36  ;;  %v808_v49 = vld [vmem:[%s6161_s17 + $0xc80] sm:$0xff] }
 0x122   : > { %4032 = vmatpush1.bf16.msra.mxu1 %v4031_v22  ;;  %v4037_v41 = vpack.c.bf16 %v801_v33, %v793_v32  ;;  %v493_v43 = vld [vmem:[%s6161_s17 + $0x2a8] sm:$0xff]  ;;  %v492_v51 = vld [vmem:[%s6161_s17 + $0x2a0] sm:$0xff] }
 0x123   : > { %4034 = vmatprep.subr.bf16.mxu1 %v4033_v27  ;;  %v501_v44 = vld [vmem:[%s6161_s17 + $0x2e8] sm:$0xff]  ;;  %4340 = vmatpush1.bf16.msra.mxu0 %v4339_v34  ;;  %v500_v52 = vld [vmem:[%s6161_s17 + $0x2e0] sm:$0xff] }
 0x124   : > { %v809_v45 = vld [vmem:[%s6161_s17 + $0xc88] sm:$0xff]  ;;  %4342 = vmatprep.subr.bf16.mxu0 %v4341_v37  ;;  %v4345_v50 = vpack.c.bf16 %v501_v44, %v493_v43  ;;  %v816_v54 = vld [vmem:[%s6161_s17 + $0xcc0] sm:$0xff]  ;;  %v4347_v59 = vpack.c.bf16 %v500_v52, %v492_v51 }
 0x125   : > { %v817_v46 = vld [vmem:[%s6161_s17 + $0xcc8] sm:$0xff]  ;;  %v4043_v60 = vpack.c.bf16 %v816_v54, %v808_v49  ;;  %v824_v61 = vld [vmem:[%s6161_s17 + $0xd00] sm:$0xff] }
 0x126   : > { %4036 = vmatpush1.bf16.msra.mxu1 %v4035_v35  ;;  %v4041_v53 = vpack.c.bf16 %v817_v46, %v809_v45  ;;  %v509_v55 = vld [vmem:[%s6161_s17 + $0x328] sm:$0xff]  ;;  %v508_v63 = vld [vmem:[%s6161_s17 + $0x320] sm:$0xff] }
 0x127   : > { %4038 = vmatprep.subr.bf16.mxu1 %v4037_v41  ;;  %v517_v56 = vld [vmem:[%s6161_s17 + $0x368] sm:$0xff]  ;;  %4344 = vmatpush1.bf16.msra.mxu0 %v4343_v47  ;;  %v516_v0 = vld [vmem:[%s6161_s17 + $0x360] sm:$0xff] }
 0x128   : > { %v825_v57 = vld [vmem:[%s6161_s17 + $0xd08] sm:$0xff]  ;;  %4346 = vmatprep.subr.bf16.mxu0 %v4345_v50  ;;  %v4349_v62 = vpack.c.bf16 %v517_v56, %v509_v55  ;;  %v832_v2 = vld [vmem:[%s6161_s17 + $0xd40] sm:$0xff]  ;;  %v4351_v7 = vpack.c.bf16 %v516_v0, %v508_v63 }
 0x129   : > { %v833_v58 = vld [vmem:[%s6161_s17 + $0xd48] sm:$0xff]  ;;  %v4047_v9 = vpack.c.bf16 %v832_v2, %v824_v61  ;;  %v840_v10 = vld [vmem:[%s6161_s17 + $0xd80] sm:$0xff] }
 0x12a   : > { %4040 = vmatpush1.bf16.msra.mxu1 %v4039_v48  ;;  %v4045_v1 = vpack.c.bf16 %v833_v58, %v825_v57  ;;  %v525_v3 = vld [vmem:[%s6161_s17 + $0x3a8] sm:$0xff]  ;;  %v524_v12 = vld [vmem:[%s6161_s17 + $0x3a0] sm:$0xff] }
 0x12b   : > { %4042 = vmatprep.subr.bf16.mxu1 %v4041_v53  ;;  %v533_v4 = vld [vmem:[%s6161_s17 + $0x3e8] sm:$0xff]  ;;  %4348 = vmatpush1.bf16.msra.mxu0 %v4347_v59  ;;  %v532_v13 = vld [vmem:[%s6161_s17 + $0x3e0] sm:$0xff] }
 0x12c   : > { %v841_v5 = vld [vmem:[%s6161_s17 + $0xd88] sm:$0xff]  ;;  %4350 = vmatprep.subr.bf16.mxu0 %v4349_v62  ;;  %v4353_v11 = vpack.c.bf16 %v533_v4, %v525_v3  ;;  %v848_v15 = vld [vmem:[%s6161_s17 + $0xdc0] sm:$0xff]  ;;  %v4355_v20 = vpack.c.bf16 %v532_v13, %v524_v12  ;;  %v411_v4 = vld [vmem:[%s6161_s17 + $0x18] sm:$0xff] }
 0x12d   : > { %v849_v6 = vld [vmem:[%s6161_s17 + $0xdc8] sm:$0xff]  ;;  %v4051_v21 = vpack.c.bf16 %v848_v15, %v840_v10  ;;  %v856_v22 = vld [vmem:[%s6161_s17 + $0xe00] sm:$0xff] }
 0x12e   : > { %4044 = vmatpush1.bf16.msra.mxu1 %v4043_v60  ;;  %v4049_v14 = vpack.c.bf16 %v849_v6, %v841_v5  ;;  %v541_v16 = vld [vmem:[%s6161_s17 + $0x428] sm:$0xff]  ;;  %v540_v24 = vld [vmem:[%s6161_s17 + $0x420] sm:$0xff]  ;;  %v419_v5 = vld [vmem:[%s6161_s17 + $0x58] sm:$0xff] }
 0x12f   : > { %4046 = vmatprep.subr.bf16.mxu1 %v4045_v1  ;;  %v549_v17 = vld [vmem:[%s6161_s17 + $0x468] sm:$0xff]  ;;  %4352 = vmatpush1.bf16.msra.mxu0 %v4351_v7  ;;  %v548_v25 = vld [vmem:[%s6161_s17 + $0x460] sm:$0xff]  ;;  %v4133_v13 = vpack.c.bf16 %v419_v5, %v411_v4  ;;  %v499_v4 = vld [vmem:[%s6161_s17 + $0x2d8] sm:$0xff] }
 0x130   : > { %v857_v18 = vld [vmem:[%s6161_s17 + $0xe08] sm:$0xff]  ;;  %4354 = vmatprep.subr.bf16.mxu0 %v4353_v11  ;;  %v4357_v23 = vpack.c.bf16 %v549_v17, %v541_v16  ;;  %v864_v27 = vld [vmem:[%s6161_s17 + $0xe40] sm:$0xff]  ;;  %v4359_v33 = vpack.c.bf16 %v548_v25, %v540_v24  ;;  %v427_v17 = vld [vmem:[%s6161_s17 + $0x98] sm:$0xff] }
 0x131   : > { %v865_v19 = vld [vmem:[%s6161_s17 + $0xe48] sm:$0xff]  ;;  %v4055_v34 = vpack.c.bf16 %v864_v27, %v856_v22  ;;  %v872_v35 = vld [vmem:[%s6161_s17 + $0xe80] sm:$0xff]  ;;  %v426_v22 = vld [vmem:[%s6161_s17 + $0x90] sm:$0xff] }
 0x132   : > { %4048 = vmatpush1.bf16.msra.mxu1 %v4047_v9  ;;  %v4053_v26 = vpack.c.bf16 %v865_v19, %v857_v18  ;;  %v557_v28 = vld [vmem:[%s6161_s17 + $0x4a8] sm:$0xff]  ;;  %v556_v37 = vld [vmem:[%s6161_s17 + $0x4a0] sm:$0xff]  ;;  %v410_v9 = vld [vmem:[%s6161_s17 + $0x10] sm:$0xff] }
 0x133   : > { %4050 = vmatprep.subr.bf16.mxu1 %v4049_v14  ;;  %v565_v29 = vld [vmem:[%s6161_s17 + $0x4e8] sm:$0xff]  ;;  %4356 = vmatpush1.bf16.msra.mxu0 %v4355_v20  ;;  %v564_v38 = vld [vmem:[%s6161_s17 + $0x4e0] sm:$0xff]  ;;  %v418_v14 = vld [vmem:[%s6161_s17 + $0x50] sm:$0xff] }
 0x134   : > { %v873_v30 = vld [vmem:[%s6161_s17 + $0xe88] sm:$0xff]  ;;  %4358 = vmatprep.subr.bf16.mxu0 %v4357_v23  ;;  %v4361_v36 = vpack.c.bf16 %v565_v29, %v557_v28  ;;  %v880_v41 = vld [vmem:[%s6161_s17 + $0xec0] sm:$0xff]  ;;  %v4363_v46 = vpack.c.bf16 %v564_v38, %v556_v37  ;;  %v435_v18 = vld [vmem:[%s6161_s17 + $0xd8] sm:$0xff] }
 0x135   : > { %v881_v32 = vld [vmem:[%s6161_s17 + $0xec8] sm:$0xff]  ;;  %v4059_v47 = vpack.c.bf16 %v880_v41, %v872_v35  ;;  %v888_v48 = vld [vmem:[%s6161_s17 + $0xf00] sm:$0xff]  ;;  %v434_v27 = vld [vmem:[%s6161_s17 + $0xd0] sm:$0xff] }
 0x136   : > { %4052 = vmatpush1.bf16.msra.mxu1 %v4051_v21  ;;  %v4057_v39 = vpack.c.bf16 %v881_v32, %v873_v30  ;;  %v573_v42 = vld [vmem:[%s6161_s17 + $0x528] sm:$0xff]  ;;  %v572_v50 = vld [vmem:[%s6161_s17 + $0x520] sm:$0xff]  ;;  %v4135_v21 = vpack.c.bf16 %v418_v14, %v410_v9  ;;  %v443_v30 = vld [vmem:[%s6161_s17 + $0x118] sm:$0xff] }
 0x137   : > { %4054 = vmatprep.subr.bf16.mxu1 %v4053_v26  ;;  %v581_v43 = vld [vmem:[%s6161_s17 + $0x568] sm:$0xff]  ;;  %4360 = vmatpush1.bf16.msra.mxu0 %v4359_v33  ;;  %v580_v51 = vld [vmem:[%s6161_s17 + $0x560] sm:$0xff]  ;;  %v4137_v26 = vpack.c.bf16 %v435_v18, %v427_v17  ;;  %v451_v32 = vld [vmem:[%s6161_s17 + $0x158] sm:$0xff] }
 0x138   : > { %v889_v44 = vld [vmem:[%s6161_s17 + $0xf08] sm:$0xff]  ;;  %4362 = vmatprep.subr.bf16.mxu0 %v4361_v36  ;;  %v4365_v49 = vpack.c.bf16 %v581_v43, %v573_v42  ;;  %v896_v53 = vld [vmem:[%s6161_s17 + $0xf40] sm:$0xff]  ;;  %v4367_v58 = vpack.c.bf16 %v580_v51, %v572_v50  ;;  %v442_v35 = vld [vmem:[%s6161_s17 + $0x110] sm:$0xff] }
 0x139   : > { %v897_v45 = vld [vmem:[%s6161_s17 + $0xf48] sm:$0xff]  ;;  %v4063_v59 = vpack.c.bf16 %v896_v53, %v888_v48  ;;  %v904_v60 = vld [vmem:[%s6161_s17 + $0xf80] sm:$0xff]  ;;  %v450_v41 = vld [vmem:[%s6161_s17 + $0x150] sm:$0xff] }
 0x13a   : > { %4056 = vmatpush1.bf16.msra.mxu1 %v4055_v34  ;;  %v4061_v52 = vpack.c.bf16 %v897_v45, %v889_v44  ;;  %v589_v54 = vld [vmem:[%s6161_s17 + $0x5a8] sm:$0xff]  ;;  %v588_v62 = vld [vmem:[%s6161_s17 + $0x5a0] sm:$0xff]  ;;  %v4139_v34 = vpack.c.bf16 %v434_v27, %v426_v22  ;;  %v459_v44 = vld [vmem:[%s6161_s17 + $0x198] sm:$0xff] }
 0x13b   : > { %4058 = vmatprep.subr.bf16.mxu1 %v4057_v39  ;;  %v597_v55 = vld [vmem:[%s6161_s17 + $0x5e8] sm:$0xff]  ;;  %4364 = vmatpush1.bf16.msra.mxu0 %v4363_v46  ;;  %v596_v63 = vld [vmem:[%s6161_s17 + $0x5e0] sm:$0xff]  ;;  %v4141_v39 = vpack.c.bf16 %v451_v32, %v443_v30  ;;  %v467_v45 = vld [vmem:[%s6161_s17 + $0x1d8] sm:$0xff] }
 0x13c   : > { %v905_v56 = vld [vmem:[%s6161_s17 + $0xf88] sm:$0xff]  ;;  %4366 = vmatprep.subr.bf16.mxu0 %v4365_v49  ;;  %v4369_v61 = vpack.c.bf16 %v597_v55, %v589_v54  ;;  %v912_v1 = vld [vmem:[%s6161_s17 + $0xfc0] sm:$0xff]  ;;  %v4371_v6 = vpack.c.bf16 %v596_v63, %v588_v62  ;;  %v458_v48 = vld [vmem:[%s6161_s17 + $0x190] sm:$0xff] }
 0x13d   : > { %v913_v57 = vld [vmem:[%s6161_s17 + $0xfc8] sm:$0xff]  ;;  %v4067_v7 = vpack.c.bf16 %v912_v1, %v904_v60  ;;  %v604_v11 = vld [vmem:[%s6161_s17 + $0x620] sm:$0xff]  ;;  %v475_v55 = vld [vmem:[%s6161_s17 + $0x218] sm:$0xff] }
 0x13e   : > { %4060 = vmatpush1.bf16.msra.mxu1 %v4059_v47  ;;  %v4065_v0 = vpack.c.bf16 %v913_v57, %v905_v56  ;;  %v605_v2 = vld [vmem:[%s6161_s17 + $0x628] sm:$0xff]  ;;  %v612_v12 = vld [vmem:[%s6161_s17 + $0x660] sm:$0xff]  ;;  %v4143_v47 = vpack.c.bf16 %v450_v41, %v442_v35  ;;  %v483_v56 = vld [vmem:[%s6161_s17 + $0x258] sm:$0xff] }
 0x13f   : > { %4062 = vmatprep.subr.bf16.mxu1 %v4061_v52  ;;  %v613_v3 = vld [vmem:[%s6161_s17 + $0x668] sm:$0xff]  ;;  %4368 = vmatpush1.bf16.msra.mxu0 %v4367_v58  ;;  %v6442_v19 = vld [vmem:[#allocation2 + $0x10] sm:$0xff]  ;;  %v4375_v20 = vpack.c.bf16 %v612_v12, %v604_v11  ;;  %v4145_v52 = vpack.c.bf16 %v467_v45, %v459_v44  ;;  %v4149_v63 = vpack.c.bf16 %v483_v56, %v475_v55  ;;  %v515_v17 = vld [vmem:[%s6161_s17 + $0x358] sm:$0xff] }
 0x140   : > { %4370 = vmatprep.subr.bf16.mxu0 %v4369_v61  ;;  %v4373_v10 = vpack.c.bf16 %v613_v3, %v605_v2  ;;  %v621_v15 = vld [vmem:[%s6161_s17 + $0x6a8] sm:$0xff]  ;;  %v620_v24 = vld [vmem:[%s6161_s17 + $0x6a0] sm:$0xff]  ;;  %v491_v3 = vld [vmem:[%s6161_s17 + $0x298] sm:$0xff] }
 0x141   : > { %v629_v16 = vld [vmem:[%s6161_s17 + $0x6e8] sm:$0xff]  ;;  %v628_v25 = vld [vmem:[%s6161_s17 + $0x6e0] sm:$0xff]  ;;  %v4153_v12 = vpack.c.bf16 %v499_v4, %v491_v3  ;;  %v522_v32 = vld [vmem:[%s6161_s17 + $0x390] sm:$0xff] }
 0x142   : > { %4064 = vmatpush1.bf16.msra.mxu1 %v4063_v59  ;;  %v4377_v23 = vpack.c.bf16 %v629_v16, %v621_v15  ;;  %v637_v28 = vld [vmem:[%s6161_s17 + $0x728] sm:$0xff]  ;;  %v4379_v33 = vpack.c.bf16 %v628_v25, %v620_v24  ;;  %v636_v37 = vld [vmem:[%s6161_s17 + $0x720] sm:$0xff]  ;;  %v474_v59 = vld [vmem:[%s6161_s17 + $0x210] sm:$0xff] }
 0x143   : > { %4066 = vmatprep.subr.bf16.mxu1 %v4065_v0  ;;  %4372 = vmatpush1.bf16.msra.mxu0 %v4371_v6  ;;  %v645_v29 = vld [vmem:[%s6161_s17 + $0x768] sm:$0xff]  ;;  %v644_v38 = vld [vmem:[%s6161_s17 + $0x760] sm:$0xff]  ;;  %v482_v0 = vld [vmem:[%s6161_s17 + $0x250] sm:$0xff] }
 0x144   : > { %4374 = vmatprep.subr.bf16.mxu0 %v4373_v10  ;;  %v4381_v36 = vpack.c.bf16 %v645_v29, %v637_v28  ;;  %v653_v42 = vld [vmem:[%s6161_s17 + $0x7a8] sm:$0xff]  ;;  %v4383_v46 = vpack.c.bf16 %v644_v38, %v636_v37  ;;  %v652_v50 = vld [vmem:[%s6161_s17 + $0x7a0] sm:$0xff]  ;;  %v4151_v6 = vpack.c.bf16 %v482_v0, %v474_v59  ;;  %v507_v16 = vld [vmem:[%s6161_s17 + $0x318] sm:$0xff] }
 0x145   : > { %v661_v43 = vld [vmem:[%s6161_s17 + $0x7e8] sm:$0xff]  ;;  %v660_v51 = vld [vmem:[%s6161_s17 + $0x7e0] sm:$0xff]  ;;  %v4157_v25 = vpack.c.bf16 %v515_v17, %v507_v16  ;;  %v523_v28 = vld [vmem:[%s6161_s17 + $0x398] sm:$0xff] }
 0x146   : > { %4068 = vmatpush1.bf16.msra.mxu1 %v4067_v7  ;;  %v4385_v49 = vpack.c.bf16 %v661_v43, %v653_v42  ;;  %v669_v53 = vld [vmem:[%s6161_s17 + $0x828] sm:$0xff]  ;;  %v4387_v57 = vpack.c.bf16 %v660_v51, %v652_v50  ;;  %v668_v61 = vld [vmem:[%s6161_s17 + $0x820] sm:$0xff]  ;;  %v490_v7 = vld [vmem:[%s6161_s17 + $0x290] sm:$0xff] }
 0x147   : > { %4134 = vmatprep.subr.bf16.mxu1 %v4133_v13  ;;  %4376 = vmatpush1.bf16.msra.mxu0 %v4375_v20  ;;  %v677_v54 = vld [vmem:[%s6161_s17 + $0x868] sm:$0xff]  ;;  %v676_v62 = vld [vmem:[%s6161_s17 + $0x860] sm:$0xff]  ;;  %v498_v13 = vld [vmem:[%s6161_s17 + $0x2d0] sm:$0xff] }
 0x148   : > { %4378 = vmatprep.subr.bf16.mxu0 %v4377_v23  ;;  %v4389_v60 = vpack.c.bf16 %v677_v54, %v669_v53  ;;  %v685_v1 = vld [vmem:[%s6161_s17 + $0x8a8] sm:$0xff]  ;;  %v4391_v5 = vpack.c.bf16 %v676_v62, %v668_v61  ;;  %v684_v10 = vld [vmem:[%s6161_s17 + $0x8a0] sm:$0xff]  ;;  %v4155_v20 = vpack.c.bf16 %v498_v13, %v490_v7  ;;  %v530_v37 = vld [vmem:[%s6161_s17 + $0x3d0] sm:$0xff] }
 0x149   : > { %1354 = vmatmul.mubr.f32.vlgmr.msra.gmra.mrb[0].mxu1 %v6442_v19  ;;  %v693_v2 = vld [vmem:[%s6161_s17 + $0x8e8] sm:$0xff]  ;;  %v692_v11 = vld [vmem:[%s6161_s17 + $0x8e0] sm:$0xff]  ;;  %v539_v41 = vld [vmem:[%s6161_s17 + $0x418] sm:$0xff]  ;;  %v4163_v44 = vpack.c.bf16 %v530_v37, %v522_v32 }
 0x14a   : > { %4136 = vmatpush1.bf16.msra.mxu1 %v4135_v21  ;;  %1495 = vmatprep.mubr.f32.mxu1 %v6235_v31  ;;  %v466_v31 = vld [vmem:[%s6161_s17 + $0x1d0] sm:$0xff]  ;;  %v4393_v9 = vpack.c.bf16 %v693_v2, %v685_v1  ;;  %v701_v14 = vld [vmem:[%s6161_s17 + $0x928] sm:$0xff]  ;;  %v4395_v18 = vpack.c.bf16 %v692_v11, %v684_v10  ;;  %v700_v23 = vld [vmem:[%s6161_s17 + $0x920] sm:$0xff] }
 0x14b   : > { %4138 = vmatprep.subr.bf16.mxu1 %v4137_v26  ;;  %4380 = vmatpush1.bf16.msra.mxu0 %v4379_v33  ;;  %v4147_v58 = vpack.c.bf16 %v466_v31, %v458_v48  ;;  %v709_v15 = vld [vmem:[%s6161_s17 + $0x968] sm:$0xff]  ;;  %v506_v21 = vld [vmem:[%s6161_s17 + $0x310] sm:$0xff]  ;;  %v708_v24 = vld [vmem:[%s6161_s17 + $0x960] sm:$0xff] }
 0x14c   : > { %4382 = vmatprep.subr.bf16.mxu0 %v4381_v36  ;;  %v4397_v22 = vpack.c.bf16 %v709_v15, %v701_v14  ;;  %v514_v26 = vld [vmem:[%s6161_s17 + $0x350] sm:$0xff]  ;;  %v725_v27 = vld [vmem:[%s6161_s17 + $0x9e8] sm:$0xff]  ;;  %v4399_v29 = vpack.c.bf16 %v708_v24, %v700_v23  ;;  %v724_v35 = vld [vmem:[%s6161_s17 + $0x9e0] sm:$0xff] }
 0x14d   : > { %v4159_v30 = vpack.c.bf16 %v514_v26, %v506_v21  ;;  %v733_v38 = vld [vmem:[%s6161_s17 + $0xa28] sm:$0xff]  ;;  %v547_v42 = vld [vmem:[%s6161_s17 + $0x458] sm:$0xff]  ;;  %v538_v45 = vld [vmem:[%s6161_s17 + $0x410] sm:$0xff] }
 0x14e   : > { %4140 = vmatpush1.bf16.msra.mxu1 %v4139_v34  ;;  %v716_v34 = vld [vmem:[%s6161_s17 + $0x9a0] sm:$0xff]  ;;  %v546_v50 = vld [vmem:[%s6161_s17 + $0x450] sm:$0xff]  ;;  %v749_v51 = vld [vmem:[%s6161_s17 + $0xaa8] sm:$0xff] }
 0x14f   : > { %4142 = vmatprep.subr.bf16.mxu1 %v4141_v39  ;;  %4384 = vmatpush1.bf16.msra.mxu0 %v4383_v46  ;;  %v741_v39 = vld [vmem:[%s6161_s17 + $0xa68] sm:$0xff]  ;;  %v4403_v43 = vpack.c.bf16 %v724_v35, %v716_v34  ;;  %v740_v48 = vld [vmem:[%s6161_s17 + $0xa60] sm:$0xff]  ;;  %v555_v31 = vld [vmem:[%s6161_s17 + $0x498] sm:$0xff]  ;;  %v4167_v55 = vpack.c.bf16 %v546_v50, %v538_v45 }
 0x150   : > { %4386 = vmatprep.subr.bf16.mxu0 %v4385_v49  ;;  %v4405_v46 = vpack.c.bf16 %v741_v39, %v733_v38  ;;  %v4165_v49 = vpack.c.bf16 %v547_v42, %v539_v41  ;;  %v563_v53 = vld [vmem:[%s6161_s17 + $0x4d8] sm:$0xff]  ;;  %v554_v56 = vld [vmem:[%s6161_s17 + $0x490] sm:$0xff]  ;;  %v756_v59 = vld [vmem:[%s6161_s17 + $0xae0] sm:$0xff] }
 0x151   : > { %v562_v61 = vld [vmem:[%s6161_s17 + $0x4d0] sm:$0xff]  ;;  %v765_v62 = vld [vmem:[%s6161_s17 + $0xb28] sm:$0xff]  ;;  %v571_v0 = vld [vmem:[%s6161_s17 + $0x518] sm:$0xff] }
 0x152   : > { %4144 = vmatpush1.bf16.msra.mxu1 %v4143_v47  ;;  %v732_v47 = vld [vmem:[%s6161_s17 + $0xa20] sm:$0xff]  ;;  %v579_v1 = vld [vmem:[%s6161_s17 + $0x558] sm:$0xff]  ;;  %v4171_v3 = vpack.c.bf16 %v562_v61, %v554_v56  ;;  %v570_v4 = vld [vmem:[%s6161_s17 + $0x510] sm:$0xff] }
 0x153   : > { %4146 = vmatprep.subr.bf16.mxu1 %v4145_v52  ;;  %4388 = vmatpush1.bf16.msra.mxu0 %v4387_v57  ;;  %v757_v52 = vld [vmem:[%s6161_s17 + $0xae8] sm:$0xff]  ;;  %v4407_v54 = vpack.c.bf16 %v740_v48, %v732_v47  ;;  %v772_v7 = vld [vmem:[%s6161_s17 + $0xb60] sm:$0xff]  ;;  %v578_v10 = vld [vmem:[%s6161_s17 + $0x550] sm:$0xff] }
 0x154   : > { %4390 = vmatprep.subr.bf16.mxu0 %v4389_v60  ;;  %v4409_v57 = vpack.c.bf16 %v757_v52, %v749_v51  ;;  %v4169_v60 = vpack.c.bf16 %v563_v53, %v555_v31  ;;  %v781_v11 = vld [vmem:[%s6161_s17 + $0xba8] sm:$0xff]  ;;  %v587_v13 = vld [vmem:[%s6161_s17 + $0x598] sm:$0xff]  ;;  %v4175_v16 = vpack.c.bf16 %v578_v10, %v570_v4  ;;  %v586_v17 = vld [vmem:[%s6161_s17 + $0x590] sm:$0xff] }
 0x155   : > { %v595_v14 = vld [vmem:[%s6161_s17 + $0x5d8] sm:$0xff]  ;;  %v788_v21 = vld [vmem:[%s6161_s17 + $0xbe0] sm:$0xff]  ;;  %v594_v23 = vld [vmem:[%s6161_s17 + $0x5d0] sm:$0xff] }
 0x156   : > { %4148 = vmatpush1.bf16.msra.mxu1 %v4147_v58  ;;  %1709 = vmatmul.mubr.f32.vlgmr.msra.gmra.mrb[2].mxu0 %v6307_v8  ;;  %v717_v8 = vld [vmem:[%s6161_s17 + $0x9a8] sm:$0xff]  ;;  %v748_v58 = vld [vmem:[%s6161_s17 + $0xaa0] sm:$0xff]  ;;  %v603_v26 = vld [vmem:[%s6161_s17 + $0x618] sm:$0xff] }
 0x157   : > { %4150 = vmatprep.subr.bf16.mxu1 %v4149_v63  ;;  %4392 = vmatpush1.bf16.msra.mxu0 %v4391_v5  ;;  %v4401_v33 = vpack.c.bf16 %v725_v27, %v717_v8  ;;  %v773_v63 = vld [vmem:[%s6161_s17 + $0xb68] sm:$0xff]  ;;  %v4411_v2 = vpack.c.bf16 %v756_v59, %v748_v58  ;;  %v611_v8 = vld [vmem:[%s6161_s17 + $0x658] sm:$0xff]  ;;  %v804_v32 = vld [vmem:[%s6161_s17 + $0xc60] sm:$0xff] }
 0x158   : > { %1779 = vmatprep.mubr.f32.mxu0 %v6329_v40  ;;  %4394 = vmatprep.subr.bf16.mxu0 %v4393_v9  ;;  %v531_v40 = vld [vmem:[%s6161_s17 + $0x3d8] sm:$0xff]  ;;  %v4413_v5 = vpack.c.bf16 %v773_v63, %v765_v62  ;;  %v4173_v9 = vpack.c.bf16 %v579_v1, %v571_v0  ;;  %v797_v24 = vld [vmem:[%s6161_s17 + $0xc28] sm:$0xff]  ;;  %v610_v34 = vld [vmem:[%s6161_s17 + $0x650] sm:$0xff] }
 0x159   : > { %v4161_v36 = vpack.c.bf16 %v531_v40, %v523_v28  ;;  %v4179_v28 = vpack.c.bf16 %v594_v23, %v586_v17  ;;  %v602_v40 = vld [vmem:[%s6161_s17 + $0x610] sm:$0xff]  ;;  %v813_v35 = vld [vmem:[%s6161_s17 + $0xca8] sm:$0xff]  ;;  %v619_v37 = vld [vmem:[%s6161_s17 + $0x698] sm:$0xff] }
 0x15a   : > { %4152 = vmatpush1.bf16.msra.mxu1 %v4151_v6  ;;  %v764_v6 = vld [vmem:[%s6161_s17 + $0xb20] sm:$0xff]  ;;  %v627_v38 = vld [vmem:[%s6161_s17 + $0x6d8] sm:$0xff]  ;;  %v4183_v41 = vpack.c.bf16 %v610_v34, %v602_v40  ;;  %v618_v42 = vld [vmem:[%s6161_s17 + $0x690] sm:$0xff] }
 0x15b   : > { %4154 = vmatprep.subr.bf16.mxu1 %v4153_v12  ;;  %4396 = vmatpush1.bf16.msra.mxu0 %v4395_v18  ;;  %v789_v12 = vld [vmem:[%s6161_s17 + $0xbe8] sm:$0xff]  ;;  %v4415_v15 = vpack.c.bf16 %v772_v7, %v764_v6  ;;  %v820_v45 = vld [vmem:[%s6161_s17 + $0xce0] sm:$0xff]  ;;  %v626_v47 = vld [vmem:[%s6161_s17 + $0x6d0] sm:$0xff] }
 0x15c   : > { %4398 = vmatprep.subr.bf16.mxu0 %v4397_v22  ;;  %v4417_v18 = vpack.c.bf16 %v789_v12, %v781_v11  ;;  %v4177_v22 = vpack.c.bf16 %v595_v14, %v587_v13  ;;  %v829_v48 = vld [vmem:[%s6161_s17 + $0xd28] sm:$0xff]  ;;  %v635_v50 = vld [vmem:[%s6161_s17 + $0x718] sm:$0xff]  ;;  %v4187_v31 = vpack.c.bf16 %v626_v47, %v618_v42  ;;  %v634_v53 = vld [vmem:[%s6161_s17 + $0x710] sm:$0xff] }
 0x15d   : > { %v643_v51 = vld [vmem:[%s6161_s17 + $0x758] sm:$0xff]  ;;  %v836_v56 = vld [vmem:[%s6161_s17 + $0xd60] sm:$0xff]  ;;  %v642_v58 = vld [vmem:[%s6161_s17 + $0x750] sm:$0xff] }
 0x15e   : > { %4156 = vmatpush1.bf16.msra.mxu1 %v4155_v20  ;;  %v780_v20 = vld [vmem:[%s6161_s17 + $0xba0] sm:$0xff]  ;;  %v845_v59 = vld [vmem:[%s6161_s17 + $0xda8] sm:$0xff]  ;;  %v651_v61 = vld [vmem:[%s6161_s17 + $0x798] sm:$0xff]  ;;  %v4191_v0 = vpack.c.bf16 %v642_v58, %v634_v53 }
 0x15f   : > { %4158 = vmatprep.subr.bf16.mxu1 %v4157_v25  ;;  %4400 = vmatpush1.bf16.msra.mxu0 %v4399_v29  ;;  %v805_v25 = vld [vmem:[%s6161_s17 + $0xc68] sm:$0xff]  ;;  %v4419_v27 = vpack.c.bf16 %v788_v21, %v780_v20  ;;  %v659_v62 = vld [vmem:[%s6161_s17 + $0x7d8] sm:$0xff]  ;;  %v650_v1 = vld [vmem:[%s6161_s17 + $0x790] sm:$0xff] }
 0x160   : > { %4402 = vmatprep.subr.bf16.mxu0 %v4401_v33  ;;  %v4421_v29 = vpack.c.bf16 %v805_v25, %v797_v24  ;;  %v4181_v33 = vpack.c.bf16 %v611_v8, %v603_v26  ;;  %v852_v4 = vld [vmem:[%s6161_s17 + $0xde0] sm:$0xff]  ;;  %v658_v6 = vld [vmem:[%s6161_s17 + $0x7d0] sm:$0xff]  ;;  %v861_v7 = vld [vmem:[%s6161_s17 + $0xe28] sm:$0xff] }
 0x161   : > { %v667_v10 = vld [vmem:[%s6161_s17 + $0x818] sm:$0xff]  ;;  %v4195_v13 = vpack.c.bf16 %v658_v6, %v650_v1  ;;  %v666_v14 = vld [vmem:[%s6161_s17 + $0x810] sm:$0xff]  ;;  %v868_v17 = vld [vmem:[%s6161_s17 + $0xe60] sm:$0xff] }
 0x162   : > { %4160 = vmatpush1.bf16.msra.mxu1 %v4159_v30  ;;  %v796_v30 = vld [vmem:[%s6161_s17 + $0xc20] sm:$0xff]  ;;  %v675_v11 = vld [vmem:[%s6161_s17 + $0x858] sm:$0xff]  ;;  %v674_v20 = vld [vmem:[%s6161_s17 + $0x850] sm:$0xff] }
 0x163   : > { %4162 = vmatprep.subr.bf16.mxu1 %v4161_v36  ;;  %4404 = vmatpush1.bf16.msra.mxu0 %v4403_v43  ;;  %v821_v36 = vld [vmem:[%s6161_s17 + $0xce8] sm:$0xff]  ;;  %v4423_v39 = vpack.c.bf16 %v804_v32, %v796_v30  ;;  %v683_v23 = vld [vmem:[%s6161_s17 + $0x898] sm:$0xff]  ;;  %v4199_v26 = vpack.c.bf16 %v674_v20, %v666_v14  ;;  %v682_v8 = vld [vmem:[%s6161_s17 + $0x890] sm:$0xff] }
 0x164   : > { %4406 = vmatprep.subr.bf16.mxu0 %v4405_v46  ;;  %v4425_v43 = vpack.c.bf16 %v821_v36, %v813_v35  ;;  %v4185_v46 = vpack.c.bf16 %v627_v38, %v619_v37  ;;  %v877_v21 = vld [vmem:[%s6161_s17 + $0xea8] sm:$0xff]  ;;  %v691_v24 = vld [vmem:[%s6161_s17 + $0x8d8] sm:$0xff]  ;;  %v884_v40 = vld [vmem:[%s6161_s17 + $0xee0] sm:$0xff] }
 0x165   : > { %v690_v30 = vld [vmem:[%s6161_s17 + $0x8d0] sm:$0xff]  ;;  %v893_v32 = vld [vmem:[%s6161_s17 + $0xf28] sm:$0xff]  ;;  %v699_v34 = vld [vmem:[%s6161_s17 + $0x918] sm:$0xff] }
 0x166   : > { %4164 = vmatpush1.bf16.msra.mxu1 %v4163_v44  ;;  %v812_v44 = vld [vmem:[%s6161_s17 + $0xca0] sm:$0xff]  ;;  %v707_v35 = vld [vmem:[%s6161_s17 + $0x958] sm:$0xff]  ;;  %v5637_v36 = vld [vmem:[#allocation2] sm:$0xff]  ;;  %v4203_v38 = vpack.c.bf16 %v690_v30, %v682_v8 }
 0x167   : > { %4166 = vmatprep.subr.bf16.mxu1 %v4165_v49  ;;  %4408 = vmatpush1.bf16.msra.mxu0 %v4407_v54  ;;  %v837_v49 = vld [vmem:[%s6161_s17 + $0xd68] sm:$0xff]  ;;  %v4427_v52 = vpack.c.bf16 %v820_v45, %v812_v44  ;;  %v892_v42 = vld [vmem:[%s6161_s17 + $0xf20] sm:$0xff]  ;;  %v4205_v44 = vpack.c.bf16 %v707_v35, %v699_v34  ;;  %v706_v45 = vld [vmem:[%s6161_s17 + $0x950] sm:$0xff] }
 0x168   : > { %4410 = vmatprep.subr.bf16.mxu0 %v4409_v57  ;;  %v4429_v54 = vpack.c.bf16 %v837_v49, %v829_v48  ;;  %v4189_v57 = vpack.c.bf16 %v643_v51, %v635_v50  ;;  %v917_v47 = vld [vmem:[%s6161_s17 + $0xfe8] sm:$0xff]  ;;  %v715_v49 = vld [vmem:[%s6161_s17 + $0x998] sm:$0xff]  ;;  %v762_v8 = vld [vmem:[%s6161_s17 + $0xb10] sm:$0xff] }
 0x169   : > { %v5638_v48 = vld [vmem:[#allocation2 + $0x18] sm:$0xff]  ;;  %v723_v50 = vld [vmem:[%s6161_s17 + $0x9d8] sm:$0xff] }
 0x16a   : > { %4168 = vmatpush1.bf16.msra.mxu1 %v4167_v55  ;;  %v828_v55 = vld [vmem:[%s6161_s17 + $0xd20] sm:$0xff]  ;;  %v925_v58 = vld [vmem:[%s6161_s17 + $0x1028] sm:$0xff]  ;;  %v787_v34 = vld [vmem:[%s6161_s17 + $0xbd8] sm:$0xff] }
 0x16b   : > { %4170 = vmatprep.subr.bf16.mxu1 %v4169_v60  ;;  %4412 = vmatpush1.bf16.msra.mxu0 %v4411_v2  ;;  %v853_v60 = vld [vmem:[%s6161_s17 + $0xde8] sm:$0xff]  ;;  %v4431_v63 = vpack.c.bf16 %v836_v56, %v828_v55  ;;  %v916_v55 = vld [vmem:[%s6161_s17 + $0xfe0] sm:$0xff]  ;;  %v4209_v56 = vpack.c.bf16 %v723_v50, %v715_v49  ;;  %v794_v50 = vld [vmem:[%s6161_s17 + $0xc10] sm:$0xff] }
 0x16c   : > { %4414 = vmatprep.subr.bf16.mxu0 %v4413_v5  ;;  %v4433_v2 = vpack.c.bf16 %v853_v60, %v845_v59  ;;  %v4193_v5 = vpack.c.bf16 %v659_v62, %v651_v61  ;;  %v933_v59 = vld [vmem:[%s6161_s17 + $0x1068] sm:$0xff]  ;;  %v731_v60 = vld [vmem:[%s6161_s17 + $0xa18] sm:$0xff] }
 0x16d   : > { %v739_v61 = vld [vmem:[%s6161_s17 + $0xa58] sm:$0xff]  ;;  %v4453_v1 = vpack.c.bf16 %v933_v59, %v925_v58  ;;  %v941_v6 = vld [vmem:[%s6161_s17 + $0x10a8] sm:$0xff] }
 0x16e   : > { %4172 = vmatpush1.bf16.msra.mxu1 %v4171_v3  ;;  %v844_v3 = vld [vmem:[%s6161_s17 + $0xda0] sm:$0xff]  ;;  %v957_v20 = vld [vmem:[%s6161_s17 + $0x1128] sm:$0xff]  ;;  %v819_v58 = vld [vmem:[%s6161_s17 + $0xcd8] sm:$0xff] }
 0x16f   : > { %4174 = vmatprep.subr.bf16.mxu1 %v4173_v9  ;;  %4416 = vmatpush1.bf16.msra.mxu0 %v4415_v15  ;;  %v869_v9 = vld [vmem:[%s6161_s17 + $0xe68] sm:$0xff]  ;;  %v4435_v12 = vpack.c.bf16 %v852_v4, %v844_v3  ;;  %v932_v3 = vld [vmem:[%s6161_s17 + $0x1060] sm:$0xff]  ;;  %v4213_v4 = vpack.c.bf16 %v739_v61, %v731_v60  ;;  %v810_v61 = vld [vmem:[%s6161_s17 + $0xc90] sm:$0xff] }
 0x170   : > { %4418 = vmatprep.subr.bf16.mxu0 %v4417_v18  ;;  %v4437_v15 = vpack.c.bf16 %v869_v9, %v861_v7  ;;  %v4197_v18 = vpack.c.bf16 %v675_v11, %v667_v10  ;;  %v949_v7 = vld [vmem:[%s6161_s17 + $0x10e8] sm:$0xff]  ;;  %v747_v9 = vld [vmem:[%s6161_s17 + $0xa98] sm:$0xff] }
 0x171   : > { %v755_v10 = vld [vmem:[%s6161_s17 + $0xad8] sm:$0xff]  ;;  %v4457_v14 = vpack.c.bf16 %v949_v7, %v941_v6  ;;  %v973_v30 = vld [vmem:[%s6161_s17 + $0x11a8] sm:$0xff] }
 0x172   : > { %4176 = vmatpush1.bf16.msra.mxu1 %v4175_v16  ;;  %v860_v16 = vld [vmem:[%s6161_s17 + $0xe20] sm:$0xff]  ;;  %v835_v6 = vld [vmem:[%s6161_s17 + $0xd58] sm:$0xff] }
 0x173   : > { %4178 = vmatprep.subr.bf16.mxu1 %v4177_v22  ;;  %4420 = vmatpush1.bf16.msra.mxu0 %v4419_v27  ;;  %v885_v22 = vld [vmem:[%s6161_s17 + $0xee8] sm:$0xff]  ;;  %v4439_v25 = vpack.c.bf16 %v868_v17, %v860_v16  ;;  %v948_v16 = vld [vmem:[%s6161_s17 + $0x10e0] sm:$0xff]  ;;  %v4217_v17 = vpack.c.bf16 %v755_v10, %v747_v9  ;;  %v826_v10 = vld [vmem:[%s6161_s17 + $0xd10] sm:$0xff] }
 0x174   : > { %4422 = vmatprep.subr.bf16.mxu0 %v4421_v29  ;;  %v4441_v27 = vpack.c.bf16 %v885_v22, %v877_v21  ;;  %v4201_v29 = vpack.c.bf16 %v691_v24, %v683_v23  ;;  %v965_v21 = vld [vmem:[%s6161_s17 + $0x1168] sm:$0xff]  ;;  %v763_v22 = vld [vmem:[%s6161_s17 + $0xb18] sm:$0xff] }
 0x175   : > { %v771_v23 = vld [vmem:[%s6161_s17 + $0xb58] sm:$0xff] }
 0x176   : > { %4180 = vmatpush1.bf16.msra.mxu1 %v4179_v28  ;;  %v876_v28 = vld [vmem:[%s6161_s17 + $0xea0] sm:$0xff] }
 0x177   : > { %4182 = vmatprep.subr.bf16.mxu1 %v4181_v33  ;;  %4424 = vmatpush1.bf16.msra.mxu0 %v4423_v39  ;;  %v901_v33 = vld [vmem:[%s6161_s17 + $0xf68] sm:$0xff]  ;;  %v4443_v37 = vpack.c.bf16 %v884_v40, %v876_v28  ;;  %v698_v39 = vld [vmem:[%s6161_s17 + $0x910] sm:$0xff]  ;;  %v956_v28 = vld [vmem:[%s6161_s17 + $0x1120] sm:$0xff] }
 0x178   : > { %4426 = vmatprep.subr.bf16.mxu0 %v4425_v43  ;;  %v900_v43 = vld [vmem:[%s6161_s17 + $0xf60] sm:$0xff] }
 0x179   : > { %v4447_v51 = vpack.c.bf16 %v900_v43, %v892_v42  ;;  %v964_v40 = vld [vmem:[%s6161_s17 + $0x1160] sm:$0xff]  ;;  %v786_v43 = vld [vmem:[%s6161_s17 + $0xbd0] sm:$0xff] }
 0x17a   : > { %4184 = vmatpush1.bf16.msra.mxu1 %v4183_v41  ;;  %v4445_v41 = vpack.c.bf16 %v901_v33, %v893_v32  ;;  %v981_v32 = vld [vmem:[%s6161_s17 + $0x11e8] sm:$0xff]  ;;  %v779_v33 = vld [vmem:[%s6161_s17 + $0xb98] sm:$0xff]  ;;  %v4463_v35 = vpack.c.bf16 %v964_v40, %v956_v28  ;;  %v850_v28 = vld [vmem:[%s6161_s17 + $0xdd0] sm:$0xff] }
 0x17b   : > { %4186 = vmatprep.subr.bf16.mxu1 %v4185_v46  ;;  %4428 = vmatpush1.bf16.msra.mxu0 %v4427_v52  ;;  %v909_v46 = vld [vmem:[%s6161_s17 + $0xfa8] sm:$0xff]  ;;  %v4207_v52 = vpack.c.bf16 %v706_v45, %v698_v39  ;;  %v972_v39 = vld [vmem:[%s6161_s17 + $0x11a0] sm:$0xff]  ;;  %v4225_v42 = vpack.c.bf16 %v787_v34, %v779_v33  ;;  %v858_v34 = vld [vmem:[%s6161_s17 + $0xe10] sm:$0xff] }
 0x17c   : > { %4430 = vmatprep.subr.bf16.mxu0 %v4429_v54  ;;  %v4449_v53 = vpack.c.bf16 %v917_v47, %v909_v46  ;;  %v908_v54 = vld [vmem:[%s6161_s17 + $0xfa0] sm:$0xff]  ;;  %v997_v45 = vld [vmem:[%s6161_s17 + $0x1268] sm:$0xff]  ;;  %v795_v46 = vld [vmem:[%s6161_s17 + $0xc18] sm:$0xff] }
 0x17d   : > { %v4451_v62 = vpack.c.bf16 %v916_v55, %v908_v54  ;;  %v803_v47 = vld [vmem:[%s6161_s17 + $0xc58] sm:$0xff]  ;;  %v802_v54 = vld [vmem:[%s6161_s17 + $0xc50] sm:$0xff]  ;;  %v1005_v55 = vld [vmem:[%s6161_s17 + $0x12a8] sm:$0xff] }
 0x17e   : > { %4188 = vmatpush1.bf16.msra.mxu1 %v4187_v31  ;;  %v714_v31 = vld [vmem:[%s6161_s17 + $0x990] sm:$0xff]  ;;  %v4231_v60 = vpack.c.bf16 %v802_v54, %v794_v50  ;;  %v1053_v40 = vld [vmem:[%s6161_s17 + $0x1428] sm:$0xff]  ;;  %v1076_v50 = vld [vmem:[%s6161_s17 + $0x14e0] sm:$0xff] }
 0x17f   : > { %4190 = vmatprep.subr.bf16.mxu1 %v4189_v57  ;;  %4432 = vmatpush1.bf16.msra.mxu0 %v4431_v63  ;;  %v722_v57 = vld [vmem:[%s6161_s17 + $0x9d0] sm:$0xff]  ;;  %v891_v54 = vld [vmem:[%s6161_s17 + $0xf18] sm:$0xff] }
 0x180   : > { %4434 = vmatprep.subr.bf16.mxu0 %v4433_v2  ;;  %v4211_v63 = vpack.c.bf16 %v722_v57, %v714_v31  ;;  %v924_v2 = vld [vmem:[%s6161_s17 + $0x1020] sm:$0xff]  ;;  %v811_v57 = vld [vmem:[%s6161_s17 + $0xc98] sm:$0xff] }
 0x181   : > { %v4455_v11 = vpack.c.bf16 %v932_v3, %v924_v2  ;;  %v996_v31 = vld [vmem:[%s6161_s17 + $0x1260] sm:$0xff]  ;;  %v818_v2 = vld [vmem:[%s6161_s17 + $0xcd0] sm:$0xff]  ;;  %v1021_v3 = vld [vmem:[%s6161_s17 + $0x1328] sm:$0xff] }
 0x182   : > { %4192 = vmatpush1.bf16.msra.mxu1 %v4191_v0  ;;  %v730_v0 = vld [vmem:[%s6161_s17 + $0xa10] sm:$0xff]  ;;  %v4235_v9 = vpack.c.bf16 %v818_v2, %v810_v61  ;;  %v1092_v61 = vld [vmem:[%s6161_s17 + $0x1560] sm:$0xff]  ;;  %v907_v2 = vld [vmem:[%s6161_s17 + $0xf98] sm:$0xff] }
 0x183   : > { %4194 = vmatprep.subr.bf16.mxu1 %v4193_v5  ;;  %4436 = vmatpush1.bf16.msra.mxu0 %v4435_v12  ;;  %v738_v5 = vld [vmem:[%s6161_s17 + $0xa50] sm:$0xff] }
 0x184   : > { %4438 = vmatprep.subr.bf16.mxu0 %v4437_v15  ;;  %v4215_v12 = vpack.c.bf16 %v738_v5, %v730_v0  ;;  %v940_v15 = vld [vmem:[%s6161_s17 + $0x10a0] sm:$0xff]  ;;  %v827_v5 = vld [vmem:[%s6161_s17 + $0xd18] sm:$0xff] }
 0x185   : > { %v4459_v24 = vpack.c.bf16 %v948_v16, %v940_v15  ;;  %v1012_v0 = vld [vmem:[%s6161_s17 + $0x12e0] sm:$0xff]  ;;  %v834_v15 = vld [vmem:[%s6161_s17 + $0xd50] sm:$0xff]  ;;  %v1037_v16 = vld [vmem:[%s6161_s17 + $0x13a8] sm:$0xff] }
 0x186   : > { %4196 = vmatpush1.bf16.msra.mxu1 %v4195_v13  ;;  %v746_v13 = vld [vmem:[%s6161_s17 + $0xa90] sm:$0xff] }
 0x187   : > { %4198 = vmatprep.subr.bf16.mxu1 %v4197_v18  ;;  %4440 = vmatpush1.bf16.msra.mxu0 %v4439_v25  ;;  %v754_v18 = vld [vmem:[%s6161_s17 + $0xad0] sm:$0xff]  ;;  %v6617_v25 = vld [vmem:[#allocation2 + $0x28] sm:$0xff] }
 0x188   : > { %4442 = vmatprep.subr.bf16.mxu0 %v4441_v27  ;;  %v4461_v27 = vpack.c.bf16 %v965_v21, %v957_v20  ;;  %v851_v20 = vld [vmem:[%s6161_s17 + $0xdd8] sm:$0xff] }
 0x189   : > { %1496 = vmatmul.mubr.f32.vlgmr.msra.gmra.mrb[2].mxu1 %v5637_v36 }
 0x18a   : > { %4200 = vmatpush1.bf16.msra.mxu1 %v4199_v26  ;;  %1566 = vmatprep.mubr.f32.mxu1 %v5638_v48  ;;  %v4219_v26 = vpack.c.bf16 %v754_v18, %v746_v13  ;;  %v1028_v13 = vld [vmem:[%s6161_s17 + $0x1360] sm:$0xff]  ;;  %v843_v18 = vld [vmem:[%s6161_s17 + $0xd98] sm:$0xff] }
 0x18b   : > { %4202 = vmatprep.subr.bf16.mxu1 %v4201_v29  ;;  %4444 = vmatpush1.bf16.msra.mxu0 %v4443_v37  ;;  %v770_v29 = vld [vmem:[%s6161_s17 + $0xb50] sm:$0xff] }
 0x18c   : > { %4446 = vmatprep.subr.bf16.mxu0 %v4445_v41  ;;  %v4223_v36 = vpack.c.bf16 %v770_v29, %v762_v8  ;;  %v778_v37 = vld [vmem:[%s6161_s17 + $0xb90] sm:$0xff]  ;;  %v980_v41 = vld [vmem:[%s6161_s17 + $0x11e0] sm:$0xff]  ;;  %v859_v29 = vld [vmem:[%s6161_s17 + $0xe18] sm:$0xff] }
 0x18d   : > { %v4467_v48 = vpack.c.bf16 %v980_v41, %v972_v39  ;;  %v4227_v49 = vpack.c.bf16 %v786_v43, %v778_v37  ;;  %v1044_v8 = vld [vmem:[%s6161_s17 + $0x13e0] sm:$0xff]  ;;  %v866_v39 = vld [vmem:[%s6161_s17 + $0xe50] sm:$0xff]  ;;  %v1069_v41 = vld [vmem:[%s6161_s17 + $0x14a8] sm:$0xff] }
 0x18e   : > { %4204 = vmatpush1.bf16.msra.mxu1 %v4203_v38  ;;  %v4465_v38 = vpack.c.bf16 %v981_v32, %v973_v30  ;;  %v867_v30 = vld [vmem:[%s6161_s17 + $0xe58] sm:$0xff]  ;;  %v1060_v37 = vld [vmem:[%s6161_s17 + $0x1460] sm:$0xff] }
 0x18f   : > { %4206 = vmatprep.subr.bf16.mxu1 %v4205_v44  ;;  %4448 = vmatpush1.bf16.msra.mxu0 %v4447_v51  ;;  %v989_v44 = vld [vmem:[%s6161_s17 + $0x1228] sm:$0xff]  ;;  %v875_v43 = vld [vmem:[%s6161_s17 + $0xe98] sm:$0xff] }
 0x190   : > { %4450 = vmatprep.subr.bf16.mxu0 %v4449_v53  ;;  %v4469_v51 = vpack.c.bf16 %v997_v45, %v989_v44  ;;  %v4229_v53 = vpack.c.bf16 %v803_v47, %v795_v46  ;;  %v883_v44 = vld [vmem:[%s6161_s17 + $0xed8] sm:$0xff]  ;;  %v4247_v46 = vpack.c.bf16 %v866_v39, %v858_v34  ;;  %v874_v47 = vld [vmem:[%s6161_s17 + $0xe90] sm:$0xff]  ;;  %v1140_v34 = vld [vmem:[%s6161_s17 + $0x16e0] sm:$0xff] }
 0x191   : > { %v955_v39 = vld [vmem:[%s6161_s17 + $0x1118] sm:$0xff] }
 0x192   : > { %4208 = vmatpush1.bf16.msra.mxu1 %v4207_v52  ;;  %v988_v52 = vld [vmem:[%s6161_s17 + $0x1220] sm:$0xff] }
 0x193   : > { %4210 = vmatprep.subr.bf16.mxu1 %v4209_v56  ;;  %4452 = vmatpush1.bf16.msra.mxu0 %v4451_v62  ;;  %v1013_v56 = vld [vmem:[%s6161_s17 + $0x12e8] sm:$0xff]  ;;  %v4471_v59 = vpack.c.bf16 %v996_v31, %v988_v52  ;;  %v882_v52 = vld [vmem:[%s6161_s17 + $0xed0] sm:$0xff] }
 0x194   : > { %4454 = vmatprep.subr.bf16.mxu0 %v4453_v1  ;;  %v4473_v62 = vpack.c.bf16 %v1013_v56, %v1005_v55  ;;  %v4233_v1 = vpack.c.bf16 %v819_v58, %v811_v57  ;;  %v1085_v31 = vld [vmem:[%s6161_s17 + $0x1528] sm:$0xff]  ;;  %v899_v55 = vld [vmem:[%s6161_s17 + $0xf58] sm:$0xff]  ;;  %v4251_v57 = vpack.c.bf16 %v882_v52, %v874_v47  ;;  %v890_v58 = vld [vmem:[%s6161_s17 + $0xf10] sm:$0xff] }
 0x195   : > { %v1148_v47 = vld [vmem:[%s6161_s17 + $0x1720] sm:$0xff]  ;;  %v1173_v52 = vld [vmem:[%s6161_s17 + $0x17e8] sm:$0xff] }
 0x196   : > { %4212 = vmatpush1.bf16.msra.mxu1 %v4211_v63  ;;  %1780 = vmatmul.mubr.f32.vlgmr.msra.gmra.mrb[2].mxu0 %v6442_v19  ;;  %v4221_v19 = vpack.c.bf16 %v771_v23, %v763_v22  ;;  %v1004_v63 = vld [vmem:[%s6161_s17 + $0x12a0] sm:$0xff]  ;;  %v4239_v22 = vpack.c.bf16 %v834_v15, %v826_v10  ;;  %v842_v23 = vld [vmem:[%s6161_s17 + $0xd90] sm:$0xff]  ;;  %v923_v15 = vld [vmem:[%s6161_s17 + $0x1018] sm:$0xff] }
 0x197   : > { %4214 = vmatprep.subr.bf16.mxu1 %v4213_v4  ;;  %4456 = vmatpush1.bf16.msra.mxu0 %v4455_v11  ;;  %v1029_v4 = vld [vmem:[%s6161_s17 + $0x1368] sm:$0xff]  ;;  %v4475_v7 = vpack.c.bf16 %v1012_v0, %v1004_v63  ;;  %v4243_v33 = vpack.c.bf16 %v850_v28, %v842_v23  ;;  %v898_v63 = vld [vmem:[%s6161_s17 + $0xf50] sm:$0xff]  ;;  %v1108_v10 = vld [vmem:[%s6161_s17 + $0x15e0] sm:$0xff] }
 0x198   : > { %1850 = vmatprep.mubr.f32.mxu0 %v6617_v25  ;;  %4458 = vmatprep.subr.bf16.mxu0 %v4457_v14  ;;  %v4477_v11 = vpack.c.bf16 %v1029_v4, %v1021_v3  ;;  %v4237_v14 = vpack.c.bf16 %v835_v6, %v827_v5  ;;  %v1101_v0 = vld [vmem:[%s6161_s17 + $0x15a8] sm:$0xff]  ;;  %v915_v3 = vld [vmem:[%s6161_s17 + $0xfd8] sm:$0xff]  ;;  %v4255_v5 = vpack.c.bf16 %v898_v63, %v890_v58  ;;  %v906_v6 = vld [vmem:[%s6161_s17 + $0xf90] sm:$0xff] }
 0x199   : > { %v1124_v23 = vld [vmem:[%s6161_s17 + $0x1660] sm:$0xff]  ;;  %v939_v28 = vld [vmem:[%s6161_s17 + $0x1098] sm:$0xff] }
 0x19a   : > { %4216 = vmatpush1.bf16.msra.mxu1 %v4215_v12  ;;  %v1020_v12 = vld [vmem:[%s6161_s17 + $0x1320] sm:$0xff]  ;;  %v987_v63 = vld [vmem:[%s6161_s17 + $0x1218] sm:$0xff] }
 0x19b   : > { %4218 = vmatprep.subr.bf16.mxu1 %v4217_v17  ;;  %4460 = vmatpush1.bf16.msra.mxu0 %v4459_v24  ;;  %v1045_v17 = vld [vmem:[%s6161_s17 + $0x13e8] sm:$0xff]  ;;  %v4479_v21 = vpack.c.bf16 %v1028_v13, %v1020_v12  ;;  %v914_v12 = vld [vmem:[%s6161_s17 + $0xfd0] sm:$0xff]  ;;  %v1164_v58 = vld [vmem:[%s6161_s17 + $0x17a0] sm:$0xff] }
 0x19c   : > { %4462 = vmatprep.subr.bf16.mxu0 %v4461_v27  ;;  %v4481_v24 = vpack.c.bf16 %v1045_v17, %v1037_v16  ;;  %v4241_v27 = vpack.c.bf16 %v851_v20, %v843_v18  ;;  %v1117_v13 = vld [vmem:[%s6161_s17 + $0x1628] sm:$0xff]  ;;  %v931_v16 = vld [vmem:[%s6161_s17 + $0x1058] sm:$0xff]  ;;  %v4259_v18 = vpack.c.bf16 %v914_v12, %v906_v6  ;;  %v922_v20 = vld [vmem:[%s6161_s17 + $0x1010] sm:$0xff] }
 0x19d   : > { %v2154_v6 = vld [vmem:[%s6169_s6 + $0x30] sm:$0xff]  ;;  %v1003_v12 = vld [vmem:[%s6161_s17 + $0x1298] sm:$0xff] }
 0x19e   : > { %4220 = vmatpush1.bf16.msra.mxu1 %v4219_v26  ;;  %v1036_v26 = vld [vmem:[%s6161_s17 + $0x13a0] sm:$0xff] }
 0x19f   : > { %4222 = vmatprep.subr.bf16.mxu1 %v4221_v19  ;;  %4464 = vmatpush1.bf16.msra.mxu0 %v4463_v35  ;;  %v1061_v19 = vld [vmem:[%s6161_s17 + $0x1468] sm:$0xff]  ;;  %v4483_v32 = vpack.c.bf16 %v1044_v8, %v1036_v26  ;;  %v930_v26 = vld [vmem:[%s6161_s17 + $0x1050] sm:$0xff] }
 0x1a0   : > { %4466 = vmatprep.subr.bf16.mxu0 %v4465_v38  ;;  %v4485_v35 = vpack.c.bf16 %v1061_v19, %v1053_v40  ;;  %v4245_v38 = vpack.c.bf16 %v867_v30, %v859_v29  ;;  %v1133_v8 = vld [vmem:[%s6161_s17 + $0x16a8] sm:$0xff]  ;;  %v947_v40 = vld [vmem:[%s6161_s17 + $0x10d8] sm:$0xff]  ;;  %v4263_v29 = vpack.c.bf16 %v930_v26, %v922_v20  ;;  %v938_v30 = vld [vmem:[%s6161_s17 + $0x1090] sm:$0xff] }
 0x1a1   : > { %v2166_v20 = vld [vmem:[%s6169_s6 + $0x90] sm:$0xff]  ;;  %v1019_v26 = vld [vmem:[%s6161_s17 + $0x1318] sm:$0xff] }
 0x1a2   : > { %4224 = vmatpush1.bf16.msra.mxu1 %v4223_v36  ;;  %v1052_v36 = vld [vmem:[%s6161_s17 + $0x1420] sm:$0xff] }
 0x1a3   : > { %4226 = vmatprep.subr.bf16.mxu1 %v4225_v42  ;;  %4468 = vmatpush1.bf16.msra.mxu0 %v4467_v48  ;;  %v1077_v42 = vld [vmem:[%s6161_s17 + $0x14e8] sm:$0xff]  ;;  %v4487_v45 = vpack.c.bf16 %v1060_v37, %v1052_v36  ;;  %v946_v36 = vld [vmem:[%s6161_s17 + $0x10d0] sm:$0xff] }
 0x1a4   : > { %4470 = vmatprep.subr.bf16.mxu0 %v4469_v51  ;;  %v4489_v48 = vpack.c.bf16 %v1077_v42, %v1069_v41  ;;  %v4249_v51 = vpack.c.bf16 %v883_v44, %v875_v43  ;;  %v1149_v37 = vld [vmem:[%s6161_s17 + $0x1728] sm:$0xff]  ;;  %v963_v41 = vld [vmem:[%s6161_s17 + $0x1158] sm:$0xff]  ;;  %v5640_v42 = vld [vmem:[#allocation2 + $0x10] sm:$0xff]  ;;  %v4267_v44 = vpack.c.bf16 %v946_v36, %v938_v30 }
 0x1a5   : > { %v2172_v30 = vld [vmem:[%s6169_s6 + $0xc0] sm:$0xff]  ;;  %v2191_v36 = vld [vmem:[%s6169_s6 + $0x158] sm:$0xff] }
 0x1a6   : > { %4228 = vmatpush1.bf16.msra.mxu1 %v4227_v49  ;;  %v1068_v49 = vld [vmem:[%s6161_s17 + $0x14a0] sm:$0xff] }
 0x1a7   : > { %4230 = vmatprep.subr.bf16.mxu1 %v4229_v53  ;;  %4472 = vmatpush1.bf16.msra.mxu0 %v4471_v59  ;;  %v1093_v53 = vld [vmem:[%s6161_s17 + $0x1568] sm:$0xff]  ;;  %v4491_v56 = vpack.c.bf16 %v1076_v50, %v1068_v49  ;;  %v4269_v49 = vpack.c.bf16 %v963_v41, %v955_v39  ;;  %v962_v50 = vld [vmem:[%s6161_s17 + $0x1150] sm:$0xff] }
 0x1a8   : > { %4474 = vmatprep.subr.bf16.mxu0 %v4473_v62  ;;  %v4493_v59 = vpack.c.bf16 %v1093_v53, %v1085_v31  ;;  %v4253_v62 = vpack.c.bf16 %v899_v55, %v891_v54  ;;  %v971_v31 = vld [vmem:[%s6161_s17 + $0x1198] sm:$0xff] }
 0x1a9   : > { %v979_v53 = vld [vmem:[%s6161_s17 + $0x11d8] sm:$0xff] }
 0x1aa   : > { %4232 = vmatpush1.bf16.msra.mxu1 %v4231_v60  ;;  %v1084_v60 = vld [vmem:[%s6161_s17 + $0x1520] sm:$0xff] }
 0x1ab   : > { %4234 = vmatprep.subr.bf16.mxu1 %v4233_v1  ;;  %4476 = vmatpush1.bf16.msra.mxu0 %v4475_v7  ;;  %v1109_v1 = vld [vmem:[%s6161_s17 + $0x15e8] sm:$0xff]  ;;  %v4495_v4 = vpack.c.bf16 %v1092_v61, %v1084_v60  ;;  %v4273_v60 = vpack.c.bf16 %v979_v53, %v971_v31  ;;  %v2149_v61 = vld [vmem:[%s6169_s6 + $0x8] sm:$0xff]  ;;  %v1050_v53 = vld [vmem:[%s6161_s17 + $0x1410] sm:$0xff] }
 0x1ac   : > { %4478 = vmatprep.subr.bf16.mxu0 %v4477_v11  ;;  %v4497_v7 = vpack.c.bf16 %v1109_v1, %v1101_v0  ;;  %v4257_v11 = vpack.c.bf16 %v915_v3, %v907_v2  ;;  %v995_v0 = vld [vmem:[%s6161_s17 + $0x1258] sm:$0xff]  ;;  %v986_v3 = vld [vmem:[%s6161_s17 + $0x1210] sm:$0xff] }
 0x1ae   : > { %4236 = vmatpush1.bf16.msra.mxu1 %v4235_v9  ;;  %v1100_v9 = vld [vmem:[%s6161_s17 + $0x15a0] sm:$0xff] }
 0x1af   : > { %4238 = vmatprep.subr.bf16.mxu1 %v4237_v14  ;;  %4480 = vmatpush1.bf16.msra.mxu0 %v4479_v21  ;;  %v1125_v14 = vld [vmem:[%s6161_s17 + $0x1668] sm:$0xff]  ;;  %v4499_v17 = vpack.c.bf16 %v1108_v10, %v1100_v9  ;;  %v994_v9 = vld [vmem:[%s6161_s17 + $0x1250] sm:$0xff]  ;;  %v2161_v10 = vld [vmem:[%s6169_s6 + $0x68] sm:$0xff] }
 0x1b0   : > { %4482 = vmatprep.subr.bf16.mxu0 %v4481_v24  ;;  %v4501_v21 = vpack.c.bf16 %v1125_v14, %v1117_v13  ;;  %v4261_v24 = vpack.c.bf16 %v931_v16, %v923_v15  ;;  %v1011_v13 = vld [vmem:[%s6161_s17 + $0x12d8] sm:$0xff]  ;;  %v4279_v15 = vpack.c.bf16 %v994_v9, %v986_v3  ;;  %v1002_v16 = vld [vmem:[%s6161_s17 + $0x1290] sm:$0xff]  ;;  %v2214_v3 = vld [vmem:[%s6169_s6 + $0x210] sm:$0xff] }
 0x1b1   : > { %v1083_v9 = vld [vmem:[%s6161_s17 + $0x1518] sm:$0xff] }
 0x1b2   : > { %4240 = vmatpush1.bf16.msra.mxu1 %v4239_v22  ;;  %v1116_v22 = vld [vmem:[%s6161_s17 + $0x1620] sm:$0xff] }
 0x1b3   : > { %4242 = vmatprep.subr.bf16.mxu1 %v4241_v27  ;;  %4484 = vmatpush1.bf16.msra.mxu0 %v4483_v32  ;;  %v1141_v27 = vld [vmem:[%s6161_s17 + $0x16e8] sm:$0xff]  ;;  %v4503_v19 = vpack.c.bf16 %v1124_v23, %v1116_v22  ;;  %v1010_v22 = vld [vmem:[%s6161_s17 + $0x12d0] sm:$0xff]  ;;  %v2173_v23 = vld [vmem:[%s6169_s6 + $0xc8] sm:$0xff] }
 0x1b4   : > { %4486 = vmatprep.subr.bf16.mxu0 %v4485_v35  ;;  %v4505_v32 = vpack.c.bf16 %v1141_v27, %v1133_v8  ;;  %v4265_v35 = vpack.c.bf16 %v947_v40, %v939_v28  ;;  %v1027_v8 = vld [vmem:[%s6161_s17 + $0x1358] sm:$0xff]  ;;  %v6749_v27 = vld [vmem:[#allocation2 + $0x20] sm:$0xff]  ;;  %v4283_v40 = vpack.c.bf16 %v1010_v22, %v1002_v16  ;;  %v2226_v16 = vld [vmem:[%s6169_s6 + $0x270] sm:$0xff] }
 0x1b6   : > { %4244 = vmatpush1.bf16.msra.mxu1 %v4243_v33  ;;  %v1132_v33 = vld [vmem:[%s6161_s17 + $0x16a0] sm:$0xff] }
 0x1b7   : > { %4246 = vmatprep.subr.bf16.mxu1 %v4245_v38  ;;  %4488 = vmatpush1.bf16.msra.mxu0 %v4487_v45  ;;  %v1157_v38 = vld [vmem:[%s6161_s17 + $0x1768] sm:$0xff]  ;;  %v4507_v43 = vpack.c.bf16 %v1140_v34, %v1132_v33  ;;  %v954_v45 = vld [vmem:[%s6161_s17 + $0x1110] sm:$0xff]  ;;  %v4285_v33 = vpack.c.bf16 %v1027_v8, %v1019_v26 }
 0x1b8   : > { %4490 = vmatprep.subr.bf16.mxu0 %v4489_v48  ;;  %v1156_v48 = vld [vmem:[%s6161_s17 + $0x1760] sm:$0xff]  ;;  %v4271_v55 = vpack.c.bf16 %v962_v50, %v954_v45  ;;  %v1026_v34 = vld [vmem:[%s6161_s17 + $0x1350] sm:$0xff]  ;;  %v1051_v50 = vld [vmem:[%s6161_s17 + $0x1418] sm:$0xff] }
 0x1b9   : > { %v4511_v54 = vpack.c.bf16 %v1156_v48, %v1148_v47  ;;  %v2190_v45 = vld [vmem:[%s6169_s6 + $0x150] sm:$0xff]  ;;  %v1042_v47 = vld [vmem:[%s6161_s17 + $0x13d0] sm:$0xff]  ;;  %v2197_v48 = vld [vmem:[%s6169_s6 + $0x188] sm:$0xff] }
 0x1ba   : > { %4248 = vmatpush1.bf16.msra.mxu1 %v4247_v46  ;;  %v4509_v46 = vpack.c.bf16 %v1157_v38, %v1149_v37  ;;  %v1035_v37 = vld [vmem:[%s6161_s17 + $0x1398] sm:$0xff] }
 0x1bb   : > { %4250 = vmatprep.subr.bf16.mxu1 %v4249_v51  ;;  %4492 = vmatpush1.bf16.msra.mxu0 %v4491_v56  ;;  %v1165_v51 = vld [vmem:[%s6161_s17 + $0x17a8] sm:$0xff]  ;;  %v970_v56 = vld [vmem:[%s6161_s17 + $0x1190] sm:$0xff]  ;;  %v1043_v38 = vld [vmem:[%s6161_s17 + $0x13d8] sm:$0xff] }
 0x1bc   : > { %4494 = vmatprep.subr.bf16.mxu0 %v4493_v59  ;;  %v1172_v59 = vld [vmem:[%s6161_s17 + $0x17e0] sm:$0xff] }
 0x1bd   : > { %v4515_v1 = vpack.c.bf16 %v1172_v59, %v1164_v58  ;;  %v1058_v58 = vld [vmem:[%s6161_s17 + $0x1450] sm:$0xff]  ;;  %v2209_v59 = vld [vmem:[%s6169_s6 + $0x1e8] sm:$0xff] }
 0x1be   : > { %4252 = vmatpush1.bf16.msra.mxu1 %v4251_v57  ;;  %v4513_v57 = vpack.c.bf16 %v1173_v52, %v1165_v51  ;;  %v1059_v51 = vld [vmem:[%s6161_s17 + $0x1458] sm:$0xff] }
 0x1bf   : > { %4254 = vmatprep.subr.bf16.mxu1 %v4253_v62  ;;  %4496 = vmatpush1.bf16.msra.mxu0 %v4495_v4  ;;  %v2155_v62 = vld [vmem:[%s6169_s6 + $0x38] sm:$0xff] }
 0x1c0   : > { %4498 = vmatprep.subr.bf16.mxu0 %v4497_v7  ;;  %v4709_v4 = vpack.c.bf16 %v2155_v62, %v2149_v61  ;;  %v4277_v7 = vpack.c.bf16 %v995_v0, %v987_v63  ;;  %v1075_v61 = vld [vmem:[%s6161_s17 + $0x14d8] sm:$0xff]  ;;  %v4295_v63 = vpack.c.bf16 %v1058_v58, %v1050_v53  ;;  %v1066_v0 = vld [vmem:[%s6161_s17 + $0x1490] sm:$0xff] }
 0x1c1   : > { %v2269_v58 = vld [vmem:[%s6169_s6 + $0x3c8] sm:$0xff] }
 0x1c2   : > { %4256 = vmatpush1.bf16.msra.mxu1 %v4255_v5  ;;  %v2148_v5 = vld [vmem:[%s6169_s6] sm:$0xff] }
 0x1c3   : > { %4258 = vmatprep.subr.bf16.mxu1 %v4257_v11  ;;  %4500 = vmatpush1.bf16.msra.mxu0 %v4499_v17  ;;  %v2167_v11 = vld [vmem:[%s6169_s6 + $0x98] sm:$0xff]  ;;  %v4711_v14 = vpack.c.bf16 %v2154_v6, %v2148_v5  ;;  %v1074_v5 = vld [vmem:[%s6161_s17 + $0x14d0] sm:$0xff]  ;;  %v2221_v6 = vld [vmem:[%s6169_s6 + $0x248] sm:$0xff] }
 0x1c4   : > { %4502 = vmatprep.subr.bf16.mxu0 %v4501_v21  ;;  %v4713_v17 = vpack.c.bf16 %v2167_v11, %v2161_v10  ;;  %v4281_v21 = vpack.c.bf16 %v1011_v13, %v1003_v12  ;;  %v1091_v10 = vld [vmem:[%s6161_s17 + $0x1558] sm:$0xff]  ;;  %v4299_v12 = vpack.c.bf16 %v1074_v5, %v1066_v0  ;;  %v1082_v13 = vld [vmem:[%s6161_s17 + $0x1510] sm:$0xff] }
 0x1c5   : > { %v2281_v5 = vld [vmem:[%s6169_s6 + $0x428] sm:$0xff] }
 0x1c6   : > { %4260 = vmatpush1.bf16.msra.mxu1 %v4259_v18  ;;  %v2160_v18 = vld [vmem:[%s6169_s6 + $0x60] sm:$0xff] }
 0x1c7   : > { %4262 = vmatprep.subr.bf16.mxu1 %v4261_v24  ;;  %4504 = vmatpush1.bf16.msra.mxu0 %v4503_v19  ;;  %v2179_v24 = vld [vmem:[%s6169_s6 + $0xf8] sm:$0xff]  ;;  %v4715_v28 = vpack.c.bf16 %v2166_v20, %v2160_v18  ;;  %v1018_v19 = vld [vmem:[%s6161_s17 + $0x1310] sm:$0xff]  ;;  %v2233_v20 = vld [vmem:[%s6169_s6 + $0x2a8] sm:$0xff] }
 0x1c8   : > { %4506 = vmatprep.subr.bf16.mxu0 %v4505_v32  ;;  %v2178_v32 = vld [vmem:[%s6169_s6 + $0xf0] sm:$0xff]  ;;  %v4287_v41 = vpack.c.bf16 %v1026_v34, %v1018_v19  ;;  %v1090_v18 = vld [vmem:[%s6161_s17 + $0x1550] sm:$0xff]  ;;  %v2245_v34 = vld [vmem:[%s6169_s6 + $0x308] sm:$0xff] }
 0x1c9   : > { %1567 = vmatmul.mubr.f32.vlgmr.msra.gmra.mrb[2].mxu1 %v5640_v42  ;;  %v4719_v39 = vpack.c.bf16 %v2178_v32, %v2172_v30  ;;  %v1034_v42 = vld [vmem:[%s6161_s17 + $0x1390] sm:$0xff]  ;;  %v2238_v30 = vld [vmem:[%s6169_s6 + $0x2d0] sm:$0xff] }
 0x1ca   : > { %4264 = vmatpush1.bf16.msra.mxu1 %v4263_v29  ;;  %1637 = vmatprep.mubr.f32.mxu1 %v6617_v25  ;;  %v978_v25 = vld [vmem:[%s6161_s17 + $0x11d0] sm:$0xff]  ;;  %v4717_v29 = vpack.c.bf16 %v2179_v24, %v2173_v23  ;;  %v4291_v31 = vpack.c.bf16 %v1042_v47, %v1034_v42  ;;  %v1099_v23 = vld [vmem:[%s6161_s17 + $0x1598] sm:$0xff] }
 0x1cb   : > { %4266 = vmatprep.subr.bf16.mxu1 %v4265_v35  ;;  %4508 = vmatpush1.bf16.msra.mxu0 %v4507_v43  ;;  %v4275_v2 = vpack.c.bf16 %v978_v25, %v970_v56  ;;  %v2185_v35 = vld [vmem:[%s6169_s6 + $0x128] sm:$0xff]  ;;  %v2202_v56 = vld [vmem:[%s6169_s6 + $0x1b0] sm:$0xff] }
 0x1cc   : > { %4510 = vmatprep.subr.bf16.mxu0 %v4509_v46  ;;  %v4721_v43 = vpack.c.bf16 %v2191_v36, %v2185_v35  ;;  %v4289_v46 = vpack.c.bf16 %v1043_v38, %v1035_v37  ;;  %v1067_v25 = vld [vmem:[%s6161_s17 + $0x1498] sm:$0xff]  ;;  %v2251_v35 = vld [vmem:[%s6169_s6 + $0x338] sm:$0xff] }
 0x1cd   : > { %v1107_v24 = vld [vmem:[%s6161_s17 + $0x15d8] sm:$0xff]  ;;  %v4741_v42 = vpack.c.bf16 %v2251_v35, %v2245_v34  ;;  %v2311_v34 = vld [vmem:[%s6169_s6 + $0x518] sm:$0xff] }
 0x1ce   : > { %4268 = vmatpush1.bf16.msra.mxu1 %v4267_v44  ;;  %v2184_v44 = vld [vmem:[%s6169_s6 + $0x120] sm:$0xff]  ;;  %v4305_v32 = vpack.c.bf16 %v1107_v24, %v1099_v23  ;;  %v1115_v36 = vld [vmem:[%s6161_s17 + $0x1618] sm:$0xff] }
 0x1cf   : > { %4270 = vmatprep.subr.bf16.mxu1 %v4269_v49  ;;  %4512 = vmatpush1.bf16.msra.mxu0 %v4511_v54  ;;  %v2203_v49 = vld [vmem:[%s6169_s6 + $0x1b8] sm:$0xff]  ;;  %v4723_v52 = vpack.c.bf16 %v2190_v45, %v2184_v44  ;;  %v1123_v37 = vld [vmem:[%s6161_s17 + $0x1658] sm:$0xff]  ;;  %v2250_v44 = vld [vmem:[%s6169_s6 + $0x330] sm:$0xff] }
 0x1d0   : > { %4514 = vmatprep.subr.bf16.mxu0 %v4513_v57  ;;  %v4725_v54 = vpack.c.bf16 %v2203_v49, %v2197_v48  ;;  %v4293_v57 = vpack.c.bf16 %v1059_v51, %v1051_v50  ;;  %v4309_v45 = vpack.c.bf16 %v1123_v37, %v1115_v36  ;;  %v2257_v47 = vld [vmem:[%s6169_s6 + $0x368] sm:$0xff]  ;;  %v2263_v48 = vld [vmem:[%s6169_s6 + $0x398] sm:$0xff] }
 0x1d1   : > { %v1131_v49 = vld [vmem:[%s6161_s17 + $0x1698] sm:$0xff]  ;;  %v4745_v53 = vpack.c.bf16 %v2263_v48, %v2257_v47  ;;  %v2323_v47 = vld [vmem:[%s6169_s6 + $0x578] sm:$0xff] }
 0x1d2   : > { %4272 = vmatpush1.bf16.msra.mxu1 %v4271_v55  ;;  %v2196_v55 = vld [vmem:[%s6169_s6 + $0x180] sm:$0xff]  ;;  %v1139_v50 = vld [vmem:[%s6161_s17 + $0x16d8] sm:$0xff] }
 0x1d3   : > { %4274 = vmatprep.subr.bf16.mxu1 %v4273_v60  ;;  %4516 = vmatpush1.bf16.msra.mxu0 %v4515_v1  ;;  %v2215_v60 = vld [vmem:[%s6169_s6 + $0x218] sm:$0xff]  ;;  %v4727_v62 = vpack.c.bf16 %v2202_v56, %v2196_v55  ;;  %v2262_v55 = vld [vmem:[%s6169_s6 + $0x390] sm:$0xff]  ;;  %v4313_v56 = vpack.c.bf16 %v1139_v50, %v1131_v49  ;;  %v423_v23 = vld [vmem:[%s6161_s17 + $0x78] sm:$0xff] }
 0x1d4   : > { %4710 = vmatprep.subr.bf16.mxu0 %v4709_v4  ;;  %v4729_v1 = vpack.c.bf16 %v2215_v60, %v2209_v59  ;;  %v4297_v4 = vpack.c.bf16 %v1075_v61, %v1067_v25  ;;  %v2275_v59 = vld [vmem:[%s6169_s6 + $0x3f8] sm:$0xff]  ;;  %v1147_v60 = vld [vmem:[%s6161_s17 + $0x1718] sm:$0xff] }
 0x1d5   : > { %v1155_v25 = vld [vmem:[%s6161_s17 + $0x1758] sm:$0xff]  ;;  %v4749_v0 = vpack.c.bf16 %v2275_v59, %v2269_v58  ;;  %v2335_v58 = vld [vmem:[%s6169_s6 + $0x5d8] sm:$0xff] }
 0x1d6   : > { %4276 = vmatpush1.bf16.msra.mxu1 %v4275_v2  ;;  %1851 = vmatmul.mubr.f32.vlgmr.msra.gmra.mrb[2].mxu0 %v6749_v27  ;;  %v2208_v2 = vld [vmem:[%s6169_s6 + $0x1e0] sm:$0xff]  ;;  %v431_v35 = vld [vmem:[%s6161_s17 + $0xb8] sm:$0xff] }
 0x1d7   : > { %4278 = vmatprep.subr.bf16.mxu1 %v4277_v7  ;;  %4712 = vmatpush1.bf16.msra.mxu0 %v4711_v14  ;;  %v2227_v7 = vld [vmem:[%s6169_s6 + $0x278] sm:$0xff]  ;;  %v4731_v11 = vpack.c.bf16 %v2214_v3, %v2208_v2  ;;  %v2274_v2 = vld [vmem:[%s6169_s6 + $0x3f0] sm:$0xff]  ;;  %v4317_v3 = vpack.c.bf16 %v1155_v25, %v1147_v60  ;;  %v439_v36 = vld [vmem:[%s6161_s17 + $0xf8] sm:$0xff]  ;;  %v1178_v25 = vlaneseq }
 0x1d8   : > { %4714 = vmatprep.subr.bf16.mxu0 %v4713_v17  ;;  %v4733_v14 = vpack.c.bf16 %v2227_v7, %v2221_v6  ;;  %v4301_v17 = vpack.c.bf16 %v1091_v10, %v1083_v9  ;;  %v2287_v6 = vld [vmem:[%s6169_s6 + $0x458] sm:$0xff]  ;;  %v1163_v7 = vld [vmem:[%s6161_s17 + $0x1798] sm:$0xff] }
 0x1d9   : > { %v1171_v9 = vld [vmem:[%s6161_s17 + $0x17d8] sm:$0xff] }
 0x1da   : > { %4280 = vmatpush1.bf16.msra.mxu1 %v4279_v15  ;;  %v2220_v15 = vld [vmem:[%s6169_s6 + $0x240] sm:$0xff]  ;;  %v447_v48 = vld [vmem:[%s6161_s17 + $0x138] sm:$0xff] }
 0x1db   : > { %4282 = vmatprep.subr.bf16.mxu1 %v4281_v21  ;;  %4716 = vmatpush1.bf16.msra.mxu0 %v4715_v28  ;;  %v2239_v21 = vld [vmem:[%s6169_s6 + $0x2d8] sm:$0xff]  ;;  %v4735_v8 = vpack.c.bf16 %v2226_v16, %v2220_v15  ;;  %v4303_v28 = vpack.c.bf16 %v1090_v18, %v1082_v13  ;;  %v4753_v13 = vpack.c.bf16 %v2287_v6, %v2281_v5  ;;  %v2286_v15 = vld [vmem:[%s6169_s6 + $0x450] sm:$0xff]  ;;  %v2293_v18 = vld [vmem:[%s6169_s6 + $0x488] sm:$0xff] }
 0x1dc   : > { %4718 = vmatprep.subr.bf16.mxu0 %v4717_v29  ;;  %v4737_v19 = vpack.c.bf16 %v2239_v21, %v2233_v20  ;;  %v2232_v29 = vld [vmem:[%s6169_s6 + $0x2a0] sm:$0xff]  ;;  %v4321_v16 = vpack.c.bf16 %v1171_v9, %v1163_v7  ;;  %v2299_v20 = vld [vmem:[%s6169_s6 + $0x4b8] sm:$0xff]  ;;  %v415_v21 = vld [vmem:[%s6161_s17 + $0x38] sm:$0xff]  ;;  %v6867_v7 = vshrl.u32 %v1178_v25, 7 }
 0x1dd   : > { %v4739_v38 = vpack.c.bf16 %v2238_v30, %v2232_v29  ;;  %v2298_v29 = vld [vmem:[%s6169_s6 + $0x4b0] sm:$0xff]  ;;  %v4517_v30 = vpack.c.bf16 %v423_v23, %v415_v21  ;;  %v455_v49 = vld [vmem:[%s6161_s17 + $0x178] sm:$0xff]  ;;  %v494_v23 = vld [vmem:[%s6161_s17 + $0x2b0] sm:$0xff] }
 0x1de   : > { %4284 = vmatpush1.bf16.msra.mxu1 %v4283_v40  ;;  %v1098_v40 = vld [vmem:[%s6161_s17 + $0x1590] sm:$0xff]  ;;  %v463_v59 = vld [vmem:[%s6161_s17 + $0x1b8] sm:$0xff] }
 0x1df   : > { %4286 = vmatprep.subr.bf16.mxu1 %v4285_v33  ;;  %4720 = vmatpush1.bf16.msra.mxu0 %v4719_v39  ;;  %v1106_v33 = vld [vmem:[%s6161_s17 + $0x15d0] sm:$0xff]  ;;  %v471_v60 = vld [vmem:[%s6161_s17 + $0x1f8] sm:$0xff] }
 0x1e0   : > { %4722 = vmatprep.subr.bf16.mxu0 %v4721_v43  ;;  %v4307_v39 = vpack.c.bf16 %v1106_v33, %v1098_v40  ;;  %v2244_v43 = vld [vmem:[%s6169_s6 + $0x300] sm:$0xff]  ;;  %v4757_v40 = vpack.c.bf16 %v2299_v20, %v2293_v18  ;;  %v2305_v33 = vld [vmem:[%s6169_s6 + $0x4e8] sm:$0xff]  ;;  %v1176_v18 = vld [vmem:[%s6167_s7] sm:$0xff]  ;;  %v1184_v20 = vsub.s32 1, %v6867_v7 }
 0x1e1   : > { %v4743_v51 = vpack.c.bf16 %v2250_v44, %v2244_v43  ;;  %v2310_v43 = vld [vmem:[%s6169_s6 + $0x510] sm:$0xff]  ;;  %v4521_v44 = vpack.c.bf16 %v439_v36, %v431_v35  ;;  %v479_v5 = vld [vmem:[%s6161_s17 + $0x238] sm:$0xff]  ;;  %v566_v25 = vld [vmem:[%s6161_s17 + $0x4f0] sm:$0xff] }
 0x1e2   : > { %4288 = vmatpush1.bf16.msra.mxu1 %v4287_v41  ;;  %v1114_v41 = vld [vmem:[%s6161_s17 + $0x1610] sm:$0xff]  ;;  %v487_v6 = vld [vmem:[%s6161_s17 + $0x278] sm:$0xff] }
 0x1e3   : > { %4290 = vmatprep.subr.bf16.mxu1 %v4289_v46  ;;  %4724 = vmatpush1.bf16.msra.mxu0 %v4723_v52  ;;  %v1122_v46 = vld [vmem:[%s6161_s17 + $0x1650] sm:$0xff]  ;;  %v527_v35 = vld [vmem:[%s6161_s17 + $0x3b8] sm:$0xff] }
 0x1e4   : > { %4726 = vmatprep.subr.bf16.mxu0 %v4725_v54  ;;  %v4311_v52 = vpack.c.bf16 %v1122_v46, %v1114_v41  ;;  %v2256_v54 = vld [vmem:[%s6169_s6 + $0x360] sm:$0xff]  ;;  %v4761_v41 = vpack.c.bf16 %v2311_v34, %v2305_v33  ;;  %v2317_v46 = vld [vmem:[%s6169_s6 + $0x548] sm:$0xff] }
 0x1e5   : > { %v4747_v61 = vpack.c.bf16 %v2262_v55, %v2256_v54  ;;  %v2322_v54 = vld [vmem:[%s6169_s6 + $0x570] sm:$0xff]  ;;  %v4525_v55 = vpack.c.bf16 %v455_v49, %v447_v48  ;;  %v518_v33 = vld [vmem:[%s6161_s17 + $0x370] sm:$0xff]  ;;  %v535_v36 = vld [vmem:[%s6161_s17 + $0x3f8] sm:$0xff] }
 0x1e6   : > { %4292 = vmatpush1.bf16.msra.mxu1 %v4291_v31  ;;  %v1130_v31 = vld [vmem:[%s6161_s17 + $0x1690] sm:$0xff]  ;;  %v551_v48 = vld [vmem:[%s6161_s17 + $0x478] sm:$0xff] }
 0x1e7   : > { %4294 = vmatprep.subr.bf16.mxu1 %v4293_v57  ;;  %4728 = vmatpush1.bf16.msra.mxu0 %v4727_v62  ;;  %v1138_v57 = vld [vmem:[%s6161_s17 + $0x16d0] sm:$0xff] }
 0x1e8   : > { %4730 = vmatprep.subr.bf16.mxu0 %v4729_v1  ;;  %v4315_v62 = vpack.c.bf16 %v1138_v57, %v1130_v31  ;;  %v2268_v1 = vld [vmem:[%s6169_s6 + $0x3c0] sm:$0xff]  ;;  %v4765_v31 = vpack.c.bf16 %v2323_v47, %v2317_v46  ;;  %v2329_v57 = vld [vmem:[%s6169_s6 + $0x5a8] sm:$0xff] }
 0x1e9   : > { %v6790_v22 = vpop.f32.mrb[0].mxu0  ;;  %v4751_v10 = vpack.c.bf16 %v2274_v2, %v2268_v1  ;;  %v2334_v1 = vld [vmem:[%s6169_s6 + $0x5d0] sm:$0xff]  ;;  %v4529_v2 = vpack.c.bf16 %v471_v60, %v463_v59  ;;  %v543_v47 = vld [vmem:[%s6161_s17 + $0x438] sm:$0xff]  ;;  %v558_v60 = vld [vmem:[%s6161_s17 + $0x4b0] sm:$0xff] }
 0x1ea   : > { %4296 = vmatpush1.bf16.msra.mxu1 %v4295_v63  ;;  %v6794_v26 = vpop.f32.mrb[1].mxu0  ;;  %v1146_v63 = vld [vmem:[%s6161_s17 + $0x1710] sm:$0xff] }
 0x1eb   : > { %4298 = vmatprep.subr.bf16.mxu1 %v4297_v4  ;;  %4732 = vmatpush1.bf16.msra.mxu0 %v4731_v11  ;;  %v1154_v4 = vld [vmem:[%s6161_s17 + $0x1750] sm:$0xff] }
 0x1ec   : > { %4734 = vmatprep.subr.bf16.mxu0 %v4733_v14  ;;  %v4319_v11 = vpack.c.bf16 %v1154_v4, %v1146_v63  ;;  %v2280_v14 = vld [vmem:[%s6169_s6 + $0x420] sm:$0xff]  ;;  %v4769_v63 = vpack.c.bf16 %v2335_v58, %v2329_v57 }
 0x1ed   : > { %v4755_v24 = vpack.c.bf16 %v2286_v15, %v2280_v14  ;;  %v470_v4 = vld [vmem:[%s6161_s17 + $0x1f0] sm:$0xff]  ;;  %v495_v14 = vld [vmem:[%s6161_s17 + $0x2b8] sm:$0xff] }
 0x1ee   : > { %4300 = vmatpush1.bf16.msra.mxu1 %v4299_v12  ;;  %v1162_v12 = vld [vmem:[%s6161_s17 + $0x1790] sm:$0xff]  ;;  %v503_v15 = vld [vmem:[%s6161_s17 + $0x2f8] sm:$0xff] }
 0x1ef   : > { %4302 = vmatprep.subr.bf16.mxu1 %v4301_v17  ;;  %4736 = vmatpush1.bf16.msra.mxu0 %v4735_v8  ;;  %v1170_v17 = vld [vmem:[%s6161_s17 + $0x17d0] sm:$0xff]  ;;  %v4537_v21 = vpack.c.bf16 %v503_v15, %v495_v14  ;;  %v607_v14 = vld [vmem:[%s6161_s17 + $0x638] sm:$0xff] }
 0x1f0   : > { %4738 = vmatprep.subr.bf16.mxu0 %v4737_v19  ;;  %v4323_v8 = vpack.c.bf16 %v1170_v17, %v1162_v12  ;;  %v2292_v19 = vld [vmem:[%s6169_s6 + $0x480] sm:$0xff]  ;;  %v615_v15 = vld [vmem:[%s6161_s17 + $0x678] sm:$0xff] }
 0x1f1   : > { %v4759_v37 = vpack.c.bf16 %v2298_v29, %v2292_v19  ;;  %v478_v12 = vld [vmem:[%s6161_s17 + $0x230] sm:$0xff]  ;;  %v1185_v19 = vrot.slane %v1176_v18, %v1184_v20 }
 0x1f2   : > { %4304 = vmatpush1.bf16.msra.mxu1 %v4303_v28  ;;  %v414_v28 = vld [vmem:[%s6161_s17 + $0x30] sm:$0xff] }
 0x1f3   : > { %4306 = vmatprep.subr.bf16.mxu1 %v4305_v32  ;;  %4740 = vmatpush1.bf16.msra.mxu0 %v4739_v38  ;;  %v422_v32 = vld [vmem:[%s6161_s17 + $0x70] sm:$0xff] }
 0x1f4   : > { %4742 = vmatprep.subr.bf16.mxu0 %v4741_v42  ;;  %v4519_v38 = vpack.c.bf16 %v422_v32, %v414_v28  ;;  %v2304_v42 = vld [vmem:[%s6169_s6 + $0x4e0] sm:$0xff]  ;;  %v519_v28 = vld [vmem:[%s6161_s17 + $0x378] sm:$0xff] }
 0x1f5   : > { %v4763_v50 = vpack.c.bf16 %v2310_v43, %v2304_v42  ;;  %v510_v32 = vld [vmem:[%s6161_s17 + $0x330] sm:$0xff]  ;;  %v4545_v43 = vpack.c.bf16 %v535_v36, %v527_v35  ;;  %v639_v35 = vld [vmem:[%s6161_s17 + $0x738] sm:$0xff]  ;;  %v2347_v36 = vld [vmem:[%s6169_s6 + $0x638] sm:$0xff] }
 0x1f6   : > { %4308 = vmatpush1.bf16.msra.mxu1 %v4307_v39  ;;  %v430_v39 = vld [vmem:[%s6161_s17 + $0xb0] sm:$0xff] }
 0x1f7   : > { %4310 = vmatprep.subr.bf16.mxu1 %v4309_v45  ;;  %4744 = vmatpush1.bf16.msra.mxu0 %v4743_v51  ;;  %v438_v45 = vld [vmem:[%s6161_s17 + $0xf0] sm:$0xff] }
 0x1f8   : > { %4746 = vmatprep.subr.bf16.mxu0 %v4745_v53  ;;  %v4523_v51 = vpack.c.bf16 %v438_v45, %v430_v39  ;;  %v2316_v53 = vld [vmem:[%s6169_s6 + $0x540] sm:$0xff] }
 0x1f9   : > { %v534_v45 = vld [vmem:[%s6161_s17 + $0x3f0] sm:$0xff] }
 0x1fa   : > { %4312 = vmatpush1.bf16.msra.mxu1 %v4311_v52  ;;  %v446_v52 = vld [vmem:[%s6161_s17 + $0x130] sm:$0xff] }
 0x1fb   : > { %4314 = vmatprep.subr.bf16.mxu1 %v4313_v56  ;;  %4748 = vmatpush1.bf16.msra.mxu0 %v4747_v61  ;;  %v454_v56 = vld [vmem:[%s6161_s17 + $0x170] sm:$0xff]  ;;  %v4767_v61 = vpack.c.bf16 %v2322_v54, %v2316_v53 }
 0x1fc   : > { %4750 = vmatprep.subr.bf16.mxu0 %v4749_v0  ;;  %v2328_v0 = vld [vmem:[%s6169_s6 + $0x5a0] sm:$0xff] }
 0x1fd   : > { %v4771_v9 = vpack.c.bf16 %v2334_v1, %v2328_v0  ;;  %v550_v53 = vld [vmem:[%s6161_s17 + $0x470] sm:$0xff] }
 0x1fe   : > { %4316 = vmatpush1.bf16.msra.mxu1 %v4315_v62  ;;  %v4527_v62 = vpack.c.bf16 %v454_v56, %v446_v52  ;;  %v4549_v52 = vpack.c.bf16 %v551_v48, %v543_v47  ;;  %v614_v20 = vld [vmem:[%s6161_s17 + $0x670] sm:$0xff] }
 0x1ff   : > { %4318 = vmatprep.subr.bf16.mxu1 %v4317_v3  ;;  %4752 = vmatpush1.bf16.msra.mxu0 %v4751_v10  ;;  %v462_v3 = vld [vmem:[%s6161_s17 + $0x1b0] sm:$0xff] }
 0x200   : > { %4754 = vmatprep.subr.bf16.mxu0 %v4753_v13  ;;  %v4531_v10 = vpack.c.bf16 %v470_v4, %v462_v3  ;;  %v486_v13 = vld [vmem:[%s6161_s17 + $0x270] sm:$0xff] }
 0x201   : > { %v4535_v17 = vpack.c.bf16 %v486_v13, %v478_v12  ;;  %v574_v4 = vld [vmem:[%s6161_s17 + $0x530] sm:$0xff] }
 0x202   : > { %4320 = vmatpush1.bf16.msra.mxu1 %v4319_v11  ;;  %v4533_v11 = vpack.c.bf16 %v487_v6, %v479_v5  ;;  %v582_v5 = vld [vmem:[%s6161_s17 + $0x570] sm:$0xff]  ;;  %v591_v6 = vld [vmem:[%s6161_s17 + $0x5b8] sm:$0xff] }
 0x203   : > { %4322 = vmatprep.subr.bf16.mxu1 %v4321_v16  ;;  %4756 = vmatpush1.bf16.msra.mxu0 %v4755_v24  ;;  %v1180_v16 = vsub.s32 0, %v6867_v7  ;;  %v502_v24 = vld [vmem:[%s6161_s17 + $0x2f0] sm:$0xff] }
 0x204   : > { %4758 = vmatprep.subr.bf16.mxu0 %v4757_v40  ;;  %v4539_v29 = vpack.c.bf16 %v502_v24, %v494_v23  ;;  %v590_v12 = vld [vmem:[%s6161_s17 + $0x5b0] sm:$0xff]  ;;  %v631_v23 = vld [vmem:[%s6161_s17 + $0x6f8] sm:$0xff] }
 0x205   : > { %v1181_v40 = vrot.slane %v1176_v18, %v1180_v16  ;;  %v598_v13 = vld [vmem:[%s6161_s17 + $0x5f0] sm:$0xff] }
 0x206   : > { %4324 = vmatpush1.bf16.msra.mxu1 %v4323_v8  ;;  %v511_v8 = vld [vmem:[%s6161_s17 + $0x338] sm:$0xff]  ;;  %v4563_v16 = vpack.c.bf16 %v598_v13, %v590_v12  ;;  %v606_v18 = vld [vmem:[%s6161_s17 + $0x630] sm:$0xff]  ;;  %v2382_v13 = vld [vmem:[%s6169_s6 + $0x750] sm:$0xff] }
 0x207   : > { %4518 = vmatprep.subr.bf16.mxu1 %v4517_v30  ;;  %4760 = vmatpush1.bf16.msra.mxu0 %v4759_v37  ;;  %v4541_v30 = vpack.c.bf16 %v519_v28, %v511_v8  ;;  %v4567_v28 = vpack.c.bf16 %v614_v20, %v606_v18  ;;  %v638_v48 = vld [vmem:[%s6161_s17 + $0x730] sm:$0xff]  ;;  %v2395_v18 = vld [vmem:[%s6169_s6 + $0x7b8] sm:$0xff] }
 0x208   : > { %4762 = vmatprep.subr.bf16.mxu0 %v4761_v41  ;;  %v4543_v41 = vpack.c.bf16 %v518_v33, %v510_v32  ;;  %v2376_v12 = vld [vmem:[%s6169_s6 + $0x720] sm:$0xff] }
 0x209   : > { %1638 = vmatmul.mubr.f32.vlgmr.msra.gmra.mrb[2].mxu1 %v6749_v27  ;;  %v5642_v27 = vld [vmem:[#allocation2 + $0x8] sm:$0xff] }
 0x20a   : > { %4520 = vmatpush1.bf16.msra.mxu1 %v4519_v38  ;;  %1921 = vmatprep.mubr.f32.mxu1 %v5642_v27 }
 0x20b   : > { %4522 = vmatprep.subr.bf16.mxu1 %v4521_v44  ;;  %4764 = vmatpush1.bf16.msra.mxu0 %v4763_v50  ;;  %v526_v44 = vld [vmem:[%s6161_s17 + $0x3b0] sm:$0xff] }
 0x20c   : > { %4766 = vmatprep.subr.bf16.mxu0 %v4765_v31  ;;  %v542_v31 = vld [vmem:[%s6161_s17 + $0x430] sm:$0xff] }
 0x20d   : > { %v4551_v58 = vpack.c.bf16 %v550_v53, %v542_v31  ;;  %v2352_v53 = vld [vmem:[%s6169_s6 + $0x660] sm:$0xff] }
 0x20e   : > { %4524 = vmatpush1.bf16.msra.mxu1 %v4523_v51  ;;  %v4547_v51 = vpack.c.bf16 %v534_v45, %v526_v44 }
 0x20f   : > { %4526 = vmatprep.subr.bf16.mxu1 %v4525_v55  ;;  %4768 = vmatpush1.bf16.msra.mxu0 %v4767_v61  ;;  %v567_v55 = vld [vmem:[%s6161_s17 + $0x4f8] sm:$0xff] }
 0x210   : > { %4770 = vmatprep.subr.bf16.mxu0 %v4769_v63  ;;  %v583_v63 = vld [vmem:[%s6161_s17 + $0x578] sm:$0xff] }
 0x212   : > { %4528 = vmatpush1.bf16.msra.mxu1 %v4527_v62  ;;  %v575_v62 = vld [vmem:[%s6161_s17 + $0x538] sm:$0xff] }
 0x213   : > { %4530 = vmatprep.subr.bf16.mxu1 %v4529_v2  ;;  %4772 = vmatpush1.bf16.msra.mxu0 %v4771_v9  ;;  %v4555_v2 = vpack.c.bf16 %v566_v25, %v558_v60  ;;  %v4557_v3 = vpack.c.bf16 %v583_v63, %v575_v62  ;;  %v599_v9 = vld [vmem:[%s6161_s17 + $0x5f8] sm:$0xff]  ;;  %v2371_v60 = vld [vmem:[%s6169_s6 + $0x6f8] sm:$0xff]  ;;  %v2364_v62 = vld [vmem:[%s6169_s6 + $0x6c0] sm:$0xff] }
 0x214   : > { %v679_v25 = vld [vmem:[%s6161_s17 + $0x878] sm:$0xff]  ;;  %v2370_v63 = vld [vmem:[%s6169_s6 + $0x6f0] sm:$0xff] }
 0x216   : > { %4532 = vmatpush1.bf16.msra.mxu1 %v4531_v10  ;;  %v4559_v10 = vpack.c.bf16 %v582_v5, %v574_v4  ;;  %v678_v5 = vld [vmem:[%s6161_s17 + $0x870] sm:$0xff] }
 0x217   : > { %4534 = vmatprep.subr.bf16.mxu1 %v4533_v11  ;;  %v4561_v11 = vpack.c.bf16 %v599_v9, %v591_v6  ;;  %v687_v6 = vld [vmem:[%s6161_s17 + $0x8b8] sm:$0xff]  ;;  %v2383_v9 = vld [vmem:[%s6169_s6 + $0x758] sm:$0xff] }
 0x21a   : > { %4536 = vmatpush1.bf16.msra.mxu1 %v4535_v17  ;;  %v4565_v17 = vpack.c.bf16 %v615_v15, %v607_v14  ;;  %v4787_v14 = vpack.c.bf16 %v2382_v13, %v2376_v12  ;;  %v2442_v12 = vld [vmem:[%s6169_s6 + $0x930] sm:$0xff]  ;;  %v767_v13 = vld [vmem:[%s6161_s17 + $0xb38] sm:$0xff] }
 0x21b   : > { %4538 = vmatprep.subr.bf16.mxu1 %v4537_v21  ;;  %v623_v21 = vld [vmem:[%s6161_s17 + $0x6b8] sm:$0xff] }
 0x21c   : > { %v1355_v34 = vpop.f32.mrb[0].mxu1  ;;  %v4569_v33 = vpack.c.bf16 %v631_v23, %v623_v21  ;;  %v694_v21 = vld [vmem:[%s6161_s17 + $0x8f0] sm:$0xff] }
 0x21d   : > { %v5477_v37 = vadd.f32 %v1355_v34, %v1181_v40  ;;  %v1357_v38 = vpop.f32.mrb[1].mxu1  ;;  %v630_v34 = vld [vmem:[%s6161_s17 + $0x6f0] sm:$0xff] }
 0x21e   : > { %v5479_v39 = vadd.f32 %v1357_v38, %v1185_v19  ;;  %4540 = vmatpush1.bf16.msra.mxu1 %v4539_v29  ;;  %v622_v19 = vld [vmem:[%s6161_s17 + $0x6b0] sm:$0xff]  ;;  %v2341_v29 = vld [vmem:[%s6169_s6 + $0x608] sm:$0xff] }
 0x21f   : > { %v6885_v42 = vadd.f32 %v5477_v37, %v6790_v22  ;;  %4542 = vmatprep.subr.bf16.mxu1 %v4541_v30  ;;  %v647_v38 = vld [vmem:[%s6161_s17 + $0x778] sm:$0xff]  ;;  %v4571_v47 = vpack.c.bf16 %v630_v34, %v622_v19  ;;  %v5643_v19 = vld [vmem:[#allocation2] sm:$0xff] }
 0x220   : > { %v5480_v46 = vadd.f32 %v5479_v39, %v6794_v26  ;;  %v559_v26 = vld [vmem:[%s6161_s17 + $0x4b8] sm:$0xff]  ;;  %v4773_v39 = vpack.c.bf16 %v2347_v36, %v2341_v29 }
 0x221   : > { %v2078_v49 = vmul.f32 %v6885_v42, %v6885_v42  ;;  %v4553_v59 = vpack.c.bf16 %v567_v55, %v559_v26  ;;  %v2070_v37 = vmul.f32 0.5, %v6885_v42  ;;  %v2401_v34 = vld [vmem:[%s6169_s6 + $0x7e8] sm:$0xff] }
 0x222   : > { %v2079_v50 = vmul.f32 %v5480_v46, %v5480_v46  ;;  %4544 = vmatpush1.bf16.msra.mxu1 %v4543_v41  ;;  %v2071_v30 = vmul.f32 0.5, %v5480_v46  ;;  %v2340_v41 = vld [vmem:[%s6169_s6 + $0x600] sm:$0xff]  ;;  %4774 = vmatprep.subr.bf16.mxu0 %v4773_v39 }
 0x223   : > { %v2086_v22 = vmul.f32 %v6885_v42, %v2078_v49  ;;  %4546 = vmatprep.subr.bf16.mxu1 %v4545_v43  ;;  %v2346_v43 = vld [vmem:[%s6169_s6 + $0x630] sm:$0xff]  ;;  %v4573_v49 = vpack.c.bf16 %v647_v38, %v639_v35  ;;  %v2407_v35 = vld [vmem:[%s6169_s6 + $0x818] sm:$0xff]  ;;  %v2400_v39 = vld [vmem:[%s6169_s6 + $0x7e0] sm:$0xff] }
 0x224   : > { %v2087_v54 = vmul.f32 %v5480_v46, %v2079_v50  ;;  %v4775_v45 = vpack.c.bf16 %v2346_v43, %v2340_v41  ;;  %v646_v50 = vld [vmem:[%s6161_s17 + $0x770] sm:$0xff]  ;;  %v4793_v38 = vpack.c.bf16 %v2407_v35, %v2401_v34  ;;  %v2406_v41 = vld [vmem:[%s6169_s6 + $0x810] sm:$0xff]  ;;  %v719_v43 = vld [vmem:[%s6161_s17 + $0x9b8] sm:$0xff] }
 0x225   : > { %v2094_v56 = vmul.f32 0.044715, %v2086_v22  ;;  %v2359_v22 = vld [vmem:[%s6169_s6 + $0x698] sm:$0xff]  ;;  %v4575_v55 = vpack.c.bf16 %v646_v50, %v638_v48 }
 0x226   : > { %v2095_v57 = vmul.f32 0.044715, %v2087_v54  ;;  %4548 = vmatpush1.bf16.msra.mxu1 %v4547_v51  ;;  %v655_v51 = vld [vmem:[%s6161_s17 + $0x7b8] sm:$0xff]  ;;  %v2358_v54 = vld [vmem:[%s6169_s6 + $0x690] sm:$0xff]  ;;  %v2419_v50 = vld [vmem:[%s6169_s6 + $0x878] sm:$0xff] }
 0x227   : > { %v2102_v27 = vadd.f32 %v6885_v42, %v2094_v56  ;;  %4550 = vmatprep.subr.bf16.mxu1 %v4549_v52  ;;  %v2353_v42 = vld [vmem:[%s6169_s6 + $0x668] sm:$0xff]  ;;  %v4779_v26 = vpack.c.bf16 %v2358_v54, %v2352_v53  ;;  %v654_v56 = vld [vmem:[%s6161_s17 + $0x7b0] sm:$0xff]  ;;  %v2418_v53 = vld [vmem:[%s6169_s6 + $0x870] sm:$0xff] }
 0x228   : > { %v2103_v61 = vadd.f32 %v5480_v46, %v2095_v57  ;;  %v663_v52 = vld [vmem:[%s6161_s17 + $0x7f8] sm:$0xff]  ;;  %v4777_v31 = vpack.c.bf16 %v2359_v22, %v2353_v42  ;;  %v718_v42 = vld [vmem:[%s6161_s17 + $0x9b0] sm:$0xff]  ;;  %v2467_v34 = vld [vmem:[%s6169_s6 + $0x9f8] sm:$0xff] }
 0x229   : > { %v2110_v0 = vmul.f32 0.7978845, %v2102_v27  ;;  %v2365_v57 = vld [vmem:[%s6169_s6 + $0x6c8] sm:$0xff]  ;;  %v662_v27 = vld [vmem:[%s6161_s17 + $0x7f0] sm:$0xff] }
 0x22a   : > { %v2111_v1 = vmul.f32 0.7978845, %v2103_v61  ;;  %4552 = vmatpush1.bf16.msra.mxu1 %v4551_v58  ;;  %v4577_v58 = vpack.c.bf16 %v663_v52, %v655_v51  ;;  %v4781_v61 = vpack.c.bf16 %v2371_v60, %v2365_v57  ;;  %v726_v22 = vld [vmem:[%s6161_s17 + $0x9f0] sm:$0xff]  ;;  %v735_v54 = vld [vmem:[%s6161_s17 + $0xa38] sm:$0xff] }
 0x22b   : > { %5621 = vtanh.f32 %v2110_v0  ;;  %4554 = vmatprep.subr.bf16.mxu1 %v4553_v59  ;;  %v671_v59 = vld [vmem:[%s6161_s17 + $0x838] sm:$0xff]  ;;  %v4783_v0 = vpack.c.bf16 %v2370_v63, %v2364_v62  ;;  %v734_v57 = vld [vmem:[%s6161_s17 + $0xa30] sm:$0xff]  ;;  %v2430_v62 = vld [vmem:[%s6169_s6 + $0x8d0] sm:$0xff] }
 0x22c   : > { %5623 = vtanh.f32 %v2111_v1  ;;  %v4579_v1 = vpack.c.bf16 %v662_v27, %v654_v56  ;;  %v4581_v4 = vpack.c.bf16 %v679_v25, %v671_v59  ;;  %v4595_v56 = vpack.c.bf16 %v726_v22, %v718_v42  ;;  %v2431_v27 = vld [vmem:[%s6169_s6 + $0x8d8] sm:$0xff]  ;;  %v742_v60 = vld [vmem:[%s6161_s17 + $0xa70] sm:$0xff]  ;;  %v751_v63 = vld [vmem:[%s6161_s17 + $0xab8] sm:$0xff] }
 0x22d   : > { %v2473_v42 = vld [vmem:[%s6169_s6 + $0xa28] sm:$0xff] }
 0x22e   : > { %4556 = vmatpush1.bf16.msra.mxu1 %v4555_v2  ;;  %v670_v2 = vld [vmem:[%s6161_s17 + $0x830] sm:$0xff] }
 0x22f   : > { %4558 = vmatprep.subr.bf16.mxu1 %v4557_v3  ;;  %v2377_v3 = vld [vmem:[%s6169_s6 + $0x728] sm:$0xff]  ;;  %v4583_v15 = vpack.c.bf16 %v678_v5, %v670_v2  ;;  %v4599_v2 = vpack.c.bf16 %v742_v60, %v734_v57  ;;  %v2443_v5 = vld [vmem:[%s6169_s6 + $0x938] sm:$0xff] }
 0x230   : > { %v2485_v57 = vld [vmem:[%s6169_s6 + $0xa88] sm:$0xff] }
 0x232   : > { %4560 = vmatpush1.bf16.msra.mxu1 %v4559_v10  ;;  %v695_v10 = vld [vmem:[%s6161_s17 + $0x8f8] sm:$0xff] }
 0x233   : > { %4562 = vmatprep.subr.bf16.mxu1 %v4561_v11  ;;  %v4785_v11 = vpack.c.bf16 %v2383_v9, %v2377_v3  ;;  %v4585_v20 = vpack.c.bf16 %v695_v10, %v687_v6  ;;  %v750_v3 = vld [vmem:[%s6161_s17 + $0xab0] sm:$0xff] }
 0x234   : > { %v758_v9 = vld [vmem:[%s6161_s17 + $0xaf0] sm:$0xff] }
 0x235   : > { %v5622_v24 = vpop.eup %5621 }
 0x236   : > { %v5624_v8 = vpop.eup %5623  ;;  %4564 = vmatpush1.bf16.msra.mxu1 %v4563_v16  ;;  %v2126_v40 = vadd.f32 1.0, %v5622_v24  ;;  %v686_v16 = vld [vmem:[%s6161_s17 + $0x8b0] sm:$0xff] }
 0x237   : > { %4566 = vmatprep.subr.bf16.mxu1 %v4565_v17  ;;  %v2127_v32 = vadd.f32 1.0, %v5624_v8  ;;  %v2389_v17 = vld [vmem:[%s6169_s6 + $0x788] sm:$0xff]  ;;  %v2388_v24 = vld [vmem:[%s6169_s6 + $0x780] sm:$0xff]  ;;  %v2394_v8 = vld [vmem:[%s6169_s6 + $0x7b0] sm:$0xff] }
 0x238   : > { %v6927_v46 = vmul.f32 %v2126_v40, %v2070_v37  ;;  %v4789_v23 = vpack.c.bf16 %v2395_v18, %v2389_v17  ;;  %v711_v40 = vld [vmem:[%s6161_s17 + $0x978] sm:$0xff]  ;;  %v4791_v29 = vpack.c.bf16 %v2394_v8, %v2388_v24  ;;  %v710_v37 = vld [vmem:[%s6161_s17 + $0x970] sm:$0xff] }
 0x239   : > { %v6925_v44 = vmul.f32 %v2127_v32, %v2071_v30  ;;  %v4587_v30 = vpack.c.bf16 %v694_v21, %v686_v16  ;;  %v702_v32 = vld [vmem:[%s6161_s17 + $0x930] sm:$0xff]  ;;  %v4603_v16 = vpack.c.bf16 %v758_v9, %v750_v3  ;;  %v2449_v18 = vld [vmem:[%s6169_s6 + $0x968] sm:$0xff] }
 0x23a   : > { %4568 = vmatpush1.bf16.msra.mxu1 %v4567_v28  ;;  %v703_v28 = vld [vmem:[%s6161_s17 + $0x938] sm:$0xff]  ;;  %v4591_v48 = vpack.c.bf16 %v710_v37, %v702_v32  ;;  %v766_v17 = vld [vmem:[%s6161_s17 + $0xb30] sm:$0xff] }
 0x23b   : > { %2980 = vmatprep.mubr.f32.mxu0 %v6925_v44  ;;  %4570 = vmatprep.subr.bf16.mxu1 %v4569_v33  ;;  %v5644_v33 = vld [vmem:[#allocation2 + $0x18] sm:$0xff]  ;;  %v4589_v36 = vpack.c.bf16 %v711_v40, %v703_v28  ;;  %v2448_v8 = vld [vmem:[%s6169_s6 + $0x960] sm:$0xff]  ;;  %v2454_v28 = vld [vmem:[%s6169_s6 + $0x990] sm:$0xff] }
 0x23c   : > { %2981 = vmatmul.mubr.f32.vlgmr.msra.gmra.mrb[4].mxu0 %v6927_v46  ;;  %v783_v40 = vld [vmem:[%s6161_s17 + $0xbb8] sm:$0xff]  ;;  %v782_v32 = vld [vmem:[%s6161_s17 + $0xbb0] sm:$0xff] }
 0x23d   : > { %4776 = vmatpush1.bf16.msra.mxu0 %v4775_v45  ;;  %v727_v45 = vld [vmem:[%s6161_s17 + $0x9f8] sm:$0xff] }
 0x23e   : > { %4572 = vmatpush1.bf16.msra.mxu1 %v4571_v47  ;;  %4778 = vmatprep.subr.bf16.mxu0 %v4777_v31  ;;  %v4795_v47 = vpack.c.bf16 %v2406_v41, %v2400_v39  ;;  %v4593_v51 = vpack.c.bf16 %v727_v45, %v719_v43  ;;  %v2412_v31 = vld [vmem:[%s6169_s6 + $0x840] sm:$0xff]  ;;  %v2466_v39 = vld [vmem:[%s6169_s6 + $0x9f0] sm:$0xff]  ;;  %v799_v41 = vld [vmem:[%s6161_s17 + $0xc38] sm:$0xff] }
 0x23f   : > { %4574 = vmatprep.subr.bf16.mxu1 %v4573_v49  ;;  %v2413_v49 = vld [vmem:[%s6169_s6 + $0x848] sm:$0xff] }
 0x240   : > { %v4797_v52 = vpack.c.bf16 %v2419_v50, %v2413_v49  ;;  %v807_v43 = vld [vmem:[%s6161_s17 + $0xc78] sm:$0xff]  ;;  %v2479_v49 = vld [vmem:[%s6169_s6 + $0xa58] sm:$0xff] }
 0x241   : > { %4780 = vmatpush1.bf16.msra.mxu0 %v4779_v26  ;;  %v743_v26 = vld [vmem:[%s6161_s17 + $0xa78] sm:$0xff]  ;;  %v4613_v50 = vpack.c.bf16 %v807_v43, %v799_v41  ;;  %v4817_v22 = vpack.c.bf16 %v2479_v49, %v2473_v42  ;;  %v878_v49 = vld [vmem:[%s6161_s17 + $0xeb0] sm:$0xff] }
 0x242   : > { %4576 = vmatpush1.bf16.msra.mxu1 %v4575_v55  ;;  %4782 = vmatprep.subr.bf16.mxu0 %v4781_v61  ;;  %v4799_v55 = vpack.c.bf16 %v2418_v53, %v2412_v31  ;;  %v4597_v59 = vpack.c.bf16 %v743_v26, %v735_v54  ;;  %v2424_v61 = vld [vmem:[%s6169_s6 + $0x8a0] sm:$0xff]  ;;  %v2478_v31 = vld [vmem:[%s6169_s6 + $0xa50] sm:$0xff]  ;;  %v815_v53 = vld [vmem:[%s6161_s17 + $0xcb8] sm:$0xff] }
 0x243   : > { %4578 = vmatprep.subr.bf16.mxu1 %v4577_v58  ;;  %v2425_v58 = vld [vmem:[%s6169_s6 + $0x8a8] sm:$0xff] }
 0x244   : > { %v4801_v25 = vpack.c.bf16 %v2431_v27, %v2425_v58  ;;  %v823_v54 = vld [vmem:[%s6161_s17 + $0xcf8] sm:$0xff]  ;;  %v2491_v58 = vld [vmem:[%s6169_s6 + $0xab8] sm:$0xff] }
 0x245   : > { %4784 = vmatpush1.bf16.msra.mxu0 %v4783_v0  ;;  %v759_v0 = vld [vmem:[%s6161_s17 + $0xaf8] sm:$0xff]  ;;  %v4617_v27 = vpack.c.bf16 %v823_v54, %v815_v53  ;;  %v4821_v60 = vpack.c.bf16 %v2491_v58, %v2485_v57  ;;  %v894_v54 = vld [vmem:[%s6161_s17 + $0xf30] sm:$0xff] }
 0x246   : > { %4580 = vmatpush1.bf16.msra.mxu1 %v4579_v1  ;;  %4786 = vmatprep.subr.bf16.mxu0 %v4785_v11  ;;  %v4803_v1 = vpack.c.bf16 %v2430_v62, %v2424_v61  ;;  %v4601_v6 = vpack.c.bf16 %v759_v0, %v751_v63  ;;  %v2436_v11 = vld [vmem:[%s6169_s6 + $0x900] sm:$0xff]  ;;  %v2490_v61 = vld [vmem:[%s6169_s6 + $0xab0] sm:$0xff]  ;;  %v831_v62 = vld [vmem:[%s6161_s17 + $0xd38] sm:$0xff] }
 0x247   : > { %4582 = vmatprep.subr.bf16.mxu1 %v4581_v4  ;;  %v2437_v4 = vld [vmem:[%s6169_s6 + $0x908] sm:$0xff] }
 0x248   : > { %v4805_v10 = vpack.c.bf16 %v2443_v5, %v2437_v4  ;;  %v839_v63 = vld [vmem:[%s6161_s17 + $0xd78] sm:$0xff]  ;;  %v2503_v4 = vld [vmem:[%s6169_s6 + $0xb18] sm:$0xff] }
 0x249   : > { %1922 = vmatmul.mubr.f32.vlgmr.msra.gmra.mrb[4].mxu1 %v5643_v19  ;;  %4788 = vmatpush1.bf16.msra.mxu0 %v4787_v14  ;;  %v775_v14 = vld [vmem:[%s6161_s17 + $0xb78] sm:$0xff]  ;;  %v4621_v5 = vpack.c.bf16 %v839_v63, %v831_v62  ;;  %v926_v63 = vld [vmem:[%s6161_s17 + $0x1030] sm:$0xff] }
 0x24a   : > { %4584 = vmatpush1.bf16.msra.mxu1 %v4583_v15  ;;  %1992 = vmatprep.mubr.f32.mxu1 %v5644_v33  ;;  %v4807_v15 = vpack.c.bf16 %v2442_v12, %v2436_v11  ;;  %v4605_v21 = vpack.c.bf16 %v775_v14, %v767_v13  ;;  %v791_v19 = vld [vmem:[%s6161_s17 + $0xbf8] sm:$0xff]  ;;  %v2502_v11 = vld [vmem:[%s6169_s6 + $0xb10] sm:$0xff] }
 0x24b   : > { %4586 = vmatprep.subr.bf16.mxu1 %v4585_v20  ;;  %4790 = vmatprep.subr.bf16.mxu0 %v4789_v23  ;;  %v2455_v20 = vld [vmem:[%s6169_s6 + $0x998] sm:$0xff]  ;;  %v774_v23 = vld [vmem:[%s6161_s17 + $0xb70] sm:$0xff]  ;;  %v2461_v33 = vld [vmem:[%s6169_s6 + $0x9c8] sm:$0xff]  ;;  %v4609_v35 = vpack.c.bf16 %v791_v19, %v783_v40 }
 0x24c   : > { %v4809_v24 = vpack.c.bf16 %v2455_v20, %v2449_v18  ;;  %v4813_v37 = vpack.c.bf16 %v2467_v34, %v2461_v33  ;;  %v2497_v3 = vld [vmem:[%s6169_s6 + $0xae8] sm:$0xff]  ;;  %v2515_v18 = vld [vmem:[%s6169_s6 + $0xb78] sm:$0xff] }
 0x24d   : > { %4792 = vmatpush1.bf16.msra.mxu0 %v4791_v29  ;;  %v4811_v29 = vpack.c.bf16 %v2454_v28, %v2448_v8  ;;  %v4825_v9 = vpack.c.bf16 %v2503_v4, %v2497_v3  ;;  %v847_v12 = vld [vmem:[%s6161_s17 + $0xdb8] sm:$0xff]  ;;  %v2514_v8 = vld [vmem:[%s6169_s6 + $0xb70] sm:$0xff]  ;;  %v2527_v33 = vld [vmem:[%s6169_s6 + $0xbd8] sm:$0xff] }
 0x24e   : > { %4588 = vmatpush1.bf16.msra.mxu1 %v4587_v30  ;;  %4794 = vmatprep.subr.bf16.mxu0 %v4793_v38  ;;  %v4607_v30 = vpack.c.bf16 %v774_v23, %v766_v17  ;;  %v2460_v38 = vld [vmem:[%s6169_s6 + $0x9c0] sm:$0xff]  ;;  %v855_v13 = vld [vmem:[%s6161_s17 + $0xdf8] sm:$0xff] }
 0x24f   : > { %4590 = vmatprep.subr.bf16.mxu1 %v4589_v36  ;;  %v790_v36 = vld [vmem:[%s6161_s17 + $0xbf0] sm:$0xff]  ;;  %v4815_v45 = vpack.c.bf16 %v2466_v39, %v2460_v38  ;;  %v2509_v17 = vld [vmem:[%s6169_s6 + $0xb48] sm:$0xff]  ;;  %v4625_v20 = vpack.c.bf16 %v855_v13, %v847_v12  ;;  %v2526_v38 = vld [vmem:[%s6169_s6 + $0xbd0] sm:$0xff] }
 0x250   : > { %v4829_v23 = vpack.c.bf16 %v2515_v18, %v2509_v17  ;;  %v863_v28 = vld [vmem:[%s6161_s17 + $0xe38] sm:$0xff] }
 0x251   : > { %4796 = vmatpush1.bf16.msra.mxu0 %v4795_v47  ;;  %v4611_v47 = vpack.c.bf16 %v790_v36, %v782_v32  ;;  %v871_v40 = vld [vmem:[%s6161_s17 + $0xe78] sm:$0xff] }
 0x252   : > { %4592 = vmatpush1.bf16.msra.mxu1 %v4591_v48  ;;  %4798 = vmatprep.subr.bf16.mxu0 %v4797_v52  ;;  %v798_v48 = vld [vmem:[%s6161_s17 + $0xc30] sm:$0xff]  ;;  %v2521_v32 = vld [vmem:[%s6169_s6 + $0xba8] sm:$0xff]  ;;  %v4629_v34 = vpack.c.bf16 %v871_v40, %v863_v28 }
 0x253   : > { %4594 = vmatprep.subr.bf16.mxu1 %v4593_v51  ;;  %v806_v51 = vld [vmem:[%s6161_s17 + $0xc70] sm:$0xff]  ;;  %v4833_v36 = vpack.c.bf16 %v2527_v33, %v2521_v32  ;;  %v879_v39 = vld [vmem:[%s6161_s17 + $0xeb8] sm:$0xff] }
 0x254   : > { %v2472_v52 = vld [vmem:[%s6169_s6 + $0xa20] sm:$0xff]  ;;  %v887_v41 = vld [vmem:[%s6161_s17 + $0xef8] sm:$0xff] }
 0x255   : > { %4800 = vmatpush1.bf16.msra.mxu0 %v4799_v55  ;;  %v4819_v26 = vpack.c.bf16 %v2478_v31, %v2472_v52  ;;  %v4615_v55 = vpack.c.bf16 %v806_v51, %v798_v48  ;;  %v2539_v48 = vld [vmem:[%s6169_s6 + $0xc38] sm:$0xff]  ;;  %v4633_v42 = vpack.c.bf16 %v887_v41, %v879_v39  ;;  %v903_v52 = vld [vmem:[%s6161_s17 + $0xf78] sm:$0xff] }
 0x256   : > { %4596 = vmatpush1.bf16.msra.mxu1 %v4595_v56  ;;  %4802 = vmatprep.subr.bf16.mxu0 %v4801_v25  ;;  %v814_v56 = vld [vmem:[%s6161_s17 + $0xcb0] sm:$0xff]  ;;  %v5646_v13 = vld [vmem:[#allocation2 + $0x28] sm:$0xff] }
 0x257   : > { %4598 = vmatprep.subr.bf16.mxu1 %v4597_v59  ;;  %v822_v59 = vld [vmem:[%s6161_s17 + $0xcf0] sm:$0xff]  ;;  %v975_v17 = vld [vmem:[%s6161_s17 + $0x11b8] sm:$0xff] }
 0x258   : > { %v2484_v25 = vld [vmem:[%s6169_s6 + $0xa80] sm:$0xff]  ;;  %v983_v18 = vld [vmem:[%s6161_s17 + $0x11f8] sm:$0xff] }
 0x259   : > { %4804 = vmatpush1.bf16.msra.mxu0 %v4803_v1  ;;  %v4823_v0 = vpack.c.bf16 %v2490_v61, %v2484_v25  ;;  %v4619_v1 = vpack.c.bf16 %v822_v59, %v814_v56  ;;  %v919_v56 = vld [vmem:[%s6161_s17 + $0xff8] sm:$0xff]  ;;  %v918_v59 = vld [vmem:[%s6161_s17 + $0xff0] sm:$0xff] }
 0x25a   : > { %4600 = vmatpush1.bf16.msra.mxu1 %v4599_v2  ;;  %4806 = vmatprep.subr.bf16.mxu0 %v4805_v10  ;;  %v830_v2 = vld [vmem:[%s6161_s17 + $0xd30] sm:$0xff]  ;;  %v935_v25 = vld [vmem:[%s6161_s17 + $0x1078] sm:$0xff] }
 0x25b   : > { %4602 = vmatprep.subr.bf16.mxu1 %v4601_v6  ;;  %v838_v6 = vld [vmem:[%s6161_s17 + $0xd70] sm:$0xff]  ;;  %v999_v28 = vld [vmem:[%s6161_s17 + $0x1278] sm:$0xff] }
 0x25c   : > { %v2496_v10 = vld [vmem:[%s6169_s6 + $0xae0] sm:$0xff]  ;;  %v1007_v32 = vld [vmem:[%s6161_s17 + $0x12b8] sm:$0xff] }
 0x25d   : > { %4808 = vmatpush1.bf16.msra.mxu0 %v4807_v15  ;;  %v4827_v14 = vpack.c.bf16 %v2502_v11, %v2496_v10  ;;  %v4623_v15 = vpack.c.bf16 %v838_v6, %v830_v2  ;;  %v951_v2 = vld [vmem:[%s6161_s17 + $0x10f8] sm:$0xff]  ;;  %v950_v6 = vld [vmem:[%s6161_s17 + $0x10f0] sm:$0xff]  ;;  %v5645_v11 = vld [vmem:[#allocation2 + $0x10] sm:$0xff] }
 0x25e   : > { %4604 = vmatpush1.bf16.msra.mxu1 %v4603_v16  ;;  %4810 = vmatprep.subr.bf16.mxu0 %v4809_v24  ;;  %v846_v16 = vld [vmem:[%s6161_s17 + $0xdb0] sm:$0xff]  ;;  %v967_v10 = vld [vmem:[%s6161_s17 + $0x1178] sm:$0xff] }
 0x25f   : > { %4606 = vmatprep.subr.bf16.mxu1 %v4605_v21  ;;  %v854_v21 = vld [vmem:[%s6161_s17 + $0xdf0] sm:$0xff]  ;;  %v1015_v33 = vld [vmem:[%s6161_s17 + $0x12f8] sm:$0xff] }
 0x260   : > { %v2508_v24 = vld [vmem:[%s6169_s6 + $0xb40] sm:$0xff]  ;;  %v1031_v39 = vld [vmem:[%s6161_s17 + $0x1378] sm:$0xff] }
 0x261   : > { %4812 = vmatpush1.bf16.msra.mxu0 %v4811_v29  ;;  %v4831_v19 = vpack.c.bf16 %v2514_v8, %v2508_v24  ;;  %v4627_v29 = vpack.c.bf16 %v854_v21, %v846_v16  ;;  %v966_v16 = vld [vmem:[%s6161_s17 + $0x1170] sm:$0xff]  ;;  %v4657_v21 = vpack.c.bf16 %v983_v18, %v975_v17  ;;  %v991_v8 = vld [vmem:[%s6161_s17 + $0x1238] sm:$0xff] }
 0x262   : > { %4608 = vmatpush1.bf16.msra.mxu1 %v4607_v30  ;;  %4814 = vmatprep.subr.bf16.mxu0 %v4813_v37  ;;  %v862_v30 = vld [vmem:[%s6161_s17 + $0xe30] sm:$0xff]  ;;  %v1135_v18 = vld [vmem:[%s6161_s17 + $0x16b8] sm:$0xff] }
 0x263   : > { %4610 = vmatprep.subr.bf16.mxu1 %v4609_v35  ;;  %v870_v35 = vld [vmem:[%s6161_s17 + $0xe70] sm:$0xff] }
 0x264   : > { %v2520_v37 = vld [vmem:[%s6169_s6 + $0xba0] sm:$0xff] }
 0x265   : > { %4816 = vmatpush1.bf16.msra.mxu0 %v4815_v45  ;;  %v4835_v43 = vpack.c.bf16 %v2526_v38, %v2520_v37  ;;  %v4631_v45 = vpack.c.bf16 %v870_v35, %v862_v30  ;;  %v982_v24 = vld [vmem:[%s6161_s17 + $0x11f0] sm:$0xff]  ;;  %v4665_v35 = vpack.c.bf16 %v1015_v33, %v1007_v32  ;;  %v1023_v38 = vld [vmem:[%s6161_s17 + $0x1338] sm:$0xff] }
 0x266   : > { %4612 = vmatpush1.bf16.msra.mxu1 %v4611_v47  ;;  %4818 = vmatprep.subr.bf16.mxu0 %v4817_v22  ;;  %v2533_v47 = vld [vmem:[%s6169_s6 + $0xc08] sm:$0xff]  ;;  %v998_v30 = vld [vmem:[%s6161_s17 + $0x1270] sm:$0xff] }
 0x267   : > { %4614 = vmatprep.subr.bf16.mxu1 %v4613_v50  ;;  %v886_v50 = vld [vmem:[%s6161_s17 + $0xef0] sm:$0xff]  ;;  %v4837_v51 = vpack.c.bf16 %v2539_v48, %v2533_v47  ;;  %v895_v22 = vld [vmem:[%s6161_s17 + $0xf38] sm:$0xff] }
 0x268   : > { %v4635_v31 = vpack.c.bf16 %v886_v50, %v878_v49  ;;  %v4637_v53 = vpack.c.bf16 %v903_v52, %v895_v22  ;;  %v1014_v37 = vld [vmem:[%s6161_s17 + $0x12f0] sm:$0xff]  ;;  %v1039_v48 = vld [vmem:[%s6161_s17 + $0x13b8] sm:$0xff] }
 0x269   : > { %4820 = vmatpush1.bf16.msra.mxu0 %v4819_v26  ;;  %v902_v26 = vld [vmem:[%s6161_s17 + $0xf70] sm:$0xff]  ;;  %v1055_v52 = vld [vmem:[%s6161_s17 + $0x1438] sm:$0xff] }
 0x26a   : > { %4616 = vmatpush1.bf16.msra.mxu1 %v4615_v55  ;;  %4822 = vmatprep.subr.bf16.mxu0 %v4821_v60  ;;  %v911_v55 = vld [vmem:[%s6161_s17 + $0xfb8] sm:$0xff]  ;;  %v4639_v57 = vpack.c.bf16 %v902_v26, %v894_v54  ;;  %v1030_v47 = vld [vmem:[%s6161_s17 + $0x1370] sm:$0xff] }
 0x26b   : > { %4618 = vmatprep.subr.bf16.mxu1 %v4617_v27  ;;  %v4641_v58 = vpack.c.bf16 %v919_v56, %v911_v55  ;;  %v910_v27 = vld [vmem:[%s6161_s17 + $0xfb0] sm:$0xff]  ;;  %v927_v60 = vld [vmem:[%s6161_s17 + $0x1038] sm:$0xff] }
 0x26c   : > { %v4643_v61 = vpack.c.bf16 %v918_v59, %v910_v27  ;;  %v4645_v62 = vpack.c.bf16 %v935_v25, %v927_v60  ;;  %v1046_v22 = vld [vmem:[%s6161_s17 + $0x13f0] sm:$0xff]  ;;  %v1071_v56 = vld [vmem:[%s6161_s17 + $0x14b8] sm:$0xff] }
 0x26d   : > { %4824 = vmatpush1.bf16.msra.mxu0 %v4823_v0  ;;  %v934_v0 = vld [vmem:[%s6161_s17 + $0x1070] sm:$0xff]  ;;  %v1087_v25 = vld [vmem:[%s6161_s17 + $0x1538] sm:$0xff] }
 0x26e   : > { %4620 = vmatpush1.bf16.msra.mxu1 %v4619_v1  ;;  %4826 = vmatprep.subr.bf16.mxu0 %v4825_v9  ;;  %v943_v1 = vld [vmem:[%s6161_s17 + $0x10b8] sm:$0xff]  ;;  %v4647_v3 = vpack.c.bf16 %v934_v0, %v926_v63  ;;  %v1054_v26 = vld [vmem:[%s6161_s17 + $0x1430] sm:$0xff] }
 0x26f   : > { %4622 = vmatprep.subr.bf16.mxu1 %v4621_v5  ;;  %v4649_v4 = vpack.c.bf16 %v951_v2, %v943_v1  ;;  %v942_v5 = vld [vmem:[%s6161_s17 + $0x10b0] sm:$0xff]  ;;  %v959_v9 = vld [vmem:[%s6161_s17 + $0x1138] sm:$0xff] }
 0x270   : > { %v4651_v12 = vpack.c.bf16 %v950_v6, %v942_v5  ;;  %v1062_v55 = vld [vmem:[%s6161_s17 + $0x1470] sm:$0xff]  ;;  %v1167_v33 = vld [vmem:[%s6161_s17 + $0x17b8] sm:$0xff] }
 0x271   : > { %4828 = vmatpush1.bf16.msra.mxu0 %v4827_v14  ;;  %v4653_v14 = vpack.c.bf16 %v967_v10, %v959_v9  ;;  %v1070_v59 = vld [vmem:[%s6161_s17 + $0x14b0] sm:$0xff] }
 0x272   : > { %4624 = vmatpush1.bf16.msra.mxu1 %v4623_v15  ;;  %4830 = vmatprep.subr.bf16.mxu0 %v4829_v23  ;;  %v958_v15 = vld [vmem:[%s6161_s17 + $0x1130] sm:$0xff] }
 0x273   : > { %4626 = vmatprep.subr.bf16.mxu1 %v4625_v20  ;;  %v4655_v20 = vpack.c.bf16 %v966_v16, %v958_v15  ;;  %v974_v23 = vld [vmem:[%s6161_s17 + $0x11b0] sm:$0xff] }
 0x274   : > { %v4659_v40 = vpack.c.bf16 %v982_v24, %v974_v23  ;;  %v1078_v60 = vld [vmem:[%s6161_s17 + $0x14f0] sm:$0xff] }
 0x275   : > { %4832 = vmatpush1.bf16.msra.mxu0 %v4831_v19  ;;  %v4661_v19 = vpack.c.bf16 %v999_v28, %v991_v8  ;;  %v1086_v0 = vld [vmem:[%s6161_s17 + $0x1530] sm:$0xff]  ;;  %v1151_v28 = vld [vmem:[%s6161_s17 + $0x1738] sm:$0xff] }
 0x276   : > { %4628 = vmatpush1.bf16.msra.mxu1 %v4627_v29  ;;  %4834 = vmatprep.subr.bf16.mxu0 %v4833_v36  ;;  %v990_v29 = vld [vmem:[%s6161_s17 + $0x1230] sm:$0xff] }
 0x277   : > { %4630 = vmatprep.subr.bf16.mxu1 %v4629_v34  ;;  %v4663_v34 = vpack.c.bf16 %v998_v30, %v990_v29  ;;  %v1006_v36 = vld [vmem:[%s6161_s17 + $0x12b0] sm:$0xff] }
 0x278   : > { %v4667_v41 = vpack.c.bf16 %v1014_v37, %v1006_v36  ;;  %v1094_v1 = vld [vmem:[%s6161_s17 + $0x1570] sm:$0xff] }
 0x279   : > { %4836 = vmatpush1.bf16.msra.mxu0 %v4835_v43  ;;  %v4669_v43 = vpack.c.bf16 %v1031_v39, %v1023_v38  ;;  %v4687_v6 = vpack.c.bf16 %v1094_v1, %v1086_v0  ;;  %v1102_v10 = vld [vmem:[%s6161_s17 + $0x15b0] sm:$0xff]  ;;  %v2151_v39 = vld [vmem:[%s6169_s6 + $0x18] sm:$0xff] }
 0x27a   : > { %4632 = vmatpush1.bf16.msra.mxu1 %v4631_v45  ;;  %4838 = vmatprep.subr.bf16.mxu0 %v4837_v51  ;;  %v1022_v45 = vld [vmem:[%s6161_s17 + $0x1330] sm:$0xff] }
 0x27b   : > { %4634 = vmatprep.subr.bf16.mxu1 %v4633_v42  ;;  %v1047_v42 = vld [vmem:[%s6161_s17 + $0x13f8] sm:$0xff]  ;;  %v4671_v49 = vpack.c.bf16 %v1030_v47, %v1022_v45  ;;  %v1038_v51 = vld [vmem:[%s6161_s17 + $0x13b0] sm:$0xff]  ;;  %v2150_v47 = vld [vmem:[%s6169_s6 + $0x10] sm:$0xff] }
 0x27c   : > { %v4673_v50 = vpack.c.bf16 %v1047_v42, %v1039_v48  ;;  %v1118_v16 = vld [vmem:[%s6161_s17 + $0x1630] sm:$0xff]  ;;  %v2163_v42 = vld [vmem:[%s6169_s6 + $0x78] sm:$0xff] }
 0x27d   : > { %v1126_v17 = vld [vmem:[%s6161_s17 + $0x1670] sm:$0xff] }
 0x27e   : > { %4636 = vmatpush1.bf16.msra.mxu1 %v4635_v31  ;;  %v1063_v31 = vld [vmem:[%s6161_s17 + $0x1478] sm:$0xff]  ;;  %v1134_v24 = vld [vmem:[%s6161_s17 + $0x16b0] sm:$0xff] }
 0x27f   : > { %4638 = vmatprep.subr.bf16.mxu1 %v4637_v53  ;;  %v4675_v53 = vpack.c.bf16 %v1046_v22, %v1038_v51  ;;  %v4677_v54 = vpack.c.bf16 %v1063_v31, %v1055_v52  ;;  %v1142_v8 = vld [vmem:[%s6161_s17 + $0x16f0] sm:$0xff]  ;;  %v2162_v22 = vld [vmem:[%s6169_s6 + $0x70] sm:$0xff]  ;;  %v1200_v31 = vsub.s32 5, %v6867_v7 }
 0x280   : > { %v1150_v30 = vld [vmem:[%s6161_s17 + $0x1730] sm:$0xff] }
 0x281   : > { %v1158_v32 = vld [vmem:[%s6161_s17 + $0x1770] sm:$0xff] }
 0x282   : > { %4640 = vmatpush1.bf16.msra.mxu1 %v4639_v57  ;;  %v1079_v57 = vld [vmem:[%s6161_s17 + $0x14f8] sm:$0xff]  ;;  %v1166_v37 = vld [vmem:[%s6161_s17 + $0x17b0] sm:$0xff] }
 0x283   : > { %4642 = vmatprep.subr.bf16.mxu1 %v4641_v58  ;;  %v4679_v58 = vpack.c.bf16 %v1062_v55, %v1054_v26  ;;  %v4681_v27 = vpack.c.bf16 %v1079_v57, %v1071_v56  ;;  %v1174_v38 = vld [vmem:[%s6161_s17 + $0x17f0] sm:$0xff]  ;;  %v2174_v57 = vld [vmem:[%s6169_s6 + $0xd0] sm:$0xff] }
 0x284   : > { %v2156_v48 = vld [vmem:[%s6169_s6 + $0x40] sm:$0xff] }
 0x285   : > { %v2168_v52 = vld [vmem:[%s6169_s6 + $0xa0] sm:$0xff] }
 0x286   : > { %4644 = vmatpush1.bf16.msra.mxu1 %v4643_v61  ;;  %v1095_v61 = vld [vmem:[%s6161_s17 + $0x1578] sm:$0xff]  ;;  %v5647_v26 = vld [vmem:[#allocation2 + $0x20] sm:$0xff]  ;;  %v4971_v55 = vpack.c.bf16 %v2168_v52, %v2162_v22 }
 0x287   : > { %4646 = vmatprep.subr.bf16.mxu1 %v4645_v62  ;;  %v4683_v62 = vpack.c.bf16 %v1078_v60, %v1070_v59  ;;  %v4685_v63 = vpack.c.bf16 %v1095_v61, %v1087_v25  ;;  %v2187_v60 = vld [vmem:[%s6169_s6 + $0x138] sm:$0xff]  ;;  %v2193_v25 = vld [vmem:[%s6169_s6 + $0x168] sm:$0xff]  ;;  %v2192_v0 = vld [vmem:[%s6169_s6 + $0x160] sm:$0xff] }
 0x289   : > { %1993 = vmatmul.mubr.f32.vlgmr.msra.gmra.mrb[4].mxu1 %v5645_v11  ;;  %v1110_v11 = vld [vmem:[%s6161_s17 + $0x15f0] sm:$0xff] }
 0x28a   : > { %4648 = vmatpush1.bf16.msra.mxu1 %v4647_v3  ;;  %2063 = vmatprep.mubr.f32.mxu1 %v5646_v13  ;;  %v1103_v3 = vld [vmem:[%s6161_s17 + $0x15b8] sm:$0xff] }
 0x28b   : > { %4650 = vmatprep.subr.bf16.mxu1 %v4649_v4  ;;  %v1111_v4 = vld [vmem:[%s6161_s17 + $0x15f8] sm:$0xff] }
 0x28c   : > { %v4689_v9 = vpack.c.bf16 %v1111_v4, %v1103_v3  ;;  %v1127_v13 = vld [vmem:[%s6161_s17 + $0x1678] sm:$0xff]  ;;  %v2199_v3 = vld [vmem:[%s6169_s6 + $0x198] sm:$0xff] }
 0x28d   : > { %v2205_v4 = vld [vmem:[%s6169_s6 + $0x1c8] sm:$0xff] }
 0x28e   : > { %4652 = vmatpush1.bf16.msra.mxu1 %v4651_v12  ;;  %v1119_v12 = vld [vmem:[%s6161_s17 + $0x1638] sm:$0xff] }
 0x28f   : > { %4654 = vmatprep.subr.bf16.mxu1 %v4653_v14  ;;  %v4691_v14 = vpack.c.bf16 %v1110_v11, %v1102_v10  ;;  %v4693_v15 = vpack.c.bf16 %v1127_v13, %v1119_v12  ;;  %v2198_v10 = vld [vmem:[%s6169_s6 + $0x190] sm:$0xff]  ;;  %v2204_v11 = vld [vmem:[%s6169_s6 + $0x1c0] sm:$0xff]  ;;  %v2211_v13 = vld [vmem:[%s6169_s6 + $0x1f8] sm:$0xff] }
 0x292   : > { %4656 = vmatpush1.bf16.msra.mxu1 %v4655_v20  ;;  %v1143_v20 = vld [vmem:[%s6161_s17 + $0x16f8] sm:$0xff] }
 0x293   : > { %4658 = vmatprep.subr.bf16.mxu1 %v4657_v21  ;;  %v4695_v21 = vpack.c.bf16 %v1126_v17, %v1118_v16  ;;  %v4697_v23 = vpack.c.bf16 %v1143_v20, %v1135_v18  ;;  %v1192_v16 = vsub.s32 3, %v6867_v7  ;;  %v2210_v18 = vld [vmem:[%s6169_s6 + $0x1f0] sm:$0xff]  ;;  %v2216_v20 = vld [vmem:[%s6169_s6 + $0x220] sm:$0xff] }
 0x296   : > { %4660 = vmatpush1.bf16.msra.mxu1 %v4659_v40  ;;  %v1159_v40 = vld [vmem:[%s6161_s17 + $0x1778] sm:$0xff] }
 0x297   : > { %4662 = vmatprep.subr.bf16.mxu1 %v4661_v19  ;;  %v4699_v19 = vpack.c.bf16 %v1142_v8, %v1134_v24  ;;  %v4701_v29 = vpack.c.bf16 %v1159_v40, %v1151_v28  ;;  %v2229_v24 = vld [vmem:[%s6169_s6 + $0x288] sm:$0xff]  ;;  %v4987_v40 = vpack.c.bf16 %v2216_v20, %v2210_v18  ;;  %v2295_v18 = vld [vmem:[%s6169_s6 + $0x498] sm:$0xff] }
 0x298   : > { %v2301_v20 = vld [vmem:[%s6169_s6 + $0x4c8] sm:$0xff] }
 0x29a   : > { %4664 = vmatpush1.bf16.msra.mxu1 %v4663_v34  ;;  %v1175_v34 = vld [vmem:[%s6161_s17 + $0x17f8] sm:$0xff] }
 0x29b   : > { %4666 = vmatprep.subr.bf16.mxu1 %v4665_v35  ;;  %v4703_v35 = vpack.c.bf16 %v1158_v32, %v1150_v30  ;;  %v4705_v36 = vpack.c.bf16 %v1175_v34, %v1167_v33  ;;  %v2228_v30 = vld [vmem:[%s6169_s6 + $0x280] sm:$0xff]  ;;  %v2235_v34 = vld [vmem:[%s6169_s6 + $0x2b8] sm:$0xff] }
 0x29e   : > { %4668 = vmatpush1.bf16.msra.mxu1 %v4667_v41  ;;  %v2157_v41 = vld [vmem:[%s6169_s6 + $0x48] sm:$0xff] }
 0x29f   : > { %4670 = vmatprep.subr.bf16.mxu1 %v4669_v43  ;;  %v4707_v43 = vpack.c.bf16 %v1174_v38, %v1166_v37  ;;  %v4965_v45 = vpack.c.bf16 %v2157_v41, %v2151_v39 }
 0x2a2   : > { %4672 = vmatpush1.bf16.msra.mxu1 %v4671_v49  ;;  %v2169_v49 = vld [vmem:[%s6169_s6 + $0xa8] sm:$0xff] }
 0x2a3   : > { %4674 = vmatprep.subr.bf16.mxu1 %v4673_v50  ;;  %v4967_v50 = vpack.c.bf16 %v2156_v48, %v2150_v47  ;;  %v4969_v51 = vpack.c.bf16 %v2169_v49, %v2163_v42  ;;  %v2240_v47 = vld [vmem:[%s6169_s6 + $0x2e0] sm:$0xff]  ;;  %v2247_v49 = vld [vmem:[%s6169_s6 + $0x318] sm:$0xff] }
 0x2a6   : > { %4676 = vmatpush1.bf16.msra.mxu1 %v4675_v53  ;;  %v2175_v53 = vld [vmem:[%s6169_s6 + $0xd8] sm:$0xff] }
 0x2a7   : > { %4678 = vmatprep.subr.bf16.mxu1 %v4677_v54  ;;  %v2181_v54 = vld [vmem:[%s6169_s6 + $0x108] sm:$0xff] }
 0x2a8   : > { %v4973_v56 = vpack.c.bf16 %v2181_v54, %v2175_v53  ;;  %v2246_v54 = vld [vmem:[%s6169_s6 + $0x310] sm:$0xff] }
 0x2a9   : > { %v7107_v2 = vpop.f32.mrb[2].mxu0 }
 0x2aa   : > { %4680 = vmatpush1.bf16.msra.mxu1 %v4679_v58  ;;  %v7111_v5 = vpop.f32.mrb[3].mxu0  ;;  %v2180_v58 = vld [vmem:[%s6169_s6 + $0x100] sm:$0xff] }
 0x2ab   : > { %4682 = vmatprep.subr.bf16.mxu1 %v4681_v27  ;;  %v7146_v27 = vld [vmem:[%s6167_s7] sm:$0xff]  ;;  %v4975_v61 = vpack.c.bf16 %v2180_v58, %v2174_v57  ;;  %v2265_v58 = vld [vmem:[%s6169_s6 + $0x3a8] sm:$0xff] }
 0x2ac   : > { %v1201_v59 = vrot.slane %v7146_v27, %v1200_v31  ;;  %v1193_v28 = vrot.slane %v7146_v27, %v1192_v16  ;;  %v2259_v57 = vld [vmem:[%s6169_s6 + $0x378] sm:$0xff]  ;;  %v2282_v16 = vld [vmem:[%s6169_s6 + $0x430] sm:$0xff] }
 0x2ae   : > { %4684 = vmatpush1.bf16.msra.mxu1 %v4683_v62  ;;  %v4977_v62 = vpack.c.bf16 %v2193_v25, %v2187_v60  ;;  %v7154_v1 = vadd.f32 %v7111_v5, %v1201_v59  ;;  %v1188_v5 = vsub.s32 2, %v6867_v7 }
 0x2af   : > { %4686 = vmatprep.subr.bf16.mxu1 %v4685_v63  ;;  %v2186_v63 = vld [vmem:[%s6169_s6 + $0x130] sm:$0xff] }
 0x2b0   : > { %v2083_v12 = vmul.f32 %v7154_v1, %v7154_v1  ;;  %v1189_v8 = vrot.slane %v7146_v27, %v1188_v5 }
 0x2b2   : > { %4688 = vmatpush1.bf16.msra.mxu1 %v4687_v6  ;;  %v4979_v6 = vpack.c.bf16 %v2192_v0, %v2186_v63  ;;  %v2258_v63 = vld [vmem:[%s6169_s6 + $0x370] sm:$0xff]  ;;  %v2264_v0 = vld [vmem:[%s6169_s6 + $0x3a0] sm:$0xff] }
 0x2b3   : > { %4690 = vmatprep.subr.bf16.mxu1 %v4689_v9  ;;  %v4981_v9 = vpack.c.bf16 %v2205_v4, %v2199_v3  ;;  %v2271_v4 = vld [vmem:[%s6169_s6 + $0x3d8] sm:$0xff] }
 0x2b6   : > { %4692 = vmatpush1.bf16.msra.mxu1 %v4691_v14  ;;  %v2217_v14 = vld [vmem:[%s6169_s6 + $0x228] sm:$0xff] }
 0x2b7   : > { %4694 = vmatprep.subr.bf16.mxu1 %v4693_v15  ;;  %v4983_v15 = vpack.c.bf16 %v2204_v11, %v2198_v10  ;;  %v4985_v17 = vpack.c.bf16 %v2217_v14, %v2211_v13  ;;  %v2270_v11 = vld [vmem:[%s6169_s6 + $0x3d0] sm:$0xff]  ;;  %v2283_v13 = vld [vmem:[%s6169_s6 + $0x438] sm:$0xff]  ;;  %v2289_v14 = vld [vmem:[%s6169_s6 + $0x468] sm:$0xff] }
 0x2ba   : > { %4696 = vmatpush1.bf16.msra.mxu1 %v4695_v21  ;;  %v2091_v21 = vmul.f32 %v7154_v1, %v2083_v12  ;;  %v2276_v12 = vld [vmem:[%s6169_s6 + $0x400] sm:$0xff] }
 0x2bb   : > { %4698 = vmatprep.subr.bf16.mxu1 %v4697_v23  ;;  %v2223_v23 = vld [vmem:[%s6169_s6 + $0x258] sm:$0xff]  ;;  %v5007_v5 = vpack.c.bf16 %v2276_v12, %v2270_v11  ;;  %v2568_v11 = vld [vmem:[%s6169_s6 + $0xd20] sm:$0xff]  ;;  %v2330_v12 = vld [vmem:[%s6169_s6 + $0x5b0] sm:$0xff] }
 0x2bc   : > { %v2099_v32 = vmul.f32 0.044715, %v2091_v21 }
 0x2be   : > { %4700 = vmatpush1.bf16.msra.mxu1 %v4699_v19  ;;  %v4989_v19 = vpack.c.bf16 %v2229_v24, %v2223_v23  ;;  %v2107_v48 = vadd.f32 %v7154_v1, %v2099_v32  ;;  %v2538_v32 = vld [vmem:[%s6169_s6 + $0xc30] sm:$0xff] }
 0x2bf   : > { %4702 = vmatprep.subr.bf16.mxu1 %v4701_v29  ;;  %v2222_v29 = vld [vmem:[%s6169_s6 + $0x250] sm:$0xff] }
 0x2c0   : > { %v4991_v39 = vpack.c.bf16 %v2228_v30, %v2222_v29 }
 0x2c2   : > { %4704 = vmatpush1.bf16.msra.mxu1 %v4703_v35  ;;  %v2241_v35 = vld [vmem:[%s6169_s6 + $0x2e8] sm:$0xff] }
 0x2c3   : > { %4706 = vmatprep.subr.bf16.mxu1 %v4705_v36 }
 0x2c6   : > { %4708 = vmatpush1.bf16.msra.mxu1 %v4707_v43  ;;  %v4993_v43 = vpack.c.bf16 %v2241_v35, %v2235_v34  ;;  %v2551_v34 = vld [vmem:[%s6169_s6 + $0xc98] sm:$0xff] }
 0x2c7   : > { %4966 = vmatprep.subr.bf16.mxu1 %v4965_v45  ;;  %v2234_v45 = vld [vmem:[%s6169_s6 + $0x2b0] sm:$0xff] }
 0x2c8   : > { %v4995_v52 = vpack.c.bf16 %v2240_v47, %v2234_v45  ;;  %v2313_v45 = vld [vmem:[%s6169_s6 + $0x528] sm:$0xff] }
 0x2c9   : > { %2064 = vmatmul.mubr.f32.vlgmr.msra.gmra.mrb[4].mxu1 %v5647_v26  ;;  %v2252_v26 = vld [vmem:[%s6169_s6 + $0x340] sm:$0xff] }
 0x2ca   : > { %4968 = vmatpush1.bf16.msra.mxu1 %v4967_v50  ;;  %3264 = vmatprep.mubr.f32.mxu1 %v6925_v44  ;;  %v2253_v50 = vld [vmem:[%s6169_s6 + $0x348] sm:$0xff]  ;;  %v4999_v25 = vpack.c.bf16 %v2252_v26, %v2246_v54 }
 0x2cb   : > { %4970 = vmatprep.subr.bf16.mxu1 %v4969_v51  ;;  %v4997_v53 = vpack.c.bf16 %v2253_v50, %v2247_v49  ;;  %v2306_v50 = vld [vmem:[%s6169_s6 + $0x4f0] sm:$0xff]  ;;  %v2557_v26 = vld [vmem:[%s6169_s6 + $0xcc8] sm:$0xff] }
 0x2ce   : > { %4972 = vmatpush1.bf16.msra.mxu1 %v4971_v55  ;;  %v2115_v55 = vmul.f32 0.7978845, %v2107_v48 }
 0x2cf   : > { %4974 = vmatprep.subr.bf16.mxu1 %v4973_v56 }
 0x2d0   : > { %5625 = vtanh.f32 %v2115_v55  ;;  %v2563_v55 = vld [vmem:[%s6169_s6 + $0xcf8] sm:$0xff] }
 0x2d2   : > { %4976 = vmatpush1.bf16.msra.mxu1 %v4975_v61 }
 0x2d3   : > { %4978 = vmatprep.subr.bf16.mxu1 %v4977_v62  ;;  %v5001_v62 = vpack.c.bf16 %v2265_v58, %v2259_v57 }
 0x2d6   : > { %4980 = vmatpush1.bf16.msra.mxu1 %v4979_v6  ;;  %v2277_v6 = vld [vmem:[%s6169_s6 + $0x408] sm:$0xff] }
 0x2d7   : > { %4982 = vmatprep.subr.bf16.mxu1 %v4981_v9  ;;  %v5003_v9 = vpack.c.bf16 %v2264_v0, %v2258_v63  ;;  %v5005_v10 = vpack.c.bf16 %v2277_v6, %v2271_v4  ;;  %v2331_v63 = vld [vmem:[%s6169_s6 + $0x5b8] sm:$0xff]  ;;  %v2337_v0 = vld [vmem:[%s6169_s6 + $0x5e8] sm:$0xff] }
 0x2d8   : > { %v2575_v4 = vld [vmem:[%s6169_s6 + $0xd58] sm:$0xff] }
 0x2da   : > { %4984 = vmatpush1.bf16.msra.mxu1 %v4983_v15  ;;  %v5009_v15 = vpack.c.bf16 %v2289_v14, %v2283_v13  ;;  %v5626_v21 = vpop.eup %5625  ;;  %v2336_v13 = vld [vmem:[%s6169_s6 + $0x5e0] sm:$0xff] }
 0x2db   : > { %4986 = vmatprep.subr.bf16.mxu1 %v4985_v17  ;;  %v2288_v17 = vld [vmem:[%s6169_s6 + $0x460] sm:$0xff] }
 0x2dc   : > { %v1639_v33 = vpop.f32.mrb[2].mxu1  ;;  %v5011_v23 = vpack.c.bf16 %v2288_v17, %v2282_v16  ;;  %v2349_v16 = vld [vmem:[%s6169_s6 + $0x648] sm:$0xff] }
 0x2dd   : > { %v7177_v36 = vadd.f32 %v1639_v33, %v1189_v8  ;;  %v1641_v37 = vpop.f32.mrb[3].mxu1  ;;  %v5013_v8 = vpack.c.bf16 %v2301_v20, %v2295_v18  ;;  %v2545_v33 = vld [vmem:[%s6169_s6 + $0xc68] sm:$0xff]  ;;  %v2587_v18 = vld [vmem:[%s6169_s6 + $0xdb8] sm:$0xff]  ;;  %v5027_v20 = vpack.c.bf16 %v2336_v13, %v2330_v12 }
 0x2de   : > { %v7179_v38 = vadd.f32 %v1641_v37, %v1193_v28  ;;  %4988 = vmatpush1.bf16.msra.mxu1 %v4987_v40  ;;  %v2532_v28 = vld [vmem:[%s6169_s6 + $0xc00] sm:$0xff]  ;;  %v2294_v40 = vld [vmem:[%s6169_s6 + $0x490] sm:$0xff]  ;;  %v2581_v17 = vld [vmem:[%s6169_s6 + $0xd88] sm:$0xff] }
 0x2df   : > { %v2080_v41 = vmul.f32 %v7177_v36, %v7177_v36  ;;  %4990 = vmatprep.subr.bf16.mxu1 %v4989_v19  ;;  %v2300_v19 = vld [vmem:[%s6169_s6 + $0x4c0] sm:$0xff]  ;;  %v2072_v47 = vmul.f32 0.5, %v7177_v36  ;;  %v4839_v49 = vpack.c.bf16 %v2538_v32, %v2532_v28  ;;  %v2593_v32 = vld [vmem:[%s6169_s6 + $0xde8] sm:$0xff] }
 0x2e0   : > { %v2081_v42 = vmul.f32 %v7179_v38, %v7179_v38  ;;  %v2073_v35 = vmul.f32 0.5, %v7179_v38  ;;  %v5015_v48 = vpack.c.bf16 %v2300_v19, %v2294_v40  ;;  %v2348_v28 = vld [vmem:[%s6169_s6 + $0x640] sm:$0xff]  ;;  %v4853_v40 = vpack.c.bf16 %v2587_v18, %v2581_v17  ;;  %v2586_v19 = vld [vmem:[%s6169_s6 + $0xdb0] sm:$0xff]  ;;  %v2629_v12 = vld [vmem:[%s6169_s6 + $0xf08] sm:$0xff] }
 0x2e1   : > { %v2088_v51 = vmul.f32 %v7177_v36, %v2080_v41  ;;  %v2131_v41 = vadd.f32 1.0, %v5626_v21  ;;  %v2390_v17 = vld [vmem:[%s6169_s6 + $0x790] sm:$0xff]  ;;  %v2396_v18 = vld [vmem:[%s6169_s6 + $0x7c0] sm:$0xff] }
 0x2e2   : > { %v2089_v22 = vmul.f32 %v7179_v38, %v2081_v42  ;;  %4992 = vmatpush1.bf16.msra.mxu1 %v4991_v39  ;;  %v2075_v39 = vmul.f32 0.5, %v7154_v1 }
 0x2e3   : > { %v2096_v31 = vmul.f32 0.044715, %v2088_v51  ;;  %4994 = vmatprep.subr.bf16.mxu1 %v4993_v43  ;;  %v2307_v43 = vld [vmem:[%s6169_s6 + $0x4f8] sm:$0xff]  ;;  %v2312_v51 = vld [vmem:[%s6169_s6 + $0x520] sm:$0xff] }
 0x2e4   : > { %v2097_v56 = vmul.f32 0.044715, %v2089_v22  ;;  %v4841_v22 = vpack.c.bf16 %v2551_v34, %v2545_v33  ;;  %v7232_v54 = vmul.f32 %v2131_v41, %v2075_v39  ;;  %v2599_v33 = vld [vmem:[%s6169_s6 + $0xe18] sm:$0xff]  ;;  %v2592_v41 = vld [vmem:[%s6169_s6 + $0xde0] sm:$0xff] }
 0x2e5   : > { %v2104_v59 = vadd.f32 %v7177_v36, %v2096_v31  ;;  %v2550_v31 = vld [vmem:[%s6169_s6 + $0xc90] sm:$0xff]  ;;  %v2319_v36 = vld [vmem:[%s6169_s6 + $0x558] sm:$0xff] }
 0x2e6   : > { %v2105_v60 = vadd.f32 %v7179_v38, %v2097_v56  ;;  %4996 = vmatpush1.bf16.msra.mxu1 %v4995_v52  ;;  %v2544_v38 = vld [vmem:[%s6169_s6 + $0xc60] sm:$0xff]  ;;  %v5017_v52 = vpack.c.bf16 %v2313_v45, %v2307_v43  ;;  %v5019_v56 = vpack.c.bf16 %v2312_v51, %v2306_v50  ;;  %v2354_v43 = vld [vmem:[%s6169_s6 + $0x670] sm:$0xff]  ;;  %v2605_v50 = vld [vmem:[%s6169_s6 + $0xe48] sm:$0xff] }
 0x2e7   : > { %v2112_v61 = vmul.f32 0.7978845, %v2104_v59  ;;  %4998 = vmatprep.subr.bf16.mxu1 %v4997_v53  ;;  %v2325_v53 = vld [vmem:[%s6169_s6 + $0x588] sm:$0xff]  ;;  %v4843_v57 = vpack.c.bf16 %v2550_v31, %v2544_v38  ;;  %v2556_v59 = vld [vmem:[%s6169_s6 + $0xcc0] sm:$0xff]  ;;  %v2611_v51 = vld [vmem:[%s6169_s6 + $0xe78] sm:$0xff] }
 0x2e8   : > { %v2113_v3 = vmul.f32 0.7978845, %v2105_v60  ;;  %v5021_v58 = vpack.c.bf16 %v2325_v53, %v2319_v36  ;;  %v2318_v60 = vld [vmem:[%s6169_s6 + $0x550] sm:$0xff]  ;;  %v2360_v45 = vld [vmem:[%s6169_s6 + $0x6a0] sm:$0xff]  ;;  %v2373_v38 = vld [vmem:[%s6169_s6 + $0x708] sm:$0xff] }
 0x2e9   : > { %5627 = vtanh.f32 %v2112_v61  ;;  %v4845_v61 = vpack.c.bf16 %v2563_v55, %v2557_v26  ;;  %v2604_v53 = vld [vmem:[%s6169_s6 + $0xe40] sm:$0xff]  ;;  %v2366_v26 = vld [vmem:[%s6169_s6 + $0x6d0] sm:$0xff] }
 0x2ea   : > { %5000 = vmatpush1.bf16.msra.mxu1 %v4999_v25  ;;  %5629 = vtanh.f32 %v2113_v3  ;;  %v2324_v25 = vld [vmem:[%s6169_s6 + $0x580] sm:$0xff]  ;;  %v2569_v3 = vld [vmem:[%s6169_s6 + $0xd28] sm:$0xff] }
 0x2eb   : > { %5002 = vmatprep.subr.bf16.mxu1 %v5001_v62  ;;  %v2562_v62 = vld [vmem:[%s6169_s6 + $0xcf0] sm:$0xff]  ;;  %v5023_v6 = vpack.c.bf16 %v2324_v25, %v2318_v60  ;;  %v4849_v14 = vpack.c.bf16 %v2575_v4, %v2569_v3  ;;  %v2372_v55 = vld [vmem:[%s6169_s6 + $0x700] sm:$0xff]  ;;  %v2617_v60 = vld [vmem:[%s6169_s6 + $0xea8] sm:$0xff] }
 0x2ec   : > { %v5039_v25 = vpack.c.bf16 %v2372_v55, %v2366_v26  ;;  %v2378_v3 = vld [vmem:[%s6169_s6 + $0x730] sm:$0xff]  ;;  %v2384_v4 = vld [vmem:[%s6169_s6 + $0x760] sm:$0xff]  ;;  %v2665_v26 = vld [vmem:[%s6169_s6 + $0x1028] sm:$0xff] }
 0x2ed   : > { %v5043_v13 = vpack.c.bf16 %v2384_v4, %v2378_v3  ;;  %v2671_v55 = vld [vmem:[%s6169_s6 + $0x1058] sm:$0xff]  ;;  %v2445_v3 = vld [vmem:[%s6169_s6 + $0x948] sm:$0xff] }
 0x2ee   : > { %5004 = vmatpush1.bf16.msra.mxu1 %v5003_v9  ;;  %v4847_v9 = vpack.c.bf16 %v2562_v62, %v2556_v59  ;;  %v2385_v59 = vld [vmem:[%s6169_s6 + $0x768] sm:$0xff] }
 0x2ef   : > { %5006 = vmatprep.subr.bf16.mxu1 %v5005_v10  ;;  %v5025_v10 = vpack.c.bf16 %v2337_v0, %v2331_v63  ;;  %v2616_v0 = vld [vmem:[%s6169_s6 + $0xea0] sm:$0xff]  ;;  %v2677_v4 = vld [vmem:[%s6169_s6 + $0x1088] sm:$0xff] }
 0x2f2   : > { %5008 = vmatpush1.bf16.msra.mxu1 %v5007_v5  ;;  %v2574_v5 = vld [vmem:[%s6169_s6 + $0xd50] sm:$0xff] }
 0x2f3   : > { %v5628_v24 = vpop.eup %5627  ;;  %5010 = vmatprep.subr.bf16.mxu1 %v5009_v15  ;;  %v2343_v15 = vld [vmem:[%s6169_s6 + $0x618] sm:$0xff]  ;;  %v4851_v21 = vpack.c.bf16 %v2574_v5, %v2568_v11  ;;  %v2397_v11 = vld [vmem:[%s6169_s6 + $0x7c8] sm:$0xff] }
 0x2f4   : > { %v5630_v29 = vpop.eup %5629  ;;  %v2128_v30 = vadd.f32 1.0, %v5628_v24  ;;  %v2580_v24 = vld [vmem:[%s6169_s6 + $0xd80] sm:$0xff] }
 0x2f5   : > { %v2129_v37 = vadd.f32 1.0, %v5630_v29  ;;  %v2355_v29 = vld [vmem:[%s6169_s6 + $0x678] sm:$0xff] }
 0x2f6   : > { %5012 = vmatpush1.bf16.msra.mxu1 %v5011_v23  ;;  %v7226_v1 = vmul.f32 %v2128_v30, %v2072_v47  ;;  %v5029_v23 = vpack.c.bf16 %v2349_v16, %v2343_v15  ;;  %v2361_v30 = vld [vmem:[%s6169_s6 + $0x6a8] sm:$0xff]  ;;  %v4857_v47 = vpack.c.bf16 %v2599_v33, %v2593_v32  ;;  %v2628_v16 = vld [vmem:[%s6169_s6 + $0xf00] sm:$0xff]  ;;  %v2402_v33 = vld [vmem:[%s6169_s6 + $0x7f0] sm:$0xff] }
 0x2f7   : > { %v7221_v42 = vmul.f32 %v2129_v37, %v2073_v35  ;;  %5014 = vmatprep.subr.bf16.mxu1 %v5013_v8  ;;  %v2342_v8 = vld [vmem:[%s6169_s6 + $0x610] sm:$0xff]  ;;  %v1196_v35 = vsub.s32 4, %v6867_v7  ;;  %v4855_v37 = vpack.c.bf16 %v2586_v19, %v2580_v24  ;;  %v5033_v39 = vpack.c.bf16 %v2361_v30, %v2355_v29  ;;  %v2409_v24 = vld [vmem:[%s6169_s6 + $0x828] sm:$0xff]  ;;  %v2640_v32 = vld [vmem:[%s6169_s6 + $0xf60] sm:$0xff] }
 0x2f8   : > { %v5031_v34 = vpack.c.bf16 %v2348_v28, %v2342_v8  ;;  %v2641_v8 = vld [vmem:[%s6169_s6 + $0xf68] sm:$0xff]  ;;  %v2647_v28 = vld [vmem:[%s6169_s6 + $0xf98] sm:$0xff] }
 0x2f9   : > { %3051 = vmatprep.mubr.f32.mxu0 %v7221_v42 }
 0x2fa   : > { %3052 = vmatmul.mubr.f32.vlgmr.msra.gmra.mrb[4].mxu0 %v7226_v1  ;;  %5016 = vmatpush1.bf16.msra.mxu1 %v5015_v48  ;;  %v2598_v48 = vld [vmem:[%s6169_s6 + $0xe10] sm:$0xff] }
 0x2fb   : > { %4840 = vmatpush1.bf16.msra.mxu0 %v4839_v49  ;;  %3122 = vmatprep.mubr.f32.mxu0 %v7232_v54  ;;  %v2367_v49 = vld [vmem:[%s6169_s6 + $0x6d8] sm:$0xff]  ;;  %v4859_v31 = vpack.c.bf16 %v2598_v48, %v2592_v41  ;;  %v2421_v41 = vld [vmem:[%s6169_s6 + $0x888] sm:$0xff] }
 0x2fc   : > { %4842 = vmatprep.subr.bf16.mxu0 %v4841_v22  ;;  %5018 = vmatprep.subr.bf16.mxu1 %v5017_v52  ;;  %v5035_v22 = vpack.c.bf16 %v2360_v45, %v2354_v43  ;;  %v1197_v52 = vrot.slane %v7146_v27, %v1196_v35  ;;  %v5037_v36 = vpack.c.bf16 %v2373_v38, %v2367_v49  ;;  %v2623_v27 = vld [vmem:[%s6169_s6 + $0xed8] sm:$0xff]  ;;  %v2653_v43 = vld [vmem:[%s6169_s6 + $0xfc8] sm:$0xff] }
 0x2fd   : > { %v4873_v35 = vpack.c.bf16 %v2647_v28, %v2641_v8  ;;  %v2659_v45 = vld [vmem:[%s6169_s6 + $0xff8] sm:$0xff]  ;;  %v2688_v8 = vld [vmem:[%s6169_s6 + $0x10e0] sm:$0xff]  ;;  %v2450_v28 = vld [vmem:[%s6169_s6 + $0x970] sm:$0xff] }
 0x2fe   : > { %5020 = vmatpush1.bf16.msra.mxu1 %v5019_v56  ;;  %v4861_v56 = vpack.c.bf16 %v2611_v51, %v2605_v50  ;;  %v2652_v50 = vld [vmem:[%s6169_s6 + $0xfc0] sm:$0xff]  ;;  %v2414_v51 = vld [vmem:[%s6169_s6 + $0x850] sm:$0xff] }
 0x2ff   : > { %4844 = vmatpush1.bf16.msra.mxu0 %v4843_v57  ;;  %5022 = vmatprep.subr.bf16.mxu1 %v5021_v58  ;;  %v2610_v57 = vld [vmem:[%s6169_s6 + $0xe70] sm:$0xff]  ;;  %v2379_v58 = vld [vmem:[%s6169_s6 + $0x738] sm:$0xff] }
 0x300   : > { %4846 = vmatprep.subr.bf16.mxu0 %v4845_v61  ;;  %v7283_v61 = vadd.f32 %v7107_v2, %v1197_v52  ;;  %v4863_v62 = vpack.c.bf16 %v2610_v57, %v2604_v53  ;;  %v5041_v63 = vpack.c.bf16 %v2385_v59, %v2379_v58  ;;  %v2635_v2 = vld [vmem:[%s6169_s6 + $0xf38] sm:$0xff]  ;;  %v4877_v52 = vpack.c.bf16 %v2659_v45, %v2653_v43  ;;  %v2433_v53 = vld [vmem:[%s6169_s6 + $0x8e8] sm:$0xff]  ;;  %v2462_v43 = vld [vmem:[%s6169_s6 + $0x9d0] sm:$0xff] }
 0x301   : > { %v2468_v45 = vld [vmem:[%s6169_s6 + $0xa00] sm:$0xff] }
 0x302   : > { %5024 = vmatpush1.bf16.msra.mxu1 %v5023_v6  ;;  %v4865_v6 = vpack.c.bf16 %v2623_v27, %v2617_v60  ;;  %v2664_v60 = vld [vmem:[%s6169_s6 + $0x1020] sm:$0xff]  ;;  %v2426_v27 = vld [vmem:[%s6169_s6 + $0x8b0] sm:$0xff] }
 0x303   : > { %4848 = vmatpush1.bf16.msra.mxu0 %v4847_v9  ;;  %5026 = vmatprep.subr.bf16.mxu1 %v5025_v10  ;;  %v2622_v9 = vld [vmem:[%s6169_s6 + $0xed0] sm:$0xff]  ;;  %v2391_v10 = vld [vmem:[%s6169_s6 + $0x798] sm:$0xff] }
 0x304   : > { %4850 = vmatprep.subr.bf16.mxu0 %v4849_v14  ;;  %v2082_v14 = vmul.f32 %v7283_v61, %v7283_v61  ;;  %v4867_v5 = vpack.c.bf16 %v2622_v9, %v2616_v0  ;;  %v5045_v15 = vpack.c.bf16 %v2397_v11, %v2391_v10  ;;  %v2439_v0 = vld [vmem:[%s6169_s6 + $0x918] sm:$0xff] }
 0x306   : > { %5028 = vmatpush1.bf16.msra.mxu1 %v5027_v20  ;;  %v4869_v20 = vpack.c.bf16 %v2635_v2, %v2629_v12  ;;  %v2090_v19 = vmul.f32 %v7283_v61, %v2082_v14  ;;  %v5061_v12 = vpack.c.bf16 %v2445_v3, %v2439_v0  ;;  %v2676_v2 = vld [vmem:[%s6169_s6 + $0x1080] sm:$0xff]  ;;  %v2486_v0 = vld [vmem:[%s6169_s6 + $0xa90] sm:$0xff] }
 0x307   : > { %4852 = vmatpush1.bf16.msra.mxu0 %v4851_v21  ;;  %5030 = vmatprep.subr.bf16.mxu1 %v5029_v23  ;;  %v2634_v21 = vld [vmem:[%s6169_s6 + $0xf30] sm:$0xff]  ;;  %v2403_v23 = vld [vmem:[%s6169_s6 + $0x7f8] sm:$0xff]  ;;  %v2444_v14 = vld [vmem:[%s6169_s6 + $0x940] sm:$0xff] }
 0x308   : > { %4854 = vmatprep.subr.bf16.mxu0 %v4853_v40  ;;  %v5047_v40 = vpack.c.bf16 %v2396_v18, %v2390_v17  ;;  %v4871_v29 = vpack.c.bf16 %v2634_v21, %v2628_v16  ;;  %v5049_v30 = vpack.c.bf16 %v2409_v24, %v2403_v23  ;;  %v2098_v48 = vmul.f32 0.044715, %v2090_v19  ;;  %v2451_v16 = vld [vmem:[%s6169_s6 + $0x978] sm:$0xff]  ;;  %v2457_v17 = vld [vmem:[%s6169_s6 + $0x9a8] sm:$0xff]  ;;  %v2492_v3 = vld [vmem:[%s6169_s6 + $0xac0] sm:$0xff] }
 0x309   : > { %3265 = vmatmul.mubr.f32.vlgmr.msra.gmra.mrb[6].mxu1 %v6927_v46  ;;  %v2689_v18 = vld [vmem:[%s6169_s6 + $0x10e8] sm:$0xff]  ;;  %v5065_v24 = vpack.c.bf16 %v2457_v17, %v2451_v16  ;;  %v2504_v16 = vld [vmem:[%s6169_s6 + $0xb20] sm:$0xff]  ;;  %v2511_v17 = vld [vmem:[%s6169_s6 + $0xb58] sm:$0xff] }
 0x30a   : > { %5032 = vmatpush1.bf16.msra.mxu1 %v5031_v34  ;;  %3335 = vmatprep.mubr.f32.mxu1 %v7221_v42  ;;  %v2408_v34 = vld [vmem:[%s6169_s6 + $0x820] sm:$0xff]  ;;  %v2106_v57 = vadd.f32 %v7283_v61, %v2098_v48  ;;  %v2706_v48 = vld [vmem:[%s6169_s6 + $0x1170] sm:$0xff] }
 0x30b   : > { %4856 = vmatpush1.bf16.msra.mxu0 %v4855_v37  ;;  %5034 = vmatprep.subr.bf16.mxu1 %v5033_v39  ;;  %v2646_v37 = vld [vmem:[%s6169_s6 + $0xf90] sm:$0xff]  ;;  %v2415_v39 = vld [vmem:[%s6169_s6 + $0x858] sm:$0xff] }
 0x30c   : > { %4858 = vmatprep.subr.bf16.mxu0 %v4857_v47  ;;  %v5051_v47 = vpack.c.bf16 %v2408_v34, %v2402_v33  ;;  %v4875_v49 = vpack.c.bf16 %v2646_v37, %v2640_v32  ;;  %v5053_v38 = vpack.c.bf16 %v2421_v41, %v2415_v39  ;;  %v2114_v10 = vmul.f32 0.7978845, %v2106_v57  ;;  %v2469_v32 = vld [vmem:[%s6169_s6 + $0xa08] sm:$0xff]  ;;  %v2707_v34 = vld [vmem:[%s6169_s6 + $0x1178] sm:$0xff]  ;;  %v2700_v41 = vld [vmem:[%s6169_s6 + $0x1140] sm:$0xff] }
 0x30d   : > { %v2701_v33 = vld [vmem:[%s6169_s6 + $0x1148] sm:$0xff]  ;;  %v2487_v57 = vld [vmem:[%s6169_s6 + $0xa98] sm:$0xff] }
 0x30e   : > { %5036 = vmatpush1.bf16.msra.mxu1 %v5035_v22  ;;  %v2420_v22 = vld [vmem:[%s6169_s6 + $0x880] sm:$0xff]  ;;  %5631 = vtanh.f32 %v2114_v10  ;;  %v2505_v10 = vld [vmem:[%s6169_s6 + $0xb28] sm:$0xff] }
 0x30f   : > { %4860 = vmatpush1.bf16.msra.mxu0 %v4859_v31  ;;  %5038 = vmatprep.subr.bf16.mxu1 %v5037_v36  ;;  %v2658_v31 = vld [vmem:[%s6169_s6 + $0xff0] sm:$0xff]  ;;  %v2427_v36 = vld [vmem:[%s6169_s6 + $0x8b8] sm:$0xff] }
 0x310   : > { %4862 = vmatprep.subr.bf16.mxu0 %v4861_v56  ;;  %v5055_v56 = vpack.c.bf16 %v2420_v22, %v2414_v51  ;;  %v4879_v58 = vpack.c.bf16 %v2658_v31, %v2652_v50  ;;  %v5057_v59 = vpack.c.bf16 %v2433_v53, %v2427_v36  ;;  %v2713_v50 = vld [vmem:[%s6169_s6 + $0x11a8] sm:$0xff]  ;;  %v2719_v51 = vld [vmem:[%s6169_s6 + $0x11d8] sm:$0xff]  ;;  %v5071_v22 = vpack.c.bf16 %v2468_v45, %v2462_v43  ;;  %v2712_v36 = vld [vmem:[%s6169_s6 + $0x11a0] sm:$0xff] }
 0x311   : > { %v2474_v53 = vld [vmem:[%s6169_s6 + $0xa30] sm:$0xff]  ;;  %v2761_v43 = vld [vmem:[%s6169_s6 + $0x1328] sm:$0xff]  ;;  %v2767_v45 = vld [vmem:[%s6169_s6 + $0x1358] sm:$0xff] }
 0x312   : > { %5040 = vmatpush1.bf16.msra.mxu1 %v5039_v25  ;;  %v2432_v25 = vld [vmem:[%s6169_s6 + $0x8e0] sm:$0xff] }
 0x313   : > { %4864 = vmatpush1.bf16.msra.mxu0 %v4863_v62  ;;  %5042 = vmatprep.subr.bf16.mxu1 %v5041_v63  ;;  %v4881_v62 = vpack.c.bf16 %v2671_v55, %v2665_v26  ;;  %v2670_v63 = vld [vmem:[%s6169_s6 + $0x1050] sm:$0xff]  ;;  %v5059_v9 = vpack.c.bf16 %v2432_v25, %v2426_v27  ;;  %v2480_v26 = vld [vmem:[%s6169_s6 + $0xa60] sm:$0xff]  ;;  %v4897_v55 = vpack.c.bf16 %v2719_v51, %v2713_v50  ;;  %v2731_v27 = vld [vmem:[%s6169_s6 + $0x1238] sm:$0xff] }
 0x314   : > { %4866 = vmatprep.subr.bf16.mxu0 %v4865_v6  ;;  %v2683_v6 = vld [vmem:[%s6169_s6 + $0x10b8] sm:$0xff]  ;;  %v4883_v11 = vpack.c.bf16 %v2670_v63, %v2664_v60  ;;  %v2725_v60 = vld [vmem:[%s6169_s6 + $0x1208] sm:$0xff]  ;;  %v5075_v25 = vpack.c.bf16 %v2480_v26, %v2474_v53 }
 0x315   : > { %v2535_v50 = vld [vmem:[%s6169_s6 + $0xc18] sm:$0xff]  ;;  %v2773_v53 = vld [vmem:[%s6169_s6 + $0x1388] sm:$0xff] }
 0x316   : > { %5044 = vmatpush1.bf16.msra.mxu1 %v5043_v13  ;;  %v2438_v13 = vld [vmem:[%s6169_s6 + $0x910] sm:$0xff]  ;;  %v2779_v26 = vld [vmem:[%s6169_s6 + $0x13b8] sm:$0xff] }
 0x317   : > { %4868 = vmatpush1.bf16.msra.mxu0 %v4867_v5  ;;  %5046 = vmatprep.subr.bf16.mxu1 %v5045_v15  ;;  %v4885_v5 = vpack.c.bf16 %v2683_v6, %v2677_v4  ;;  %v2682_v15 = vld [vmem:[%s6169_s6 + $0x10b0] sm:$0xff]  ;;  %v5063_v21 = vpack.c.bf16 %v2444_v14, %v2438_v13  ;;  %v2499_v4 = vld [vmem:[%s6169_s6 + $0xaf8] sm:$0xff]  ;;  %v2074_v6 = vmul.f32 0.5, %v7283_v61  ;;  %v2737_v13 = vld [vmem:[%s6169_s6 + $0x1268] sm:$0xff] }
 0x318   : > { %4870 = vmatprep.subr.bf16.mxu0 %v4869_v20  ;;  %v2695_v20 = vld [vmem:[%s6169_s6 + $0x1118] sm:$0xff]  ;;  %v4887_v23 = vpack.c.bf16 %v2682_v15, %v2676_v2  ;;  %v2730_v2 = vld [vmem:[%s6169_s6 + $0x1230] sm:$0xff]  ;;  %v5081_v15 = vpack.c.bf16 %v2505_v10, %v2499_v4  ;;  %v2552_v10 = vld [vmem:[%s6169_s6 + $0xca0] sm:$0xff] }
 0x319   : > { %v4889_v19 = vpack.c.bf16 %v2695_v20, %v2689_v18  ;;  %v2743_v14 = vld [vmem:[%s6169_s6 + $0x1298] sm:$0xff]  ;;  %v2498_v61 = vld [vmem:[%s6169_s6 + $0xaf0] sm:$0xff] }
 0x31a   : > { %5048 = vmatpush1.bf16.msra.mxu1 %v5047_v40  ;;  %v2456_v40 = vld [vmem:[%s6169_s6 + $0x9a0] sm:$0xff] }
 0x31b   : > { %4872 = vmatpush1.bf16.msra.mxu0 %v4871_v29  ;;  %5050 = vmatprep.subr.bf16.mxu1 %v5049_v30  ;;  %v2694_v29 = vld [vmem:[%s6169_s6 + $0x1110] sm:$0xff]  ;;  %v2463_v30 = vld [vmem:[%s6169_s6 + $0x9d8] sm:$0xff] }
 0x31c   : > { %4874 = vmatprep.subr.bf16.mxu0 %v4873_v35  ;;  %v5067_v35 = vpack.c.bf16 %v2456_v40, %v2450_v28  ;;  %v4891_v37 = vpack.c.bf16 %v2694_v29, %v2688_v8  ;;  %v5069_v39 = vpack.c.bf16 %v2469_v32, %v2463_v30  ;;  %v2742_v8 = vld [vmem:[%s6169_s6 + $0x1290] sm:$0xff]  ;;  %v2749_v28 = vld [vmem:[%s6169_s6 + $0x12c8] sm:$0xff]  ;;  %v2755_v40 = vld [vmem:[%s6169_s6 + $0x12f8] sm:$0xff] }
 0x31d   : > { %v2510_v30 = vld [vmem:[%s6169_s6 + $0xb50] sm:$0xff]  ;;  %v2516_v32 = vld [vmem:[%s6169_s6 + $0xb80] sm:$0xff] }
 0x31e   : > { %5052 = vmatpush1.bf16.msra.mxu1 %v5051_v47  ;;  %v4893_v47 = vpack.c.bf16 %v2707_v34, %v2701_v33  ;;  %v2523_v33 = vld [vmem:[%s6169_s6 + $0xbb8] sm:$0xff] }
 0x31f   : > { %4876 = vmatpush1.bf16.msra.mxu0 %v4875_v49  ;;  %5054 = vmatprep.subr.bf16.mxu1 %v5053_v38  ;;  %v2475_v49 = vld [vmem:[%s6169_s6 + $0xa38] sm:$0xff]  ;;  %v2481_v38 = vld [vmem:[%s6169_s6 + $0xa68] sm:$0xff] }
 0x320   : > { %4878 = vmatprep.subr.bf16.mxu0 %v4877_v52  ;;  %v4895_v52 = vpack.c.bf16 %v2706_v48, %v2700_v41  ;;  %v5073_v31 = vpack.c.bf16 %v2481_v38, %v2475_v49  ;;  %v2754_v41 = vld [vmem:[%s6169_s6 + $0x12f0] sm:$0xff]  ;;  %v2528_v38 = vld [vmem:[%s6169_s6 + $0xbe0] sm:$0xff] }
 0x321   : > { %v2522_v49 = vld [vmem:[%s6169_s6 + $0xbb0] sm:$0xff] }
 0x322   : > { %5056 = vmatpush1.bf16.msra.mxu1 %v5055_v56  ;;  %v2718_v56 = vld [vmem:[%s6169_s6 + $0x11d0] sm:$0xff] }
 0x323   : > { %4880 = vmatpush1.bf16.msra.mxu0 %v4879_v58  ;;  %5058 = vmatprep.subr.bf16.mxu1 %v5057_v59  ;;  %v2493_v58 = vld [vmem:[%s6169_s6 + $0xac8] sm:$0xff]  ;;  %v5632_v59 = vpop.eup %5631 }
 0x324   : > { %4882 = vmatprep.subr.bf16.mxu0 %v4881_v62  ;;  %v4899_v62 = vpack.c.bf16 %v2718_v56, %v2712_v36  ;;  %v5077_v63 = vpack.c.bf16 %v2493_v58, %v2487_v57  ;;  %v2766_v36 = vld [vmem:[%s6169_s6 + $0x1350] sm:$0xff]  ;;  %v2540_v58 = vld [vmem:[%s6169_s6 + $0xc40] sm:$0xff] }
 0x325   : > { %v2534_v57 = vld [vmem:[%s6169_s6 + $0xc10] sm:$0xff] }
 0x326   : > { %5060 = vmatpush1.bf16.msra.mxu1 %v5059_v9  ;;  %v2130_v9 = vadd.f32 1.0, %v5632_v59  ;;  %v2547_v59 = vld [vmem:[%s6169_s6 + $0xc78] sm:$0xff]  ;;  %v5095_v4 = vpack.c.bf16 %v2540_v58, %v2534_v57 }
 0x327   : > { %4884 = vmatpush1.bf16.msra.mxu0 %v4883_v11  ;;  %5062 = vmatprep.subr.bf16.mxu1 %v5061_v12  ;;  %v4901_v11 = vpack.c.bf16 %v2731_v27, %v2725_v60  ;;  %v2724_v12 = vld [vmem:[%s6169_s6 + $0x1200] sm:$0xff]  ;;  %v2553_v27 = vld [vmem:[%s6169_s6 + $0xca8] sm:$0xff]  ;;  %v2839_v57 = vld [vmem:[%s6169_s6 + $0x1598] sm:$0xff] }
 0x328   : > { %4886 = vmatprep.subr.bf16.mxu0 %v4885_v5  ;;  %v5079_v5 = vpack.c.bf16 %v2492_v3, %v2486_v0  ;;  %v4903_v18 = vpack.c.bf16 %v2730_v2, %v2724_v12  ;;  %v7373_v20 = vmul.f32 %v2130_v9, %v2074_v6  ;;  %v2785_v0 = vld [vmem:[%s6169_s6 + $0x13e8] sm:$0xff]  ;;  %v2791_v3 = vld [vmem:[%s6169_s6 + $0x1418] sm:$0xff]  ;;  %v5097_v6 = vpack.c.bf16 %v2553_v27, %v2547_v59  ;;  %v2546_v9 = vld [vmem:[%s6169_s6 + $0xc70] sm:$0xff] }
 0x329   : > { %v2565_v2 = vld [vmem:[%s6169_s6 + $0xd08] sm:$0xff]  ;;  %v2600_v27 = vld [vmem:[%s6169_s6 + $0xe20] sm:$0xff] }
 0x32a   : > { %5064 = vmatpush1.bf16.msra.mxu1 %v5063_v21  ;;  %v2517_v21 = vld [vmem:[%s6169_s6 + $0xb88] sm:$0xff] }
 0x32b   : > { %4888 = vmatpush1.bf16.msra.mxu0 %v4887_v23  ;;  %5066 = vmatprep.subr.bf16.mxu1 %v5065_v24  ;;  %v4905_v23 = vpack.c.bf16 %v2743_v14, %v2737_v13  ;;  %v2736_v24 = vld [vmem:[%s6169_s6 + $0x1260] sm:$0xff]  ;;  %v5085_v29 = vpack.c.bf16 %v2517_v21, %v2511_v17  ;;  %v4921_v13 = vpack.c.bf16 %v2791_v3, %v2785_v0 }
 0x32c   : > { %4890 = vmatprep.subr.bf16.mxu0 %v4889_v19  ;;  %v5083_v19 = vpack.c.bf16 %v2504_v16, %v2498_v61  ;;  %v4907_v34 = vpack.c.bf16 %v2742_v8, %v2736_v24  ;;  %v2784_v14 = vld [vmem:[%s6169_s6 + $0x13e0] sm:$0xff]  ;;  %v2803_v61 = vld [vmem:[%s6169_s6 + $0x1478] sm:$0xff]  ;;  %v5099_v16 = vpack.c.bf16 %v2552_v10, %v2546_v9  ;;  %v2577_v8 = vld [vmem:[%s6169_s6 + $0xd68] sm:$0xff] }
 0x32d   : > { %v2564_v21 = vld [vmem:[%s6169_s6 + $0xd00] sm:$0xff]  ;;  %v2851_v9 = vld [vmem:[%s6169_s6 + $0x15f8] sm:$0xff] }
 0x32e   : > { %5068 = vmatpush1.bf16.msra.mxu1 %v5067_v35  ;;  %v2529_v35 = vld [vmem:[%s6169_s6 + $0xbe8] sm:$0xff]  ;;  %v2832_v3 = vld [vmem:[%s6169_s6 + $0x1560] sm:$0xff] }
 0x32f   : > { %4892 = vmatpush1.bf16.msra.mxu0 %v4891_v37  ;;  %5070 = vmatprep.subr.bf16.mxu1 %v5069_v39  ;;  %v4909_v37 = vpack.c.bf16 %v2755_v40, %v2749_v28  ;;  %v2748_v39 = vld [vmem:[%s6169_s6 + $0x12c0] sm:$0xff]  ;;  %v5089_v48 = vpack.c.bf16 %v2529_v35, %v2523_v33 }
 0x330   : > { %4894 = vmatprep.subr.bf16.mxu0 %v4893_v47  ;;  %v5087_v47 = vpack.c.bf16 %v2516_v32, %v2510_v30  ;;  %v4911_v51 = vpack.c.bf16 %v2754_v41, %v2748_v39  ;;  %v2796_v40 = vld [vmem:[%s6169_s6 + $0x1440] sm:$0xff]  ;;  %v2815_v30 = vld [vmem:[%s6169_s6 + $0x14d8] sm:$0xff]  ;;  %v2589_v41 = vld [vmem:[%s6169_s6 + $0xdc8] sm:$0xff] }
 0x331   : > { %v2576_v35 = vld [vmem:[%s6169_s6 + $0xd60] sm:$0xff] }
 0x332   : > { %5072 = vmatpush1.bf16.msra.mxu1 %v5071_v22  ;;  %v2541_v22 = vld [vmem:[%s6169_s6 + $0xc48] sm:$0xff] }
 0x333   : > { %4896 = vmatpush1.bf16.msra.mxu0 %v4895_v52  ;;  %5074 = vmatprep.subr.bf16.mxu1 %v5073_v31  ;;  %v4913_v52 = vpack.c.bf16 %v2767_v45, %v2761_v43  ;;  %v2760_v31 = vld [vmem:[%s6169_s6 + $0x1320] sm:$0xff]  ;;  %v5093_v56 = vpack.c.bf16 %v2541_v22, %v2535_v50 }
 0x334   : > { %4898 = vmatprep.subr.bf16.mxu0 %v4897_v55  ;;  %v5091_v55 = vpack.c.bf16 %v2528_v38, %v2522_v49  ;;  %v4915_v60 = vpack.c.bf16 %v2766_v36, %v2760_v31  ;;  %v2808_v45 = vld [vmem:[%s6169_s6 + $0x14a0] sm:$0xff]  ;;  %v2827_v49 = vld [vmem:[%s6169_s6 + $0x1538] sm:$0xff]  ;;  %v2601_v36 = vld [vmem:[%s6169_s6 + $0xe28] sm:$0xff] }
 0x335   : > { %v2588_v22 = vld [vmem:[%s6169_s6 + $0xdc0] sm:$0xff] }
 0x336   : > { %5076 = vmatpush1.bf16.msra.mxu1 %v5075_v25  ;;  %v4917_v25 = vpack.c.bf16 %v2779_v26, %v2773_v53  ;;  %v2820_v26 = vld [vmem:[%s6169_s6 + $0x1500] sm:$0xff] }
 0x337   : > { %4900 = vmatpush1.bf16.msra.mxu0 %v4899_v62  ;;  %5078 = vmatprep.subr.bf16.mxu1 %v5077_v63  ;;  %v2772_v62 = vld [vmem:[%s6169_s6 + $0x1380] sm:$0xff]  ;;  %v2778_v63 = vld [vmem:[%s6169_s6 + $0x13b0] sm:$0xff] }
 0x338   : > { %4902 = vmatprep.subr.bf16.mxu0 %v4901_v11  ;;  %v2559_v11 = vld [vmem:[%s6169_s6 + $0xcd8] sm:$0xff]  ;;  %v4919_v12 = vpack.c.bf16 %v2778_v63, %v2772_v62  ;;  %v2613_v63 = vld [vmem:[%s6169_s6 + $0xe88] sm:$0xff] }
 0x339   : > { %v5101_v17 = vpack.c.bf16 %v2565_v2, %v2559_v11  ;;  %v2612_v2 = vld [vmem:[%s6169_s6 + $0xe80] sm:$0xff] }
 0x33a   : > { %3123 = vmatmul.mubr.f32.vlgmr.msra.gmra.mrb[4].mxu0 %v7373_v20  ;;  %5080 = vmatpush1.bf16.msra.mxu1 %v5079_v5  ;;  %v2790_v5 = vld [vmem:[%s6169_s6 + $0x1410] sm:$0xff] }
 0x33b   : > { %5082 = vmatprep.subr.bf16.mxu1 %v5081_v15  ;;  %4904 = vmatpush1.bf16.msra.mxu0 %v4903_v18  ;;  %v2797_v15 = vld [vmem:[%s6169_s6 + $0x1448] sm:$0xff]  ;;  %v2558_v18 = vld [vmem:[%s6169_s6 + $0xcd0] sm:$0xff]  ;;  %v4923_v24 = vpack.c.bf16 %v2790_v5, %v2784_v14 }
 0x33c   : > { %4906 = vmatprep.subr.bf16.mxu0 %v4905_v23  ;;  %v2571_v23 = vld [vmem:[%s6169_s6 + $0xd38] sm:$0xff]  ;;  %v4925_v28 = vpack.c.bf16 %v2803_v61, %v2797_v15  ;;  %v5103_v32 = vpack.c.bf16 %v2564_v21, %v2558_v18  ;;  %v2625_v5 = vld [vmem:[%s6169_s6 + $0xee8] sm:$0xff]  ;;  %v2844_v61 = vld [vmem:[%s6169_s6 + $0x15c0] sm:$0xff] }
 0x33d   : > { %v5105_v33 = vpack.c.bf16 %v2577_v8, %v2571_v23  ;;  %v2863_v18 = vld [vmem:[%s6169_s6 + $0x1658] sm:$0xff]  ;;  %v2624_v8 = vld [vmem:[%s6169_s6 + $0xee0] sm:$0xff] }
 0x33e   : > { %5084 = vmatpush1.bf16.msra.mxu1 %v5083_v19  ;;  %v2802_v19 = vld [vmem:[%s6169_s6 + $0x1470] sm:$0xff] }
 0x33f   : > { %5086 = vmatprep.subr.bf16.mxu1 %v5085_v29  ;;  %4908 = vmatpush1.bf16.msra.mxu0 %v4907_v34  ;;  %v2809_v29 = vld [vmem:[%s6169_s6 + $0x14a8] sm:$0xff]  ;;  %v2570_v34 = vld [vmem:[%s6169_s6 + $0xd30] sm:$0xff]  ;;  %v4927_v39 = vpack.c.bf16 %v2802_v19, %v2796_v40 }
 0x340   : > { %4910 = vmatprep.subr.bf16.mxu0 %v4909_v37  ;;  %v2583_v37 = vld [vmem:[%s6169_s6 + $0xd98] sm:$0xff]  ;;  %v4929_v43 = vpack.c.bf16 %v2815_v30, %v2809_v29  ;;  %v5107_v38 = vpack.c.bf16 %v2576_v35, %v2570_v34  ;;  %v2637_v19 = vld [vmem:[%s6169_s6 + $0xf48] sm:$0xff]  ;;  %v2856_v30 = vld [vmem:[%s6169_s6 + $0x1620] sm:$0xff] }
 0x341   : > { %v5109_v50 = vpack.c.bf16 %v2589_v41, %v2583_v37  ;;  %v2875_v34 = vld [vmem:[%s6169_s6 + $0x16b8] sm:$0xff]  ;;  %v2636_v41 = vld [vmem:[%s6169_s6 + $0xf40] sm:$0xff] }
 0x342   : > { %5088 = vmatpush1.bf16.msra.mxu1 %v5087_v47  ;;  %v2814_v47 = vld [vmem:[%s6169_s6 + $0x14d0] sm:$0xff] }
 0x343   : > { %5090 = vmatprep.subr.bf16.mxu1 %v5089_v48  ;;  %4912 = vmatpush1.bf16.msra.mxu0 %v4911_v51  ;;  %v2821_v48 = vld [vmem:[%s6169_s6 + $0x1508] sm:$0xff]  ;;  %v2582_v51 = vld [vmem:[%s6169_s6 + $0xd90] sm:$0xff]  ;;  %v4931_v31 = vpack.c.bf16 %v2814_v47, %v2808_v45 }
 0x344   : > { %4914 = vmatprep.subr.bf16.mxu0 %v4913_v52  ;;  %v2595_v52 = vld [vmem:[%s6169_s6 + $0xdf8] sm:$0xff]  ;;  %v4933_v53 = vpack.c.bf16 %v2827_v49, %v2821_v48  ;;  %v5111_v58 = vpack.c.bf16 %v2588_v22, %v2582_v51  ;;  %v2649_v47 = vld [vmem:[%s6169_s6 + $0xfa8] sm:$0xff]  ;;  %v2868_v49 = vld [vmem:[%s6169_s6 + $0x1680] sm:$0xff] }
 0x345   : > { %v5113_v59 = vpack.c.bf16 %v2601_v36, %v2595_v52  ;;  %v2887_v51 = vld [vmem:[%s6169_s6 + $0x1718] sm:$0xff]  ;;  %v2648_v36 = vld [vmem:[%s6169_s6 + $0xfa0] sm:$0xff] }
 0x346   : > { %5092 = vmatpush1.bf16.msra.mxu1 %v5091_v55  ;;  %v2826_v55 = vld [vmem:[%s6169_s6 + $0x1530] sm:$0xff] }
 0x347   : > { %5094 = vmatprep.subr.bf16.mxu1 %v5093_v56  ;;  %4916 = vmatpush1.bf16.msra.mxu0 %v4915_v60  ;;  %v2833_v56 = vld [vmem:[%s6169_s6 + $0x1568] sm:$0xff]  ;;  %v2594_v60 = vld [vmem:[%s6169_s6 + $0xdf0] sm:$0xff]  ;;  %v4935_v62 = vpack.c.bf16 %v2826_v55, %v2820_v26 }
 0x348   : > { %4918 = vmatprep.subr.bf16.mxu0 %v4917_v25  ;;  %v2607_v25 = vld [vmem:[%s6169_s6 + $0xe58] sm:$0xff]  ;;  %v4937_v0 = vpack.c.bf16 %v2839_v57, %v2833_v56  ;;  %v5115_v10 = vpack.c.bf16 %v2600_v27, %v2594_v60  ;;  %v2661_v55 = vld [vmem:[%s6169_s6 + $0x1008] sm:$0xff]  ;;  %v2880_v57 = vld [vmem:[%s6169_s6 + $0x16e0] sm:$0xff] }
 0x349   : > { %3336 = vmatmul.mubr.f32.vlgmr.msra.gmra.mrb[6].mxu1 %v7226_v1  ;;  %v5117_v11 = vpack.c.bf16 %v2613_v63, %v2607_v25  ;;  %v2899_v60 = vld [vmem:[%s6169_s6 + $0x1778] sm:$0xff]  ;;  %v2660_v63 = vld [vmem:[%s6169_s6 + $0x1000] sm:$0xff] }
 0x34a   : > { %5096 = vmatpush1.bf16.msra.mxu1 %v5095_v4  ;;  %3406 = vmatprep.mubr.f32.mxu1 %v7232_v54  ;;  %v2838_v4 = vld [vmem:[%s6169_s6 + $0x1590] sm:$0xff] }
 0x34b   : > { %5098 = vmatprep.subr.bf16.mxu1 %v5097_v6  ;;  %4920 = vmatpush1.bf16.msra.mxu0 %v4919_v12  ;;  %v2845_v6 = vld [vmem:[%s6169_s6 + $0x15c8] sm:$0xff]  ;;  %v2606_v12 = vld [vmem:[%s6169_s6 + $0xe50] sm:$0xff]  ;;  %v4939_v14 = vpack.c.bf16 %v2838_v4, %v2832_v3 }
 0x34c   : > { %4922 = vmatprep.subr.bf16.mxu0 %v4921_v13  ;;  %v2619_v13 = vld [vmem:[%s6169_s6 + $0xeb8] sm:$0xff]  ;;  %v4941_v15 = vpack.c.bf16 %v2851_v9, %v2845_v6  ;;  %v5119_v21 = vpack.c.bf16 %v2612_v2, %v2606_v12  ;;  %v2673_v4 = vld [vmem:[%s6169_s6 + $0x1068] sm:$0xff]  ;;  %v2892_v9 = vld [vmem:[%s6169_s6 + $0x1740] sm:$0xff] }
 0x34d   : > { %v5121_v23 = vpack.c.bf16 %v2625_v5, %v2619_v13  ;;  %v2911_v12 = vld [vmem:[%s6169_s6 + $0x17d8] sm:$0xff]  ;;  %v2672_v5 = vld [vmem:[%s6169_s6 + $0x1060] sm:$0xff] }
 0x34e   : > { %5100 = vmatpush1.bf16.msra.mxu1 %v5099_v16  ;;  %v2850_v16 = vld [vmem:[%s6169_s6 + $0x15f0] sm:$0xff] }
 0x34f   : > { %5102 = vmatprep.subr.bf16.mxu1 %v5101_v17  ;;  %4924 = vmatpush1.bf16.msra.mxu0 %v4923_v24  ;;  %v2857_v17 = vld [vmem:[%s6169_s6 + $0x1628] sm:$0xff]  ;;  %v2618_v24 = vld [vmem:[%s6169_s6 + $0xeb0] sm:$0xff]  ;;  %v4943_v40 = vpack.c.bf16 %v2850_v16, %v2844_v61 }
 0x350   : > { %4926 = vmatprep.subr.bf16.mxu0 %v4925_v28  ;;  %v2631_v28 = vld [vmem:[%s6169_s6 + $0xf18] sm:$0xff]  ;;  %v4945_v29 = vpack.c.bf16 %v2863_v18, %v2857_v17  ;;  %v5123_v35 = vpack.c.bf16 %v2624_v8, %v2618_v24  ;;  %v2685_v16 = vld [vmem:[%s6169_s6 + $0x10c8] sm:$0xff]  ;;  %v2904_v18 = vld [vmem:[%s6169_s6 + $0x17a0] sm:$0xff] }
 0x351   : > { %v5125_v37 = vpack.c.bf16 %v2637_v19, %v2631_v28  ;;  %v2159_v24 = vld [vmem:[%s6169_s6 + $0x58] sm:$0xff]  ;;  %v2684_v19 = vld [vmem:[%s6169_s6 + $0x10c0] sm:$0xff] }
 0x352   : > { %5104 = vmatpush1.bf16.msra.mxu1 %v5103_v32  ;;  %v2862_v32 = vld [vmem:[%s6169_s6 + $0x1650] sm:$0xff] }
 0x353   : > { %5106 = vmatprep.subr.bf16.mxu1 %v5105_v33  ;;  %4928 = vmatpush1.bf16.msra.mxu0 %v4927_v39  ;;  %v2869_v33 = vld [vmem:[%s6169_s6 + $0x1688] sm:$0xff]  ;;  %v2630_v39 = vld [vmem:[%s6169_s6 + $0xf10] sm:$0xff]  ;;  %v4947_v45 = vpack.c.bf16 %v2862_v32, %v2856_v30  ;;  %v2691_v30 = vld [vmem:[%s6169_s6 + $0x10f8] sm:$0xff] }
 0x354   : > { %4930 = vmatprep.subr.bf16.mxu0 %v4929_v43  ;;  %v2643_v43 = vld [vmem:[%s6169_s6 + $0xf78] sm:$0xff]  ;;  %v4949_v48 = vpack.c.bf16 %v2875_v34, %v2869_v33  ;;  %v5127_v22 = vpack.c.bf16 %v2636_v41, %v2630_v39  ;;  %v2697_v32 = vld [vmem:[%s6169_s6 + $0x1128] sm:$0xff]  ;;  %v2696_v39 = vld [vmem:[%s6169_s6 + $0x1120] sm:$0xff] }
 0x355   : > { %v5129_v52 = vpack.c.bf16 %v2649_v47, %v2643_v43  ;;  %v2703_v41 = vld [vmem:[%s6169_s6 + $0x1158] sm:$0xff]  ;;  %v2709_v43 = vld [vmem:[%s6169_s6 + $0x1188] sm:$0xff] }
 0x356   : > { %5108 = vmatpush1.bf16.msra.mxu1 %v5107_v38  ;;  %v2874_v38 = vld [vmem:[%s6169_s6 + $0x16b0] sm:$0xff]  ;;  %v5149_v47 = vpack.c.bf16 %v2709_v43, %v2703_v41 }
 0x357   : > { %5110 = vmatprep.subr.bf16.mxu1 %v5109_v50  ;;  %4932 = vmatpush1.bf16.msra.mxu0 %v4931_v31  ;;  %v2881_v50 = vld [vmem:[%s6169_s6 + $0x16e8] sm:$0xff]  ;;  %v2642_v31 = vld [vmem:[%s6169_s6 + $0xf70] sm:$0xff]  ;;  %v4951_v26 = vpack.c.bf16 %v2874_v38, %v2868_v49  ;;  %v2708_v49 = vld [vmem:[%s6169_s6 + $0x1180] sm:$0xff] }
 0x358   : > { %4934 = vmatprep.subr.bf16.mxu0 %v4933_v53  ;;  %v2655_v53 = vld [vmem:[%s6169_s6 + $0xfd8] sm:$0xff]  ;;  %v4953_v56 = vpack.c.bf16 %v2887_v51, %v2881_v50  ;;  %v5131_v27 = vpack.c.bf16 %v2648_v36, %v2642_v31  ;;  %v2721_v50 = vld [vmem:[%s6169_s6 + $0x11e8] sm:$0xff]  ;;  %v2720_v31 = vld [vmem:[%s6169_s6 + $0x11e0] sm:$0xff] }
 0x359   : > { %v5133_v25 = vpack.c.bf16 %v2661_v55, %v2655_v53  ;;  %v2715_v38 = vld [vmem:[%s6169_s6 + $0x11b8] sm:$0xff]  ;;  %v2733_v53 = vld [vmem:[%s6169_s6 + $0x1248] sm:$0xff]  ;;  %v2798_v41 = vld [vmem:[%s6169_s6 + $0x1450] sm:$0xff] }
 0x35a   : > { %5112 = vmatpush1.bf16.msra.mxu1 %v5111_v58  ;;  %v2886_v58 = vld [vmem:[%s6169_s6 + $0x1710] sm:$0xff]  ;;  %v2727_v36 = vld [vmem:[%s6169_s6 + $0x1218] sm:$0xff] }
 0x35b   : > { %5114 = vmatprep.subr.bf16.mxu1 %v5113_v59  ;;  %4936 = vmatpush1.bf16.msra.mxu0 %v4935_v62  ;;  %v2893_v59 = vld [vmem:[%s6169_s6 + $0x1748] sm:$0xff]  ;;  %v2654_v62 = vld [vmem:[%s6169_s6 + $0xfd0] sm:$0xff]  ;;  %v4955_v3 = vpack.c.bf16 %v2886_v58, %v2880_v57  ;;  %v5157_v55 = vpack.c.bf16 %v2733_v53, %v2727_v36  ;;  %v2732_v57 = vld [vmem:[%s6169_s6 + $0x1240] sm:$0xff] }
 0x35c   : > { %4938 = vmatprep.subr.bf16.mxu0 %v4937_v0  ;;  %v2667_v0 = vld [vmem:[%s6169_s6 + $0x1038] sm:$0xff]  ;;  %v4957_v6 = vpack.c.bf16 %v2899_v60, %v2893_v59  ;;  %v5135_v2 = vpack.c.bf16 %v2660_v63, %v2654_v62  ;;  %v2745_v59 = vld [vmem:[%s6169_s6 + $0x12a8] sm:$0xff]  ;;  %v2744_v62 = vld [vmem:[%s6169_s6 + $0x12a0] sm:$0xff] }
 0x35d   : > { %v5137_v13 = vpack.c.bf16 %v2673_v4, %v2667_v0  ;;  %v2739_v58 = vld [vmem:[%s6169_s6 + $0x1278] sm:$0xff]  ;;  %v2757_v0 = vld [vmem:[%s6169_s6 + $0x1308] sm:$0xff] }
 0x35e   : > { %5116 = vmatpush1.bf16.msra.mxu1 %v5115_v10  ;;  %v2898_v10 = vld [vmem:[%s6169_s6 + $0x1770] sm:$0xff]  ;;  %v2751_v63 = vld [vmem:[%s6169_s6 + $0x12d8] sm:$0xff] }
 0x35f   : > { %5118 = vmatprep.subr.bf16.mxu1 %v5117_v11  ;;  %4940 = vmatpush1.bf16.msra.mxu0 %v4939_v14  ;;  %v2905_v11 = vld [vmem:[%s6169_s6 + $0x17a8] sm:$0xff]  ;;  %v2666_v14 = vld [vmem:[%s6169_s6 + $0x1030] sm:$0xff]  ;;  %v4959_v61 = vpack.c.bf16 %v2898_v10, %v2892_v9  ;;  %v5165_v4 = vpack.c.bf16 %v2757_v0, %v2751_v63  ;;  %v2756_v9 = vld [vmem:[%s6169_s6 + $0x1300] sm:$0xff] }
 0x360   : > { %4942 = vmatprep.subr.bf16.mxu0 %v4941_v15  ;;  %v2679_v15 = vld [vmem:[%s6169_s6 + $0x1098] sm:$0xff]  ;;  %v4961_v17 = vpack.c.bf16 %v2911_v12, %v2905_v11  ;;  %v5139_v8 = vpack.c.bf16 %v2672_v5, %v2666_v14  ;;  %v2769_v11 = vld [vmem:[%s6169_s6 + $0x1368] sm:$0xff]  ;;  %v2768_v14 = vld [vmem:[%s6169_s6 + $0x1360] sm:$0xff] }
 0x361   : > { %v5141_v28 = vpack.c.bf16 %v2685_v16, %v2679_v15  ;;  %v2763_v10 = vld [vmem:[%s6169_s6 + $0x1338] sm:$0xff]  ;;  %v2781_v15 = vld [vmem:[%s6169_s6 + $0x13c8] sm:$0xff] }
 0x362   : > { %5120 = vmatpush1.bf16.msra.mxu1 %v5119_v21  ;;  %v2910_v21 = vld [vmem:[%s6169_s6 + $0x17d0] sm:$0xff]  ;;  %v2775_v5 = vld [vmem:[%s6169_s6 + $0x1398] sm:$0xff]  ;;  %v2841_v63 = vld [vmem:[%s6169_s6 + $0x15a8] sm:$0xff] }
 0x363   : > { %5122 = vmatprep.subr.bf16.mxu1 %v5121_v23  ;;  %4944 = vmatpush1.bf16.msra.mxu0 %v4943_v40  ;;  %v2153_v23 = vld [vmem:[%s6169_s6 + $0x28] sm:$0xff]  ;;  %v2678_v40 = vld [vmem:[%s6169_s6 + $0x1090] sm:$0xff]  ;;  %v5173_v16 = vpack.c.bf16 %v2781_v15, %v2775_v5  ;;  %v2823_v53 = vld [vmem:[%s6169_s6 + $0x1518] sm:$0xff] }
 0x364   : > { %4946 = vmatprep.subr.bf16.mxu0 %v4945_v29  ;;  %v4963_v29 = vpack.c.bf16 %v2910_v21, %v2904_v18  ;;  %v5221_v33 = vpack.c.bf16 %v2159_v24, %v2153_v23  ;;  %v5143_v34 = vpack.c.bf16 %v2684_v19, %v2678_v40  ;;  %v2780_v18 = vld [vmem:[%s6169_s6 + $0x13c0] sm:$0xff]  ;;  %v2787_v21 = vld [vmem:[%s6169_s6 + $0x13f8] sm:$0xff]  ;;  %v2793_v23 = vld [vmem:[%s6169_s6 + $0x1428] sm:$0xff]  ;;  %v1204_v24 = vsub.s32 6, %v6867_v7 }
 0x365   : > { %v5177_v40 = vpack.c.bf16 %v2793_v23, %v2787_v21  ;;  %v2786_v19 = vld [vmem:[%s6169_s6 + $0x13f0] sm:$0xff] }
 0x366   : > { %5124 = vmatpush1.bf16.msra.mxu1 %v5123_v35  ;;  %v5145_v35 = vpack.c.bf16 %v2697_v32, %v2691_v30  ;;  %v2799_v30 = vld [vmem:[%s6169_s6 + $0x1458] sm:$0xff]  ;;  %v2805_v32 = vld [vmem:[%s6169_s6 + $0x1488] sm:$0xff]  ;;  %v2846_v15 = vld [vmem:[%s6169_s6 + $0x15d0] sm:$0xff] }
 0x367   : > { %5126 = vmatprep.subr.bf16.mxu1 %v5125_v37  ;;  %4948 = vmatpush1.bf16.msra.mxu0 %v4947_v45  ;;  %v2690_v37 = vld [vmem:[%s6169_s6 + $0x10f0] sm:$0xff] }
 0x368   : > { %4950 = vmatprep.subr.bf16.mxu0 %v4949_v48  ;;  %v5147_v45 = vpack.c.bf16 %v2696_v39, %v2690_v37  ;;  %v2702_v48 = vld [vmem:[%s6169_s6 + $0x1150] sm:$0xff]  ;;  %v5181_v39 = vpack.c.bf16 %v2805_v32, %v2799_v30  ;;  %v2876_v32 = vld [vmem:[%s6169_s6 + $0x16c0] sm:$0xff] }
 0x369   : > { %v5151_v51 = vpack.c.bf16 %v2708_v49, %v2702_v48  ;;  %v2858_v23 = vld [vmem:[%s6169_s6 + $0x1630] sm:$0xff] }
 0x36a   : > { %5128 = vmatpush1.bf16.msra.mxu1 %v5127_v22  ;;  %v5153_v22 = vpack.c.bf16 %v2721_v50, %v2715_v38  ;;  %v2870_v30 = vld [vmem:[%s6169_s6 + $0x1690] sm:$0xff] }
 0x36b   : > { %5130 = vmatprep.subr.bf16.mxu1 %v5129_v52  ;;  %4952 = vmatpush1.bf16.msra.mxu0 %v4951_v26  ;;  %v2714_v52 = vld [vmem:[%s6169_s6 + $0x11b0] sm:$0xff] }
 0x36c   : > { %4954 = vmatprep.subr.bf16.mxu0 %v4953_v56  ;;  %v5155_v26 = vpack.c.bf16 %v2720_v31, %v2714_v52  ;;  %v2726_v56 = vld [vmem:[%s6169_s6 + $0x1210] sm:$0xff]  ;;  %v2816_v31 = vld [vmem:[%s6169_s6 + $0x14e0] sm:$0xff] }
 0x36d   : > { %v5159_v60 = vpack.c.bf16 %v2732_v57, %v2726_v56  ;;  %v2810_v52 = vld [vmem:[%s6169_s6 + $0x14b0] sm:$0xff] }
 0x36e   : > { %5132 = vmatpush1.bf16.msra.mxu1 %v5131_v27  ;;  %v5161_v27 = vpack.c.bf16 %v2745_v59, %v2739_v58  ;;  %v5187_v57 = vpack.c.bf16 %v2816_v31, %v2810_v52  ;;  %v2882_v52 = vld [vmem:[%s6169_s6 + $0x16f0] sm:$0xff]  ;;  %v2888_v31 = vld [vmem:[%s6169_s6 + $0x1720] sm:$0xff] }
 0x36f   : > { %5134 = vmatprep.subr.bf16.mxu1 %v5133_v25  ;;  %4956 = vmatpush1.bf16.msra.mxu0 %v4955_v3  ;;  %v2738_v25 = vld [vmem:[%s6169_s6 + $0x1270] sm:$0xff] }
 0x370   : > { %4958 = vmatprep.subr.bf16.mxu0 %v4957_v6  ;;  %v5163_v3 = vpack.c.bf16 %v2744_v62, %v2738_v25  ;;  %v2750_v6 = vld [vmem:[%s6169_s6 + $0x12d0] sm:$0xff]  ;;  %v2835_v62 = vld [vmem:[%s6169_s6 + $0x1578] sm:$0xff] }
 0x371   : > { %v5167_v12 = vpack.c.bf16 %v2756_v9, %v2750_v6  ;;  %v5193_v9 = vpack.c.bf16 %v2841_v63, %v2835_v62  ;;  %v2900_v62 = vld [vmem:[%s6169_s6 + $0x1780] sm:$0xff] }
 0x372   : > { %5136 = vmatpush1.bf16.msra.mxu1 %v5135_v2  ;;  %v5169_v2 = vpack.c.bf16 %v2769_v11, %v2763_v10  ;;  %v2834_v10 = vld [vmem:[%s6169_s6 + $0x1570] sm:$0xff]  ;;  %v2840_v11 = vld [vmem:[%s6169_s6 + $0x15a0] sm:$0xff] }
 0x373   : > { %5138 = vmatprep.subr.bf16.mxu1 %v5137_v13  ;;  %4960 = vmatpush1.bf16.msra.mxu0 %v4959_v61  ;;  %v2762_v13 = vld [vmem:[%s6169_s6 + $0x1330] sm:$0xff]  ;;  %v2176_v63 = vld [vmem:[%s6169_s6 + $0xe0] sm:$0xff] }
 0x374   : > { %4962 = vmatprep.subr.bf16.mxu0 %v4961_v17  ;;  %v5171_v61 = vpack.c.bf16 %v2768_v14, %v2762_v13  ;;  %v2774_v17 = vld [vmem:[%s6169_s6 + $0x1390] sm:$0xff]  ;;  %v2853_v13 = vld [vmem:[%s6169_s6 + $0x1608] sm:$0xff]  ;;  %v5195_v14 = vpack.c.bf16 %v2840_v11, %v2834_v10  ;;  %v2195_v10 = vld [vmem:[%s6169_s6 + $0x178] sm:$0xff] }
 0x376   : > { %5140 = vmatpush1.bf16.msra.mxu1 %v5139_v8  ;;  %v5175_v8 = vpack.c.bf16 %v2780_v18, %v2774_v17  ;;  %v2865_v17 = vld [vmem:[%s6169_s6 + $0x1668] sm:$0xff] }
 0x377   : > { %5142 = vmatprep.subr.bf16.mxu1 %v5141_v28  ;;  %4964 = vmatpush1.bf16.msra.mxu0 %v4963_v29  ;;  %v1208_v28 = vsub.s32 7, %v6867_v7  ;;  %v2792_v29 = vld [vmem:[%s6169_s6 + $0x1420] sm:$0xff] }
 0x378   : > { %5222 = vmatprep.subr.bf16.mxu0 %v5221_v33  ;;  %v5649_v33 = vld [vmem:[%s6167_s7] sm:$0xff]  ;;  %v5179_v37 = vpack.c.bf16 %v2792_v29, %v2786_v19  ;;  %v2804_v7 = vld [vmem:[%s6169_s6 + $0x1480] sm:$0xff] }
 0x379   : > { %v5183_v50 = vpack.c.bf16 %v2804_v7, %v2798_v41 }
 0x37a   : > { %5144 = vmatpush1.bf16.msra.mxu1 %v5143_v34  ;;  %v1205_v34 = vrot.slane %v5649_v33, %v1204_v24  ;;  %v2864_v24 = vld [vmem:[%s6169_s6 + $0x1660] sm:$0xff] }
 0x37b   : > { %5146 = vmatprep.subr.bf16.mxu1 %v5145_v35  ;;  %v1209_v35 = vrot.slane %v5649_v33, %v1208_v28  ;;  %v2877_v28 = vld [vmem:[%s6169_s6 + $0x16c8] sm:$0xff] }
 0x37e   : > { %5148 = vmatpush1.bf16.msra.mxu1 %v5147_v45  ;;  %v2811_v45 = vld [vmem:[%s6169_s6 + $0x14b8] sm:$0xff] }
 0x37f   : > { %5150 = vmatprep.subr.bf16.mxu1 %v5149_v47  ;;  %v2817_v47 = vld [vmem:[%s6169_s6 + $0x14e8] sm:$0xff] }
 0x382   : > { %5152 = vmatpush1.bf16.msra.mxu1 %v5151_v51 }
 0x383   : > { %5154 = vmatprep.subr.bf16.mxu1 %v5153_v22  ;;  %v5185_v22 = vpack.c.bf16 %v2817_v47, %v2811_v45  ;;  %v2165_v45 = vld [vmem:[%s6169_s6 + $0x88] sm:$0xff]  ;;  %v2171_v47 = vld [vmem:[%s6169_s6 + $0xb8] sm:$0xff] }
 0x386   : > { %5156 = vmatpush1.bf16.msra.mxu1 %v5155_v26  ;;  %v2829_v26 = vld [vmem:[%s6169_s6 + $0x1548] sm:$0xff] }
 0x387   : > { %5158 = vmatprep.subr.bf16.mxu1 %v5157_v55  ;;  %v5189_v59 = vpack.c.bf16 %v2829_v26, %v2823_v53  ;;  %v5225_v26 = vpack.c.bf16 %v2171_v47, %v2165_v45  ;;  %v2236_v47 = vld [vmem:[%s6169_s6 + $0x2c0] sm:$0xff] }
 0x389   : > { %3407 = vmatmul.mubr.f32.vlgmr.msra.gmra.mrb[6].mxu1 %v7373_v20 }
 0x38a   : > { %5160 = vmatpush1.bf16.msra.mxu1 %v5159_v60  ;;  %v2822_v60 = vld [vmem:[%s6169_s6 + $0x1510] sm:$0xff] }
 0x38b   : > { %5162 = vmatprep.subr.bf16.mxu1 %v5161_v27  ;;  %v2828_v27 = vld [vmem:[%s6169_s6 + $0x1540] sm:$0xff] }
 0x38e   : > { %5164 = vmatpush1.bf16.msra.mxu1 %v5163_v3 }
 0x38f   : > { %5166 = vmatprep.subr.bf16.mxu1 %v5165_v4  ;;  %v5191_v4 = vpack.c.bf16 %v2828_v27, %v2822_v60 }
 0x392   : > { %5168 = vmatpush1.bf16.msra.mxu1 %v5167_v12 }
 0x393   : > { %5170 = vmatprep.subr.bf16.mxu1 %v5169_v2  ;;  %v2847_v2 = vld [vmem:[%s6169_s6 + $0x15d8] sm:$0xff] }
 0x394   : > { %v5197_v5 = vpack.c.bf16 %v2853_v13, %v2847_v2  ;;  %v2906_v2 = vld [vmem:[%s6169_s6 + $0x17b0] sm:$0xff]  ;;  %v2912_v13 = vld [vmem:[%s6169_s6 + $0x17e0] sm:$0xff] }
 0x396   : > { %5172 = vmatpush1.bf16.msra.mxu1 %v5171_v61  ;;  %v2852_v61 = vld [vmem:[%s6169_s6 + $0x1600] sm:$0xff] }
 0x397   : > { %5174 = vmatprep.subr.bf16.mxu1 %v5173_v16  ;;  %v2859_v16 = vld [vmem:[%s6169_s6 + $0x1638] sm:$0xff]  ;;  %v5199_v18 = vpack.c.bf16 %v2852_v61, %v2846_v15  ;;  %v2194_v15 = vld [vmem:[%s6169_s6 + $0x170] sm:$0xff]  ;;  %v2201_v61 = vld [vmem:[%s6169_s6 + $0x1a8] sm:$0xff] }
 0x398   : > { %v5201_v21 = vpack.c.bf16 %v2865_v17, %v2859_v16  ;;  %v2207_v16 = vld [vmem:[%s6169_s6 + $0x1d8] sm:$0xff]  ;;  %v5219_v17 = vpack.c.bf16 %v2912_v13, %v2906_v2  ;;  %v2296_v13 = vld [vmem:[%s6169_s6 + $0x4a0] sm:$0xff] }
 0x39a   : > { %5176 = vmatpush1.bf16.msra.mxu1 %v5175_v8  ;;  %v2871_v8 = vld [vmem:[%s6169_s6 + $0x1698] sm:$0xff] }
 0x39b   : > { %5178 = vmatprep.subr.bf16.mxu1 %v5177_v40  ;;  %v5203_v40 = vpack.c.bf16 %v2864_v24, %v2858_v23  ;;  %v5205_v29 = vpack.c.bf16 %v2877_v28, %v2871_v8  ;;  %v2200_v23 = vld [vmem:[%s6169_s6 + $0x1a0] sm:$0xff]  ;;  %v2206_v24 = vld [vmem:[%s6169_s6 + $0x1d0] sm:$0xff]  ;;  %v2213_v8 = vld [vmem:[%s6169_s6 + $0x208] sm:$0xff] }
 0x39c   : > { %v2065_v43 = vpop.f32.mrb[4].mxu1  ;;  %v2219_v28 = vld [vmem:[%s6169_s6 + $0x238] sm:$0xff] }
 0x39d   : > { %v7543_v48 = vadd.f32 %v2065_v43, %v1205_v34  ;;  %v2067_v49 = vpop.f32.mrb[5].mxu1  ;;  %v2889_v43 = vld [vmem:[%s6169_s6 + $0x1728] sm:$0xff] }
 0x39e   : > { %v7545_v38 = vadd.f32 %v2067_v49, %v1209_v35  ;;  %5180 = vmatpush1.bf16.msra.mxu1 %v5179_v37  ;;  %v2152_v35 = vld [vmem:[%s6169_s6 + $0x20] sm:$0xff]  ;;  %v2158_v37 = vld [vmem:[%s6169_s6 + $0x50] sm:$0xff] }
 0x39f   : > { %v2084_v51 = vmul.f32 %v7543_v48, %v7543_v48  ;;  %5182 = vmatprep.subr.bf16.mxu1 %v5181_v39  ;;  %v2883_v39 = vld [vmem:[%s6169_s6 + $0x16f8] sm:$0xff]  ;;  %v2076_v49 = vmul.f32 0.5, %v7543_v48 }
 0x3a0   : > { %v2085_v36 = vmul.f32 %v7545_v38, %v7545_v38  ;;  %v2077_v41 = vmul.f32 0.5, %v7545_v38  ;;  %v5209_v53 = vpack.c.bf16 %v2889_v43, %v2883_v39  ;;  %v2230_v39 = vld [vmem:[%s6169_s6 + $0x290] sm:$0xff] }
 0x3a1   : > { %v2092_v55 = vmul.f32 %v7543_v48, %v2084_v51 }
 0x3a2   : > { %v2093_v56 = vmul.f32 %v7545_v38, %v2085_v36  ;;  %5184 = vmatpush1.bf16.msra.mxu1 %v5183_v50  ;;  %v5207_v50 = vpack.c.bf16 %v2876_v32, %v2870_v30  ;;  %v2218_v30 = vld [vmem:[%s6169_s6 + $0x230] sm:$0xff]  ;;  %v2225_v32 = vld [vmem:[%s6169_s6 + $0x268] sm:$0xff] }
 0x3a3   : > { %v2100_v58 = vmul.f32 0.044715, %v2092_v55  ;;  %5186 = vmatprep.subr.bf16.mxu1 %v5185_v22  ;;  %v5223_v22 = vpack.c.bf16 %v2158_v37, %v2152_v35  ;;  %v2170_v55 = vld [vmem:[%s6169_s6 + $0xb0] sm:$0xff]  ;;  %v2224_v37 = vld [vmem:[%s6169_s6 + $0x260] sm:$0xff] }
 0x3a4   : > { %v2101_v25 = vmul.f32 0.044715, %v2093_v56  ;;  %v2901_v56 = vld [vmem:[%s6169_s6 + $0x1788] sm:$0xff]  ;;  %v5247_v43 = vpack.c.bf16 %v2230_v39, %v2224_v37  ;;  %v2351_v37 = vld [vmem:[%s6169_s6 + $0x658] sm:$0xff] }
 0x3a5   : > { %v2108_v0 = vadd.f32 %v7543_v48, %v2100_v58  ;;  %v2895_v48 = vld [vmem:[%s6169_s6 + $0x1758] sm:$0xff] }
 0x3a6   : > { %v2109_v3 = vadd.f32 %v7545_v38, %v2101_v25  ;;  %5188 = vmatpush1.bf16.msra.mxu1 %v5187_v57  ;;  %v2164_v38 = vld [vmem:[%s6169_s6 + $0x80] sm:$0xff]  ;;  %v2177_v57 = vld [vmem:[%s6169_s6 + $0xe8] sm:$0xff]  ;;  %v2183_v58 = vld [vmem:[%s6169_s6 + $0x118] sm:$0xff]  ;;  %v5213_v27 = vpack.c.bf16 %v2901_v56, %v2895_v48 }
 0x3a7   : > { %v2116_v6 = vmul.f32 0.7978845, %v2108_v0  ;;  %5190 = vmatprep.subr.bf16.mxu1 %v5189_v59  ;;  %v5211_v59 = vpack.c.bf16 %v2888_v31, %v2882_v52  ;;  %v5227_v60 = vpack.c.bf16 %v2170_v55, %v2164_v38  ;;  %v2894_v25 = vld [vmem:[%s6169_s6 + $0x1750] sm:$0xff]  ;;  %v5229_v0 = vpack.c.bf16 %v2183_v58, %v2177_v57  ;;  %v2248_v38 = vld [vmem:[%s6169_s6 + $0x320] sm:$0xff]  ;;  %v2267_v55 = vld [vmem:[%s6169_s6 + $0x3b8] sm:$0xff] }
 0x3a8   : > { %v2117_v12 = vmul.f32 0.7978845, %v2109_v3  ;;  %v2182_v3 = vld [vmem:[%s6169_s6 + $0x110] sm:$0xff]  ;;  %v2260_v57 = vld [vmem:[%s6169_s6 + $0x380] sm:$0xff] }
 0x3a9   : > { %5633 = vtanh.f32 %v2116_v6  ;;  %v2913_v6 = vld [vmem:[%s6169_s6 + $0x17e8] sm:$0xff]  ;;  %v5231_v11 = vpack.c.bf16 %v2182_v3, %v2176_v63  ;;  %v2266_v58 = vld [vmem:[%s6169_s6 + $0x3b0] sm:$0xff]  ;;  %v2291_v3 = vld [vmem:[%s6169_s6 + $0x478] sm:$0xff] }
 0x3aa   : > { %5192 = vmatpush1.bf16.msra.mxu1 %v5191_v4  ;;  %5635 = vtanh.f32 %v2117_v12  ;;  %v2907_v4 = vld [vmem:[%s6169_s6 + $0x17b8] sm:$0xff]  ;;  %v2278_v63 = vld [vmem:[%s6169_s6 + $0x410] sm:$0xff] }
 0x3ab   : > { %5194 = vmatprep.subr.bf16.mxu1 %v5193_v9  ;;  %v2189_v9 = vld [vmem:[%s6169_s6 + $0x148] sm:$0xff]  ;;  %v5217_v12 = vpack.c.bf16 %v2913_v6, %v2907_v4 }
 0x3ae   : > { %5196 = vmatpush1.bf16.msra.mxu1 %v5195_v14  ;;  %v5233_v14 = vpack.c.bf16 %v2195_v10, %v2189_v9  ;;  %v2284_v9 = vld [vmem:[%s6169_s6 + $0x440] sm:$0xff]  ;;  %v2290_v10 = vld [vmem:[%s6169_s6 + $0x470] sm:$0xff] }
 0x3af   : > { %5198 = vmatprep.subr.bf16.mxu1 %v5197_v5  ;;  %v2188_v5 = vld [vmem:[%s6169_s6 + $0x140] sm:$0xff] }
 0x3b2   : > { %5200 = vmatpush1.bf16.msra.mxu1 %v5199_v18  ;;  %v5235_v18 = vpack.c.bf16 %v2194_v15, %v2188_v5  ;;  %v2309_v5 = vld [vmem:[%s6169_s6 + $0x508] sm:$0xff]  ;;  %v2315_v15 = vld [vmem:[%s6169_s6 + $0x538] sm:$0xff] }
 0x3b3   : > { %v5634_v19 = vpop.eup %5633  ;;  %5202 = vmatprep.subr.bf16.mxu1 %v5201_v21  ;;  %v5237_v21 = vpack.c.bf16 %v2207_v16, %v2201_v61  ;;  %v5273_v16 = vpack.c.bf16 %v2315_v15, %v2309_v5  ;;  %v2422_v5 = vld [vmem:[%s6169_s6 + $0x890] sm:$0xff]  ;;  %v2429_v15 = vld [vmem:[%s6169_s6 + $0x8c8] sm:$0xff] }
 0x3b4   : > { %v5636_v33 = vpop.eup %5635  ;;  %v2132_v34 = vadd.f32 1.0, %v5634_v19  ;;  %v5241_v19 = vpack.c.bf16 %v2219_v28, %v2213_v8  ;;  %v2320_v28 = vld [vmem:[%s6169_s6 + $0x560] sm:$0xff] }
 0x3b5   : > { %v2133_v7 = vadd.f32 1.0, %v5636_v33  ;;  %v2231_v33 = vld [vmem:[%s6169_s6 + $0x298] sm:$0xff] }
 0x3b6   : > { %5204 = vmatpush1.bf16.msra.mxu1 %v5203_v40  ;;  %v7590_v36 = vmul.f32 %v2132_v34, %v2076_v49  ;;  %v5239_v40 = vpack.c.bf16 %v2206_v24, %v2200_v23  ;;  %v5245_v35 = vpack.c.bf16 %v2231_v33, %v2225_v32  ;;  %v2242_v49 = vld [vmem:[%s6169_s6 + $0x2f0] sm:$0xff]  ;;  %v2327_v23 = vld [vmem:[%s6169_s6 + $0x598] sm:$0xff]  ;;  %v2332_v33 = vld [vmem:[%s6169_s6 + $0x5c0] sm:$0xff] }
 0x3b7   : > { %v7585_v51 = vmul.f32 %v2133_v7, %v2077_v41  ;;  %5206 = vmatprep.subr.bf16.mxu1 %v5205_v29  ;;  %v2212_v29 = vld [vmem:[%s6169_s6 + $0x200] sm:$0xff]  ;;  %v2237_v41 = vld [vmem:[%s6169_s6 + $0x2c8] sm:$0xff]  ;;  %v2243_v7 = vld [vmem:[%s6169_s6 + $0x2f8] sm:$0xff]  ;;  %v5251_v52 = vpack.c.bf16 %v2242_v49, %v2236_v47 }
 0x3b8   : > { %v5243_v34 = vpack.c.bf16 %v2218_v30, %v2212_v29  ;;  %v5249_v45 = vpack.c.bf16 %v2243_v7, %v2237_v41  ;;  %v2339_v29 = vld [vmem:[%s6169_s6 + $0x5f8] sm:$0xff]  ;;  %v2344_v7 = vld [vmem:[%s6169_s6 + $0x620] sm:$0xff] }
 0x3b9   : > { %3193 = vmatprep.mubr.f32.mxu0 %v7585_v51  ;;  %3477 = vmatprep.mubr.f32.mxu1 %v7585_v51  ;;  %v2363_v47 = vld [vmem:[%s6169_s6 + $0x6b8] sm:$0xff] }
 0x3ba   : > { %3194 = vmatmul.mubr.f32.vlgmr.msra.gmra.mrb[4].mxu0 %v7590_v36  ;;  %5208 = vmatpush1.bf16.msra.mxu1 %v5207_v50  ;;  %v2249_v50 = vld [vmem:[%s6169_s6 + $0x328] sm:$0xff] }
 0x3bb   : > { %5224 = vmatpush1.bf16.msra.mxu0 %v5223_v22  ;;  %3548 = vmatprep.mubr.f32.mxu0 %v6925_v44  ;;  %v5215_v44 = vpack.c.bf16 %v2900_v62, %v2894_v25  ;;  %v2255_v22 = vld [vmem:[%s6169_s6 + $0x358] sm:$0xff]  ;;  %v2272_v62 = vld [vmem:[%s6169_s6 + $0x3e0] sm:$0xff] }
 0x3bc   : > { %5210 = vmatprep.subr.bf16.mxu1 %v5209_v53  ;;  %5226 = vmatprep.subr.bf16.mxu0 %v5225_v26  ;;  %v5253_v31 = vpack.c.bf16 %v2255_v22, %v2249_v50  ;;  %v2254_v53 = vld [vmem:[%s6169_s6 + $0x350] sm:$0xff]  ;;  %v2261_v26 = vld [vmem:[%s6169_s6 + $0x388] sm:$0xff]  ;;  %v5263_v4 = vpack.c.bf16 %v2278_v63, %v2272_v62  ;;  %v2356_v22 = vld [vmem:[%s6169_s6 + $0x680] sm:$0xff] }
 0x3bd   : > { %v5255_v48 = vpack.c.bf16 %v2254_v53, %v2248_v38  ;;  %v5257_v56 = vpack.c.bf16 %v2267_v55, %v2261_v26  ;;  %v2375_v38 = vld [vmem:[%s6169_s6 + $0x718] sm:$0xff]  ;;  %v2368_v55 = vld [vmem:[%s6169_s6 + $0x6e0] sm:$0xff] }
 0x3be   : > { %5212 = vmatpush1.bf16.msra.mxu1 %v5211_v59  ;;  %v2273_v59 = vld [vmem:[%s6169_s6 + $0x3e8] sm:$0xff]  ;;  %v2392_v63 = vld [vmem:[%s6169_s6 + $0x7a0] sm:$0xff] }
 0x3bf   : > { %5228 = vmatpush1.bf16.msra.mxu0 %v5227_v60  ;;  %5214 = vmatprep.subr.bf16.mxu1 %v5213_v27  ;;  %v2279_v60 = vld [vmem:[%s6169_s6 + $0x418] sm:$0xff]  ;;  %v5259_v27 = vpack.c.bf16 %v2266_v58, %v2260_v57 }
 0x3c0   : > { %5230 = vmatprep.subr.bf16.mxu0 %v5229_v0  ;;  %v5261_v25 = vpack.c.bf16 %v2279_v60, %v2273_v59  ;;  %v2285_v0 = vld [vmem:[%s6169_s6 + $0x448] sm:$0xff]  ;;  %v2387_v57 = vld [vmem:[%s6169_s6 + $0x778] sm:$0xff]  ;;  %v2380_v59 = vld [vmem:[%s6169_s6 + $0x740] sm:$0xff] }
 0x3c1   : > { %v5265_v6 = vpack.c.bf16 %v2291_v3, %v2285_v0  ;;  %v2386_v60 = vld [vmem:[%s6169_s6 + $0x770] sm:$0xff]  ;;  %v2405_v3 = vld [vmem:[%s6169_s6 + $0x808] sm:$0xff] }
 0x3c2   : > { %5216 = vmatpush1.bf16.msra.mxu1 %v5215_v44  ;;  %v2297_v44 = vld [vmem:[%s6169_s6 + $0x4a8] sm:$0xff]  ;;  %v2398_v0 = vld [vmem:[%s6169_s6 + $0x7d0] sm:$0xff] }
 0x3c3   : > { %5232 = vmatpush1.bf16.msra.mxu0 %v5231_v11  ;;  %5218 = vmatprep.subr.bf16.mxu1 %v5217_v12  ;;  %v2303_v11 = vld [vmem:[%s6169_s6 + $0x4d8] sm:$0xff]  ;;  %v5267_v12 = vpack.c.bf16 %v2290_v10, %v2284_v9  ;;  %v2404_v10 = vld [vmem:[%s6169_s6 + $0x800] sm:$0xff] }
 0x3c4   : > { %5234 = vmatprep.subr.bf16.mxu0 %v5233_v14  ;;  %v5269_v2 = vpack.c.bf16 %v2303_v11, %v2297_v44  ;;  %v2302_v14 = vld [vmem:[%s6169_s6 + $0x4d0] sm:$0xff]  ;;  %v2417_v11 = vld [vmem:[%s6169_s6 + $0x868] sm:$0xff] }
 0x3c5   : > { %v5271_v61 = vpack.c.bf16 %v2302_v14, %v2296_v13  ;;  %v2410_v44 = vld [vmem:[%s6169_s6 + $0x830] sm:$0xff]  ;;  %v2416_v14 = vld [vmem:[%s6169_s6 + $0x860] sm:$0xff] }
 0x3c6   : > { %5220 = vmatpush1.bf16.msra.mxu1 %v5219_v17  ;;  %v2308_v17 = vld [vmem:[%s6169_s6 + $0x500] sm:$0xff] }
 0x3c7   : > { %5236 = vmatpush1.bf16.msra.mxu0 %v5235_v18  ;;  %v2314_v18 = vld [vmem:[%s6169_s6 + $0x530] sm:$0xff] }
 0x3c8   : > { %5238 = vmatprep.subr.bf16.mxu0 %v5237_v21  ;;  %v2321_v21 = vld [vmem:[%s6169_s6 + $0x568] sm:$0xff]  ;;  %v5275_v24 = vpack.c.bf16 %v2314_v18, %v2308_v17  ;;  %v2428_v18 = vld [vmem:[%s6169_s6 + $0x8c0] sm:$0xff] }
 0x3c9   : > { %3478 = vmatmul.mubr.f32.vlgmr.msra.gmra.mrb[6].mxu1 %v7590_v36  ;;  %v5277_v8 = vpack.c.bf16 %v2327_v23, %v2321_v21  ;;  %v2434_v21 = vld [vmem:[%s6169_s6 + $0x8f0] sm:$0xff]  ;;  %v2441_v23 = vld [vmem:[%s6169_s6 + $0x928] sm:$0xff] }
 0x3cb   : > { %5240 = vmatpush1.bf16.msra.mxu0 %v5239_v40  ;;  %v2326_v40 = vld [vmem:[%s6169_s6 + $0x590] sm:$0xff] }
 0x3cc   : > { %5242 = vmatprep.subr.bf16.mxu0 %v5241_v19  ;;  %v2333_v19 = vld [vmem:[%s6169_s6 + $0x5c8] sm:$0xff]  ;;  %v5279_v30 = vpack.c.bf16 %v2326_v40, %v2320_v28  ;;  %v2440_v40 = vld [vmem:[%s6169_s6 + $0x920] sm:$0xff] }
 0x3cd   : > { %v5281_v32 = vpack.c.bf16 %v2339_v29, %v2333_v19  ;;  %v2446_v19 = vld [vmem:[%s6169_s6 + $0x950] sm:$0xff]  ;;  %v2453_v29 = vld [vmem:[%s6169_s6 + $0x988] sm:$0xff] }
 0x3cf   : > { %5244 = vmatpush1.bf16.msra.mxu0 %v5243_v34  ;;  %v2338_v34 = vld [vmem:[%s6169_s6 + $0x5f0] sm:$0xff] }
 0x3d0   : > { %5246 = vmatprep.subr.bf16.mxu0 %v5245_v35  ;;  %v2345_v35 = vld [vmem:[%s6169_s6 + $0x628] sm:$0xff]  ;;  %v5283_v39 = vpack.c.bf16 %v2338_v34, %v2332_v33  ;;  %v2452_v34 = vld [vmem:[%s6169_s6 + $0x980] sm:$0xff] }
 0x3d1   : > { %v5285_v41 = vpack.c.bf16 %v2351_v37, %v2345_v35  ;;  %v2458_v35 = vld [vmem:[%s6169_s6 + $0x9b0] sm:$0xff]  ;;  %v2465_v37 = vld [vmem:[%s6169_s6 + $0x9e8] sm:$0xff] }
 0x3d3   : > { %5248 = vmatpush1.bf16.msra.mxu0 %v5247_v43  ;;  %v2350_v43 = vld [vmem:[%s6169_s6 + $0x650] sm:$0xff] }
 0x3d4   : > { %5250 = vmatprep.subr.bf16.mxu0 %v5249_v45  ;;  %v2357_v45 = vld [vmem:[%s6169_s6 + $0x688] sm:$0xff]  ;;  %v5287_v49 = vpack.c.bf16 %v2350_v43, %v2344_v7  ;;  %v2464_v43 = vld [vmem:[%s6169_s6 + $0x9e0] sm:$0xff] }
 0x3d5   : > { %v5289_v50 = vpack.c.bf16 %v2363_v47, %v2357_v45  ;;  %v2470_v45 = vld [vmem:[%s6169_s6 + $0xa10] sm:$0xff]  ;;  %v2477_v47 = vld [vmem:[%s6169_s6 + $0xa48] sm:$0xff] }
 0x3d7   : > { %5252 = vmatpush1.bf16.msra.mxu0 %v5251_v52  ;;  %v2362_v52 = vld [vmem:[%s6169_s6 + $0x6b0] sm:$0xff] }
 0x3d8   : > { %5254 = vmatprep.subr.bf16.mxu0 %v5253_v31  ;;  %v2369_v31 = vld [vmem:[%s6169_s6 + $0x6e8] sm:$0xff]  ;;  %v5291_v53 = vpack.c.bf16 %v2362_v52, %v2356_v22  ;;  %v2476_v52 = vld [vmem:[%s6169_s6 + $0xa40] sm:$0xff] }
 0x3d9   : > { %v5293_v26 = vpack.c.bf16 %v2375_v38, %v2369_v31  ;;  %v2482_v31 = vld [vmem:[%s6169_s6 + $0xa70] sm:$0xff]  ;;  %v2489_v38 = vld [vmem:[%s6169_s6 + $0xaa8] sm:$0xff] }
 0x3db   : > { %5256 = vmatpush1.bf16.msra.mxu0 %v5255_v48  ;;  %v2374_v48 = vld [vmem:[%s6169_s6 + $0x710] sm:$0xff] }
 0x3dc   : > { %5258 = vmatprep.subr.bf16.mxu0 %v5257_v56  ;;  %v2381_v56 = vld [vmem:[%s6169_s6 + $0x748] sm:$0xff]  ;;  %v5295_v58 = vpack.c.bf16 %v2374_v48, %v2368_v55  ;;  %v2488_v48 = vld [vmem:[%s6169_s6 + $0xaa0] sm:$0xff] }
 0x3df   : > { %5260 = vmatpush1.bf16.msra.mxu0 %v5259_v27  ;;  %v2399_v27 = vld [vmem:[%s6169_s6 + $0x7d8] sm:$0xff] }
 0x3e0   : > { %5262 = vmatprep.subr.bf16.mxu0 %v5261_v25  ;;  %v5299_v25 = vpack.c.bf16 %v2386_v60, %v2380_v59  ;;  %v2500_v60 = vld [vmem:[%s6169_s6 + $0xb00] sm:$0xff] }
 0x3e3   : > { %5264 = vmatpush1.bf16.msra.mxu0 %v5263_v4  ;;  %v2411_v4 = vld [vmem:[%s6169_s6 + $0x838] sm:$0xff] }
 0x3e4   : > { %5266 = vmatprep.subr.bf16.mxu0 %v5265_v6  ;;  %v5303_v6 = vpack.c.bf16 %v2398_v0, %v2392_v63  ;;  %v5305_v9 = vpack.c.bf16 %v2411_v4, %v2405_v3  ;;  %v2512_v0 = vld [vmem:[%s6169_s6 + $0xb60] sm:$0xff]  ;;  %v2518_v3 = vld [vmem:[%s6169_s6 + $0xb90] sm:$0xff]  ;;  %v2525_v4 = vld [vmem:[%s6169_s6 + $0xbc8] sm:$0xff] }
 0x3e7   : > { %5268 = vmatpush1.bf16.msra.mxu0 %v5267_v12  ;;  %v2423_v12 = vld [vmem:[%s6169_s6 + $0x898] sm:$0xff] }
 0x3e8   : > { %5270 = vmatprep.subr.bf16.mxu0 %v5269_v2  ;;  %v5307_v2 = vpack.c.bf16 %v2410_v44, %v2404_v10  ;;  %v5309_v13 = vpack.c.bf16 %v2423_v12, %v2417_v11  ;;  %v2524_v44 = vld [vmem:[%s6169_s6 + $0xbc0] sm:$0xff]  ;;  %v2530_v11 = vld [vmem:[%s6169_s6 + $0xbf0] sm:$0xff]  ;;  %v2537_v12 = vld [vmem:[%s6169_s6 + $0xc28] sm:$0xff] }
 0x3eb   : > { %5272 = vmatpush1.bf16.msra.mxu0 %v5271_v61  ;;  %v2435_v61 = vld [vmem:[%s6169_s6 + $0x8f8] sm:$0xff] }
 0x3ec   : > { %5274 = vmatprep.subr.bf16.mxu0 %v5273_v16  ;;  %v5311_v16 = vpack.c.bf16 %v2422_v5, %v2416_v14  ;;  %v5313_v17 = vpack.c.bf16 %v2435_v61, %v2429_v15  ;;  %v2536_v5 = vld [vmem:[%s6169_s6 + $0xc20] sm:$0xff]  ;;  %v2542_v15 = vld [vmem:[%s6169_s6 + $0xc50] sm:$0xff]  ;;  %v2549_v61 = vld [vmem:[%s6169_s6 + $0xc88] sm:$0xff] }
 0x3ef   : > { %5276 = vmatpush1.bf16.msra.mxu0 %v5275_v24  ;;  %v2447_v24 = vld [vmem:[%s6169_s6 + $0x958] sm:$0xff] }
 0x3f0   : > { %5278 = vmatprep.subr.bf16.mxu0 %v5277_v8  ;;  %v5315_v8 = vpack.c.bf16 %v2434_v21, %v2428_v18  ;;  %v5317_v28 = vpack.c.bf16 %v2447_v24, %v2441_v23  ;;  %v2548_v21 = vld [vmem:[%s6169_s6 + $0xc80] sm:$0xff]  ;;  %v2554_v23 = vld [vmem:[%s6169_s6 + $0xcb0] sm:$0xff]  ;;  %v2561_v24 = vld [vmem:[%s6169_s6 + $0xce8] sm:$0xff] }
 0x3f3   : > { %5280 = vmatpush1.bf16.msra.mxu0 %v5279_v30  ;;  %v2459_v30 = vld [vmem:[%s6169_s6 + $0x9b8] sm:$0xff] }
 0x3f4   : > { %5282 = vmatprep.subr.bf16.mxu0 %v5281_v32  ;;  %v5319_v32 = vpack.c.bf16 %v2446_v19, %v2440_v40  ;;  %v5321_v33 = vpack.c.bf16 %v2459_v30, %v2453_v29  ;;  %v2560_v19 = vld [vmem:[%s6169_s6 + $0xce0] sm:$0xff]  ;;  %v2566_v29 = vld [vmem:[%s6169_s6 + $0xd10] sm:$0xff]  ;;  %v2573_v30 = vld [vmem:[%s6169_s6 + $0xd48] sm:$0xff] }
 0x3f7   : > { %5284 = vmatpush1.bf16.msra.mxu0 %v5283_v39  ;;  %v2471_v39 = vld [vmem:[%s6169_s6 + $0xa18] sm:$0xff] }
 0x3f8   : > { %5286 = vmatprep.subr.bf16.mxu0 %v5285_v41  ;;  %v5323_v41 = vpack.c.bf16 %v2458_v35, %v2452_v34  ;;  %v5325_v7 = vpack.c.bf16 %v2471_v39, %v2465_v37  ;;  %v2572_v34 = vld [vmem:[%s6169_s6 + $0xd40] sm:$0xff]  ;;  %v2578_v35 = vld [vmem:[%s6169_s6 + $0xd70] sm:$0xff]  ;;  %v2591_v37 = vld [vmem:[%s6169_s6 + $0xdd8] sm:$0xff] }
 0x3f9   : > { %v5363_v39 = vpack.c.bf16 %v2578_v35, %v2572_v34  ;;  %v2698_v34 = vld [vmem:[%s6169_s6 + $0x1130] sm:$0xff]  ;;  %v2705_v35 = vld [vmem:[%s6169_s6 + $0x1168] sm:$0xff] }
 0x3fa   : > { %3549 = vmatmul.mubr.f32.vlgmr.msra.gmra.mrb[6].mxu0 %v6927_v46  ;;  %v5297_v46 = vpack.c.bf16 %v2387_v57, %v2381_v56  ;;  %v2494_v56 = vld [vmem:[%s6169_s6 + $0xad0] sm:$0xff]  ;;  %v2501_v57 = vld [vmem:[%s6169_s6 + $0xb08] sm:$0xff] }
 0x3fb   : > { %5288 = vmatpush1.bf16.msra.mxu0 %v5287_v49  ;;  %3619 = vmatprep.mubr.f32.mxu0 %v7221_v42  ;;  %v2393_v42 = vld [vmem:[%s6169_s6 + $0x7a8] sm:$0xff]  ;;  %v2483_v49 = vld [vmem:[%s6169_s6 + $0xa78] sm:$0xff] }
 0x3fc   : > { %5290 = vmatprep.subr.bf16.mxu0 %v5289_v50  ;;  %v5301_v62 = vpack.c.bf16 %v2399_v27, %v2393_v42  ;;  %v5327_v50 = vpack.c.bf16 %v2470_v45, %v2464_v43  ;;  %v5329_v22 = vpack.c.bf16 %v2483_v49, %v2477_v47  ;;  %v2506_v42 = vld [vmem:[%s6169_s6 + $0xb30] sm:$0xff]  ;;  %v2513_v27 = vld [vmem:[%s6169_s6 + $0xb68] sm:$0xff]  ;;  %v2603_v47 = vld [vmem:[%s6169_s6 + $0xe38] sm:$0xff] }
 0x3fd   : > { %v2590_v43 = vld [vmem:[%s6169_s6 + $0xdd0] sm:$0xff]  ;;  %v2597_v45 = vld [vmem:[%s6169_s6 + $0xe08] sm:$0xff] }
 0x3ff   : > { %5292 = vmatpush1.bf16.msra.mxu0 %v5291_v53  ;;  %v2495_v53 = vld [vmem:[%s6169_s6 + $0xad8] sm:$0xff] }
 0x400   : > { %5294 = vmatprep.subr.bf16.mxu0 %v5293_v26  ;;  %v5331_v26 = vpack.c.bf16 %v2482_v31, %v2476_v52  ;;  %v5333_v55 = vpack.c.bf16 %v2495_v53, %v2489_v38  ;;  %v2602_v52 = vld [vmem:[%s6169_s6 + $0xe30] sm:$0xff]  ;;  %v2609_v31 = vld [vmem:[%s6169_s6 + $0xe68] sm:$0xff]  ;;  %v2615_v38 = vld [vmem:[%s6169_s6 + $0xe98] sm:$0xff] }
 0x403   : > { %5296 = vmatpush1.bf16.msra.mxu0 %v5295_v58  ;;  %v2507_v58 = vld [vmem:[%s6169_s6 + $0xb38] sm:$0xff] }
 0x404   : > { %5298 = vmatprep.subr.bf16.mxu0 %v5297_v46  ;;  %v5335_v46 = vpack.c.bf16 %v2494_v56, %v2488_v48  ;;  %v5337_v59 = vpack.c.bf16 %v2507_v58, %v2501_v57  ;;  %v2614_v48 = vld [vmem:[%s6169_s6 + $0xe90] sm:$0xff]  ;;  %v2621_v56 = vld [vmem:[%s6169_s6 + $0xec8] sm:$0xff]  ;;  %v2627_v57 = vld [vmem:[%s6169_s6 + $0xef8] sm:$0xff] }
 0x407   : > { %5300 = vmatpush1.bf16.msra.mxu0 %v5299_v25  ;;  %v2519_v25 = vld [vmem:[%s6169_s6 + $0xb98] sm:$0xff] }
 0x408   : > { %5302 = vmatprep.subr.bf16.mxu0 %v5301_v62  ;;  %v5339_v62 = vpack.c.bf16 %v2506_v42, %v2500_v60  ;;  %v5341_v63 = vpack.c.bf16 %v2519_v25, %v2513_v27  ;;  %v2626_v60 = vld [vmem:[%s6169_s6 + $0xef0] sm:$0xff]  ;;  %v2633_v42 = vld [vmem:[%s6169_s6 + $0xf28] sm:$0xff]  ;;  %v2639_v27 = vld [vmem:[%s6169_s6 + $0xf58] sm:$0xff] }
 0x40b   : > { %5304 = vmatpush1.bf16.msra.mxu0 %v5303_v6  ;;  %v2531_v6 = vld [vmem:[%s6169_s6 + $0xbf8] sm:$0xff] }
 0x40c   : > { %5306 = vmatprep.subr.bf16.mxu0 %v5305_v9  ;;  %v5343_v9 = vpack.c.bf16 %v2518_v3, %v2512_v0  ;;  %v5345_v10 = vpack.c.bf16 %v2531_v6, %v2525_v4  ;;  %v2638_v0 = vld [vmem:[%s6169_s6 + $0xf50] sm:$0xff]  ;;  %v2645_v3 = vld [vmem:[%s6169_s6 + $0xf88] sm:$0xff]  ;;  %v2651_v4 = vld [vmem:[%s6169_s6 + $0xfb8] sm:$0xff] }
 0x40f   : > { %5308 = vmatpush1.bf16.msra.mxu0 %v5307_v2  ;;  %v2543_v2 = vld [vmem:[%s6169_s6 + $0xc58] sm:$0xff] }
 0x410   : > { %5310 = vmatprep.subr.bf16.mxu0 %v5309_v13  ;;  %v5347_v13 = vpack.c.bf16 %v2530_v11, %v2524_v44  ;;  %v5349_v14 = vpack.c.bf16 %v2543_v2, %v2537_v12  ;;  %v2650_v44 = vld [vmem:[%s6169_s6 + $0xfb0] sm:$0xff]  ;;  %v2657_v11 = vld [vmem:[%s6169_s6 + $0xfe8] sm:$0xff]  ;;  %v2663_v12 = vld [vmem:[%s6169_s6 + $0x1018] sm:$0xff] }
 0x413   : > { %5312 = vmatpush1.bf16.msra.mxu0 %v5311_v16  ;;  %v2555_v16 = vld [vmem:[%s6169_s6 + $0xcb8] sm:$0xff] }
 0x414   : > { %5314 = vmatprep.subr.bf16.mxu0 %v5313_v17  ;;  %v5351_v17 = vpack.c.bf16 %v2542_v15, %v2536_v5  ;;  %v5353_v18 = vpack.c.bf16 %v2555_v16, %v2549_v61  ;;  %v2662_v5 = vld [vmem:[%s6169_s6 + $0x1010] sm:$0xff]  ;;  %v2669_v15 = vld [vmem:[%s6169_s6 + $0x1048] sm:$0xff]  ;;  %v2675_v61 = vld [vmem:[%s6169_s6 + $0x1078] sm:$0xff] }
 0x417   : > { %5316 = vmatpush1.bf16.msra.mxu0 %v5315_v8  ;;  %v2567_v8 = vld [vmem:[%s6169_s6 + $0xd18] sm:$0xff] }
 0x418   : > { %5318 = vmatprep.subr.bf16.mxu0 %v5317_v28  ;;  %v5355_v28 = vpack.c.bf16 %v2554_v23, %v2548_v21  ;;  %v5357_v40 = vpack.c.bf16 %v2567_v8, %v2561_v24  ;;  %v2674_v21 = vld [vmem:[%s6169_s6 + $0x1070] sm:$0xff]  ;;  %v2681_v23 = vld [vmem:[%s6169_s6 + $0x10a8] sm:$0xff]  ;;  %v2687_v24 = vld [vmem:[%s6169_s6 + $0x10d8] sm:$0xff] }
 0x41b   : > { %5320 = vmatpush1.bf16.msra.mxu0 %v5319_v32  ;;  %v2579_v32 = vld [vmem:[%s6169_s6 + $0xd78] sm:$0xff] }
 0x41c   : > { %5322 = vmatprep.subr.bf16.mxu0 %v5321_v33  ;;  %v5359_v33 = vpack.c.bf16 %v2566_v29, %v2560_v19  ;;  %v2686_v19 = vld [vmem:[%s6169_s6 + $0x10d0] sm:$0xff]  ;;  %v2693_v29 = vld [vmem:[%s6169_s6 + $0x1108] sm:$0xff] }
 0x41f   : > { %5324 = vmatpush1.bf16.msra.mxu0 %v5323_v41 }
 0x420   : > { %5326 = vmatprep.subr.bf16.mxu0 %v5325_v7  ;;  %v2584_v7 = vld [vmem:[%s6169_s6 + $0xda0] sm:$0xff] }
 0x421   : > { %v5367_v49 = vpack.c.bf16 %v2590_v43, %v2584_v7  ;;  %v2710_v7 = vld [vmem:[%s6169_s6 + $0x1190] sm:$0xff]  ;;  %v2717_v43 = vld [vmem:[%s6169_s6 + $0x11c8] sm:$0xff] }
 0x423   : > { %5328 = vmatpush1.bf16.msra.mxu0 %v5327_v50  ;;  %v5369_v50 = vpack.c.bf16 %v2603_v47, %v2597_v45  ;;  %v2723_v45 = vld [vmem:[%s6169_s6 + $0x11f8] sm:$0xff] }
 0x424   : > { %5330 = vmatprep.subr.bf16.mxu0 %v5329_v22  ;;  %v2596_v22 = vld [vmem:[%s6169_s6 + $0xe00] sm:$0xff] }
 0x425   : > { %v5371_v53 = vpack.c.bf16 %v2602_v52, %v2596_v22  ;;  %v2722_v22 = vld [vmem:[%s6169_s6 + $0x11f0] sm:$0xff]  ;;  %v2729_v52 = vld [vmem:[%s6169_s6 + $0x1228] sm:$0xff] }
 0x427   : > { %5332 = vmatpush1.bf16.msra.mxu0 %v5331_v26  ;;  %v5373_v26 = vpack.c.bf16 %v2615_v38, %v2609_v31  ;;  %v2735_v31 = vld [vmem:[%s6169_s6 + $0x1258] sm:$0xff] }
 0x428   : > { %5334 = vmatprep.subr.bf16.mxu0 %v5333_v55  ;;  %v2608_v55 = vld [vmem:[%s6169_s6 + $0xe60] sm:$0xff] }
 0x429   : > { %v5375_v58 = vpack.c.bf16 %v2614_v48, %v2608_v55  ;;  %v2734_v55 = vld [vmem:[%s6169_s6 + $0x1250] sm:$0xff]  ;;  %v2741_v48 = vld [vmem:[%s6169_s6 + $0x1288] sm:$0xff] }
 0x42b   : > { %5336 = vmatpush1.bf16.msra.mxu0 %v5335_v46  ;;  %v5377_v46 = vpack.c.bf16 %v2627_v57, %v2621_v56  ;;  %v2747_v56 = vld [vmem:[%s6169_s6 + $0x12b8] sm:$0xff] }
 0x42c   : > { %5338 = vmatprep.subr.bf16.mxu0 %v5337_v59  ;;  %v2620_v59 = vld [vmem:[%s6169_s6 + $0xec0] sm:$0xff] }
 0x42d   : > { %v5379_v25 = vpack.c.bf16 %v2626_v60, %v2620_v59  ;;  %v2746_v59 = vld [vmem:[%s6169_s6 + $0x12b0] sm:$0xff]  ;;  %v2753_v60 = vld [vmem:[%s6169_s6 + $0x12e8] sm:$0xff] }
 0x42f   : > { %5340 = vmatpush1.bf16.msra.mxu0 %v5339_v62  ;;  %v5381_v62 = vpack.c.bf16 %v2639_v27, %v2633_v42  ;;  %v2759_v42 = vld [vmem:[%s6169_s6 + $0x1318] sm:$0xff] }
 0x430   : > { %5342 = vmatprep.subr.bf16.mxu0 %v5341_v63  ;;  %v2632_v63 = vld [vmem:[%s6169_s6 + $0xf20] sm:$0xff] }
 0x431   : > { %v5383_v6 = vpack.c.bf16 %v2638_v0, %v2632_v63  ;;  %v2758_v63 = vld [vmem:[%s6169_s6 + $0x1310] sm:$0xff]  ;;  %v2765_v0 = vld [vmem:[%s6169_s6 + $0x1348] sm:$0xff] }
 0x433   : > { %5344 = vmatpush1.bf16.msra.mxu0 %v5343_v9  ;;  %v5385_v9 = vpack.c.bf16 %v2651_v4, %v2645_v3  ;;  %v2771_v3 = vld [vmem:[%s6169_s6 + $0x1378] sm:$0xff] }
 0x434   : > { %5346 = vmatprep.subr.bf16.mxu0 %v5345_v10  ;;  %v2644_v10 = vld [vmem:[%s6169_s6 + $0xf80] sm:$0xff] }
 0x435   : > { %v5387_v2 = vpack.c.bf16 %v2650_v44, %v2644_v10  ;;  %v2783_v10 = vld [vmem:[%s6169_s6 + $0x13d8] sm:$0xff] }
 0x437   : > { %5348 = vmatpush1.bf16.msra.mxu0 %v5347_v13  ;;  %v5389_v13 = vpack.c.bf16 %v2663_v12, %v2657_v11  ;;  %v2776_v12 = vld [vmem:[%s6169_s6 + $0x13a0] sm:$0xff] }
 0x438   : > { %5350 = vmatprep.subr.bf16.mxu0 %v5349_v14  ;;  %v2656_v14 = vld [vmem:[%s6169_s6 + $0xfe0] sm:$0xff] }
 0x439   : > { %v5391_v16 = vpack.c.bf16 %v2662_v5, %v2656_v14  ;;  %v2795_v14 = vld [vmem:[%s6169_s6 + $0x1438] sm:$0xff] }
 0x43a   : > { %3620 = vmatmul.mubr.f32.vlgmr.msra.gmra.mrb[6].mxu0 %v7226_v1  ;;  %v5361_v1 = vpack.c.bf16 %v2579_v32, %v2573_v30  ;;  %v2699_v30 = vld [vmem:[%s6169_s6 + $0x1138] sm:$0xff] }
 0x43b   : > { %5352 = vmatpush1.bf16.msra.mxu0 %v5351_v17  ;;  %3690 = vmatprep.mubr.f32.mxu0 %v7232_v54  ;;  %v2585_v54 = vld [vmem:[%s6169_s6 + $0xda8] sm:$0xff]  ;;  %v5393_v17 = vpack.c.bf16 %v2675_v61, %v2669_v15  ;;  %v2788_v61 = vld [vmem:[%s6169_s6 + $0x1400] sm:$0xff] }
 0x43c   : > { %5354 = vmatprep.subr.bf16.mxu0 %v5353_v18  ;;  %v5365_v41 = vpack.c.bf16 %v2591_v37, %v2585_v54  ;;  %v2668_v18 = vld [vmem:[%s6169_s6 + $0x1040] sm:$0xff]  ;;  %v2711_v54 = vld [vmem:[%s6169_s6 + $0x1198] sm:$0xff] }
 0x43d   : > { %v5395_v8 = vpack.c.bf16 %v2674_v21, %v2668_v18  ;;  %v2807_v18 = vld [vmem:[%s6169_s6 + $0x1498] sm:$0xff]  ;;  %v2142_v21 = vld [vmem:[#allocation11] sm:$0xff] }
 0x43f   : > { %5356 = vmatpush1.bf16.msra.mxu0 %v5355_v28  ;;  %v5397_v28 = vpack.c.bf16 %v2687_v24, %v2681_v23  ;;  %v2143_v24 = vld [vmem:[#allocation11 + $0x8] sm:$0xff] }
 0x440   : > { %5358 = vmatprep.subr.bf16.mxu0 %v5357_v40  ;;  %v2680_v40 = vld [vmem:[%s6169_s6 + $0x10a0] sm:$0xff] }
 0x441   : > { %v5399_v32 = vpack.c.bf16 %v2686_v19, %v2680_v40  ;;  %v2806_v40 = vld [vmem:[%s6169_s6 + $0x1490] sm:$0xff] }
 0x443   : > { %5360 = vmatpush1.bf16.msra.mxu0 %v5359_v33  ;;  %v5401_v33 = vpack.c.bf16 %v2699_v30, %v2693_v29  ;;  %v2813_v29 = vld [vmem:[%s6169_s6 + $0x14c8] sm:$0xff]  ;;  %v2819_v30 = vld [vmem:[%s6169_s6 + $0x14f8] sm:$0xff] }
 0x444   : > { %5362 = vmatprep.subr.bf16.mxu0 %v5361_v1  ;;  %v2692_v1 = vld [vmem:[%s6169_s6 + $0x1100] sm:$0xff] }
 0x445   : > { %v5403_v37 = vpack.c.bf16 %v2698_v34, %v2692_v1 }
 0x447   : > { %5364 = vmatpush1.bf16.msra.mxu0 %v5363_v39  ;;  %v5405_v39 = vpack.c.bf16 %v2711_v54, %v2705_v35  ;;  %v5441_v35 = vpack.c.bf16 %v2819_v30, %v2813_v29  ;;  %v2812_v54 = vld [vmem:[%s6169_s6 + $0x14c0] sm:$0xff] }
 0x448   : > { %5366 = vmatprep.subr.bf16.mxu0 %v5365_v41  ;;  %v2704_v41 = vld [vmem:[%s6169_s6 + $0x1160] sm:$0xff] }
 0x449   : > { %v5407_v47 = vpack.c.bf16 %v2710_v7, %v2704_v41  ;;  %v2831_v41 = vld [vmem:[%s6169_s6 + $0x1558] sm:$0xff]  ;;  %v2146_v30 = vld [vmem:[#allocation11 + $0x20] sm:$0xff] }
 0x44b   : > { %5368 = vmatpush1.bf16.msra.mxu0 %v5367_v49  ;;  %v5409_v49 = vpack.c.bf16 %v2723_v45, %v2717_v43  ;;  %v2824_v45 = vld [vmem:[%s6169_s6 + $0x1520] sm:$0xff] }
 0x44c   : > { %5370 = vmatprep.subr.bf16.mxu0 %v5369_v50  ;;  %v2716_v50 = vld [vmem:[%s6169_s6 + $0x11c0] sm:$0xff] }
 0x44d   : > { %v5411_v38 = vpack.c.bf16 %v2722_v22, %v2716_v50  ;;  %v2843_v50 = vld [vmem:[%s6169_s6 + $0x15b8] sm:$0xff] }
 0x44f   : > { %5372 = vmatpush1.bf16.msra.mxu0 %v5371_v53  ;;  %v5413_v53 = vpack.c.bf16 %v2735_v31, %v2729_v52  ;;  %v2836_v31 = vld [vmem:[%s6169_s6 + $0x1580] sm:$0xff] }
 0x450   : > { %5374 = vmatprep.subr.bf16.mxu0 %v5373_v26  ;;  %v2728_v26 = vld [vmem:[%s6169_s6 + $0x1220] sm:$0xff] }
 0x451   : > { %v5415_v57 = vpack.c.bf16 %v2734_v55, %v2728_v26  ;;  %v2855_v26 = vld [vmem:[%s6169_s6 + $0x1618] sm:$0xff] }
 0x452   : > { %v2144_v55 = vld [vmem:[#allocation11 + $0x10] sm:$0xff] }
 0x453   : > { %5376 = vmatpush1.bf16.msra.mxu0 %v5375_v58  ;;  %v5417_v58 = vpack.c.bf16 %v2747_v56, %v2741_v48  ;;  %v2145_v48 = vld [vmem:[#allocation11 + $0x18] sm:$0xff] }
 0x454   : > { %5378 = vmatprep.subr.bf16.mxu0 %v5377_v46  ;;  %v2740_v46 = vld [vmem:[%s6169_s6 + $0x1280] sm:$0xff] }
 0x455   : > { %v5419_v27 = vpack.c.bf16 %v2746_v59, %v2740_v46  ;;  %v2848_v46 = vld [vmem:[%s6169_s6 + $0x15e0] sm:$0xff]  ;;  %v2854_v59 = vld [vmem:[%s6169_s6 + $0x1610] sm:$0xff] }
 0x457   : > { %5380 = vmatpush1.bf16.msra.mxu0 %v5379_v25  ;;  %v5421_v25 = vpack.c.bf16 %v2759_v42, %v2753_v60 }
 0x458   : > { %5382 = vmatprep.subr.bf16.mxu0 %v5381_v62  ;;  %v2752_v62 = vld [vmem:[%s6169_s6 + $0x12e0] sm:$0xff] }
 0x459   : > { %v5423_v4 = vpack.c.bf16 %v2758_v63, %v2752_v62  ;;  %v5455_v63 = vpack.c.bf16 %v2854_v59, %v2848_v46 }
 0x45b   : > { %5384 = vmatpush1.bf16.msra.mxu0 %v5383_v6  ;;  %v2764_v6 = vld [vmem:[%s6169_s6 + $0x1340] sm:$0xff] }
 0x45c   : > { %5386 = vmatprep.subr.bf16.mxu0 %v5385_v9  ;;  %v2770_v9 = vld [vmem:[%s6169_s6 + $0x1370] sm:$0xff] }
 0x45d   : > { %v5427_v44 = vpack.c.bf16 %v2770_v9, %v2764_v6  ;;  %v2879_v6 = vld [vmem:[%s6169_s6 + $0x16d8] sm:$0xff] }
 0x45f   : > { %5388 = vmatpush1.bf16.msra.mxu0 %v5387_v2  ;;  %v2782_v2 = vld [vmem:[%s6169_s6 + $0x13d0] sm:$0xff] }
 0x460   : > { %5390 = vmatprep.subr.bf16.mxu0 %v5389_v13  ;;  %v2789_v13 = vld [vmem:[%s6169_s6 + $0x1408] sm:$0xff]  ;;  %v5431_v5 = vpack.c.bf16 %v2782_v2, %v2776_v12  ;;  %v2891_v12 = vld [vmem:[%s6169_s6 + $0x1738] sm:$0xff] }
 0x461   : > { %v5433_v15 = vpack.c.bf16 %v2795_v14, %v2789_v13  ;;  %v2884_v14 = vld [vmem:[%s6169_s6 + $0x1700] sm:$0xff] }
 0x463   : > { %5392 = vmatpush1.bf16.msra.mxu0 %v5391_v16  ;;  %v2794_v16 = vld [vmem:[%s6169_s6 + $0x1430] sm:$0xff] }
 0x464   : > { %5394 = vmatprep.subr.bf16.mxu0 %v5393_v17  ;;  %v2801_v17 = vld [vmem:[%s6169_s6 + $0x1468] sm:$0xff]  ;;  %v5435_v23 = vpack.c.bf16 %v2794_v16, %v2788_v61  ;;  %v2903_v61 = vld [vmem:[%s6169_s6 + $0x1798] sm:$0xff] }
 0x467   : > { %5396 = vmatpush1.bf16.msra.mxu0 %v5395_v8  ;;  %v5437_v8 = vpack.c.bf16 %v2807_v18, %v2801_v17  ;;  %v2896_v18 = vld [vmem:[%s6169_s6 + $0x1760] sm:$0xff] }
 0x468   : > { %5398 = vmatprep.subr.bf16.mxu0 %v5397_v28  ;;  %v2800_v28 = vld [vmem:[%s6169_s6 + $0x1460] sm:$0xff] }
 0x469   : > { %v5439_v34 = vpack.c.bf16 %v2806_v40, %v2800_v28  ;;  %v2908_v40 = vld [vmem:[%s6169_s6 + $0x17c0] sm:$0xff] }
 0x46b   : > { %5400 = vmatpush1.bf16.msra.mxu0 %v5399_v32 }
 0x46c   : > { %5402 = vmatprep.subr.bf16.mxu0 %v5401_v33 }
 0x46f   : > { %5404 = vmatpush1.bf16.msra.mxu0 %v5403_v37  ;;  %v2818_v37 = vld [vmem:[%s6169_s6 + $0x14f0] sm:$0xff] }
 0x470   : > { %5406 = vmatprep.subr.bf16.mxu0 %v5405_v39  ;;  %v2825_v39 = vld [vmem:[%s6169_s6 + $0x1528] sm:$0xff]  ;;  %v5443_v7 = vpack.c.bf16 %v2818_v37, %v2812_v54 }
 0x471   : > { %v5445_v43 = vpack.c.bf16 %v2831_v41, %v2825_v39 }
 0x473   : > { %5408 = vmatpush1.bf16.msra.mxu0 %v5407_v47  ;;  %v2830_v47 = vld [vmem:[%s6169_s6 + $0x1550] sm:$0xff] }
 0x474   : > { %5410 = vmatprep.subr.bf16.mxu0 %v5409_v49  ;;  %v2837_v49 = vld [vmem:[%s6169_s6 + $0x1588] sm:$0xff]  ;;  %v5447_v22 = vpack.c.bf16 %v2830_v47, %v2824_v45 }
 0x475   : > { %v5449_v52 = vpack.c.bf16 %v2843_v50, %v2837_v49 }
 0x477   : > { %5412 = vmatpush1.bf16.msra.mxu0 %v5411_v38  ;;  %v2842_v38 = vld [vmem:[%s6169_s6 + $0x15b0] sm:$0xff] }
 0x478   : > { %5414 = vmatprep.subr.bf16.mxu0 %v5413_v53  ;;  %v2849_v53 = vld [vmem:[%s6169_s6 + $0x15e8] sm:$0xff]  ;;  %v5451_v56 = vpack.c.bf16 %v2842_v38, %v2836_v31 }
 0x47a   : > { %3691 = vmatmul.mubr.f32.vlgmr.msra.gmra.mrb[6].mxu0 %v7373_v20  ;;  %v5425_v20 = vpack.c.bf16 %v2771_v3, %v2765_v0  ;;  %v2860_v3 = vld [vmem:[%s6169_s6 + $0x1640] sm:$0xff] }
 0x47b   : > { %5416 = vmatpush1.bf16.msra.mxu0 %v5415_v57  ;;  %3761 = vmatprep.mubr.f32.mxu0 %v7585_v51  ;;  %v2777_v51 = vld [vmem:[%s6169_s6 + $0x13a8] sm:$0xff] }
 0x47c   : > { %5418 = vmatprep.subr.bf16.mxu0 %v5417_v58  ;;  %v5429_v11 = vpack.c.bf16 %v2783_v10, %v2777_v51  ;;  %v5453_v58 = vpack.c.bf16 %v2855_v26, %v2849_v53  ;;  %v2872_v10 = vld [vmem:[%s6169_s6 + $0x16a0] sm:$0xff] }
 0x47f   : > { %5420 = vmatpush1.bf16.msra.mxu0 %v5419_v27  ;;  %v2861_v27 = vld [vmem:[%s6169_s6 + $0x1648] sm:$0xff] }
 0x480   : > { %5422 = vmatprep.subr.bf16.mxu0 %v5421_v25  ;;  %v2867_v25 = vld [vmem:[%s6169_s6 + $0x1678] sm:$0xff] }
 0x481   : > { %v5457_v0 = vpack.c.bf16 %v2867_v25, %v2861_v27 }
 0x483   : > { %5424 = vmatpush1.bf16.msra.mxu0 %v5423_v4  ;;  %v2866_v4 = vld [vmem:[%s6169_s6 + $0x1670] sm:$0xff] }
 0x484   : > { %5426 = vmatprep.subr.bf16.mxu0 %v5425_v20  ;;  %v2873_v20 = vld [vmem:[%s6169_s6 + $0x16a8] sm:$0xff]  ;;  %v5459_v9 = vpack.c.bf16 %v2866_v4, %v2860_v3 }
 0x485   : > { %v5461_v51 = vpack.c.bf16 %v2879_v6, %v2873_v20 }
 0x487   : > { %5428 = vmatpush1.bf16.msra.mxu0 %v5427_v44  ;;  %v2878_v44 = vld [vmem:[%s6169_s6 + $0x16d0] sm:$0xff] }
 0x488   : > { %5430 = vmatprep.subr.bf16.mxu0 %v5429_v11  ;;  %v2885_v11 = vld [vmem:[%s6169_s6 + $0x1708] sm:$0xff]  ;;  %v5463_v2 = vpack.c.bf16 %v2878_v44, %v2872_v10 }
 0x489   : > { %v5465_v13 = vpack.c.bf16 %v2891_v12, %v2885_v11 }
 0x48b   : > { %5432 = vmatpush1.bf16.msra.mxu0 %v5431_v5  ;;  %v2890_v5 = vld [vmem:[%s6169_s6 + $0x1730] sm:$0xff] }
 0x48c   : > { %5434 = vmatprep.subr.bf16.mxu0 %v5433_v15  ;;  %v2897_v15 = vld [vmem:[%s6169_s6 + $0x1768] sm:$0xff]  ;;  %v5467_v16 = vpack.c.bf16 %v2890_v5, %v2884_v14 }
 0x48d   : > { %v3195_v19 = vpop.f32.mrb[4].mxu0  ;;  %v5469_v17 = vpack.c.bf16 %v2903_v61, %v2897_v15 }
 0x48e   : > { %v3768_v32 = vadd.f32 %v3195_v19, %v2142_v21  ;;  %v3197_v33 = vpop.f32.mrb[5].mxu0  ;;  %v2902_v21 = vld [vmem:[%s6169_s6 + $0x1790] sm:$0xff] }
 0x48f   : > { %v3769_v1 = vadd.f32 %v3197_v33, %v2143_v24  ;;  %5436 = vmatpush1.bf16.msra.mxu0 %v5435_v23  ;;  %v2909_v23 = vld [vmem:[%s6169_s6 + $0x17c8] sm:$0xff]  ;;  %v2915_v24 = vld [vmem:[%s6169_s6 + $0x17f8] sm:$0xff]  ;;  %v2914_v19 = vld [vmem:[%s6169_s6 + $0x17f0] sm:$0xff] }
 0x490   : > { %3774 = vst [vmem:[#allocation11] sm:$0xff] %v3768_v32  ;;  %5438 = vmatprep.subr.bf16.mxu0 %v5437_v8  ;;  %v5471_v8 = vpack.c.bf16 %v2902_v21, %v2896_v18  ;;  %v5473_v28 = vpack.c.bf16 %v2915_v24, %v2909_v23  ;;  %v5475_v29 = vpack.c.bf16 %v2914_v19, %v2908_v40  ;;  %v2147_v32 = vld [vmem:[#allocation11 + $0x28] sm:$0xff] }
 0x491   : > { %3775 = vst [vmem:[#allocation11 + $0x8] sm:$0xff] %v3769_v1 }
 0x493   : > { %5440 = vmatpush1.bf16.msra.mxu0 %v5439_v34 }
 0x494   : > { %5442 = vmatprep.subr.bf16.mxu0 %v5441_v35 }
 0x497   : > { %5444 = vmatpush1.bf16.msra.mxu0 %v5443_v7 }
 0x498   : > { %5446 = vmatprep.subr.bf16.mxu0 %v5445_v43 }
 0x49b   : > { %5448 = vmatpush1.bf16.msra.mxu0 %v5447_v22 }
 0x49c   : > { %v3479_v57 = vpop.f32.mrb[6].mxu1  ;;  %5450 = vmatprep.subr.bf16.mxu0 %v5449_v52 }
 0x49d   : > { %v3770_v60 = vadd.f32 %v3479_v57, %v2144_v55  ;;  %v3481_v42 = vpop.f32.mrb[7].mxu1 }
 0x49e   : > { %v3771_v62 = vadd.f32 %v3481_v42, %v2145_v48 }
 0x49f   : > { %3776 = vst [vmem:[#allocation11 + $0x10] sm:$0xff] %v3770_v60  ;;  %5452 = vmatpush1.bf16.msra.mxu0 %v5451_v56 }
 0x4a0   : > { %3777 = vst [vmem:[#allocation11 + $0x18] sm:$0xff] %v3771_v62  ;;  %5454 = vmatprep.subr.bf16.mxu0 %v5453_v58 }
 0x4a3   : > { %5456 = vmatpush1.bf16.msra.mxu0 %v5455_v63 }
 0x4a4   : > { %5458 = vmatprep.subr.bf16.mxu0 %v5457_v0 }
 0x4a7   : > { %5460 = vmatpush1.bf16.msra.mxu0 %v5459_v9 }
 0x4a8   : > { %5462 = vmatprep.subr.bf16.mxu0 %v5461_v51 }
 0x4ab   : > { %5464 = vmatpush1.bf16.msra.mxu0 %v5463_v2 }
 0x4ac   : > { %5466 = vmatprep.subr.bf16.mxu0 %v5465_v13 }
 0x4af   : > { %5468 = vmatpush1.bf16.msra.mxu0 %v5467_v16 }
 0x4b0   : > { %5470 = vmatprep.subr.bf16.mxu0 %v5469_v17 }
 0x4b3   : > { %5472 = vmatpush1.bf16.msra.mxu0 %v5471_v8 }
 0x4b4   : > { %5474 = vmatprep.subr.bf16.mxu0 %v5473_v28 }
 0x4b7   : > { %5476 = vmatpush1.bf16.msra.mxu0 %v5475_v29 }
 0x4ba   : > { %3762 = vmatmul.mubr.f32.vlgmr.msra.gmra.mrb[6].mxu0 %v7590_v36 }
 0x58d   : > { %v3763_v33 = vpop.f32.mrb[6].mxu0 }
 0x58e   : > { %v3772_v1 = vadd.f32 %v3763_v33, %v2146_v30  ;;  %v3765_v34 = vpop.f32.mrb[7].mxu0 }
 0x58f   : > { %v3773_v35 = vadd.f32 %v3765_v34, %v2147_v32 }
 0x590   : > { %3778 = vst [vmem:[#allocation11 + $0x20] sm:$0xff] %v3772_v1 }
 0x591   : > { %3779 = vst [vmem:[#allocation11 + $0x28] sm:$0xff] %v3773_v35 }
 0x592   : > { %5809 = shalt.err (!%p5806_p13)
}
 0x593   : > { %s7950_s15 = sld [smem:[#allocation22_spill]] }
 0x599   : > { %s5810_s10 = scalar_lea.hbm %s7950_s15, 768 }
 0x59a   : > { %p5811_p3 = scmp.ne.s32.totalorder %s7950_s15, %s5810_s10  ;;  %p5816_p9 = scmp.lt.u32.totalorder %s5810_s10, %s7950_s15 }
 0x59c   : > { %p5812_p1 = pnand %p5811_p3, %p5563_p12 }
 0x59e   : > { %p5813_p4 = pneg %p5812_p1 }
 0x5a0   : > { %p5818_p5 = pnand %p5816_p9, %p5813_p4 }
 0x5a2   : > { %5821 = shalt.err (!%p5818_p5)
}
 0x5a3   : > { %5538 = dma.vmem_to_hbm [thread:$0]  (%p5563_p12), %s3791_s13, 768, %s7950_s15, [#allocation4]  }
 0x5a4   : > { %5863 = dma.done.wait (%p5563_p12), [#allocation4], 768  }
 0x5a5   : > { %5865 = vsyncadd (%p5563_p12), [#allocation4], 4294966528 }
 0x5a6 PF: > { %s23_s23 = sadd.s32 1, %s5888_s23   ;;  %s7951_s9 = sld [smem:[#allocation19_spill]] }
 0x5a7   : > { %p20_p2 = scmp.ge.s32.totalorder %s23_s23, 5   ;;  %s7952_s4 = sld [smem:[#allocation18_spill]] }
 0x5a8   : > { %s7953_s18 = smov %s5872_s19  ;;  %s7954_s19 = smov %s5876_s20 }
 0x5a9   : > { %s7956_s21 = smov %s5884_s22  ;;  %22 = sbr.rel (!%p20_p2) target bundleno = 12 (0xc), region = 116 }
 0x5ac   : > { %s7955_s20 = smov %s7951_s9 }
 0x5ad   : > { %s7957_s22 = smov %s7952_s4 }
 0x5b0   :  { %3803 = vsyncpa [#allocation3], 1 }
 0x5b1   :  { %3805 = vsyncpa [#allocation3 + $0x1], 1 }
 0x5b2   :  { %3806 = vsyncpa [#allocation6], 1 }
 0x5b3   :  { %3808 = vsyncpa [#allocation6 + $0x1], 1 }
 0x5b4   :  { %3809 = vsyncpa [#allocation9], 1 }
 0x5b5   :  { %3811 = vsyncpa [#allocation9 + $0x1], 1 }
 0x5b6   :  { %3812 = vsyncpa [#allocation4], 1 }
 0x5b7   :  { %3814 = vsyncpa [#allocation4 + $0x1], 1 }

</bundles_post_ra>
